<compile_context>
chip_gen: v6e
topology: v6e:2x2x1
jax: 0.10.0
libtpu: 0.0.40
codegen_flags: <defaults>
</compile_context>

<pallas_src>
import functools

import jax
import jax.numpy as jnp
from jax.experimental import pallas as pl
from jax.experimental.pallas import tpu as pltpu


def _global_attention_kernel(q_ref, h_ref, w1t_ref, w2at_ref, w2bt_ref, o_ref,
                             q1_sc, m_sc, l_sc, acc_sc, *, inner_chunk):
    si = pl.program_id(1)                         # S-tile index (reduction axis)
    last_si = pl.num_programs(1) - 1

    @pl.when(si == 0)
    def _init():
        q = q_ref[...]                                            # (tb, D)
        # q1 = L1(q): one small MXU matmul per batch tile, kept resident.
        q1 = jnp.dot(q, w1t_ref[...], preferred_element_type=jnp.float32)
        q1_sc[...] = q1.astype(q1_sc.dtype)[:, None, :]           # (tb, 1, D)
        m_sc[...] = jnp.full_like(m_sc, -jnp.inf)
        l_sc[...] = jnp.zeros_like(l_sc)
        acc_sc[...] = jnp.zeros_like(acc_sc)

    q1 = q1_sc[...]                                               # (tb, 1, D)
    ts = h_ref.shape[1]
    n_chunks = ts // inner_chunk

    # Static inner loop over key chunks of the already-resident H tile: DMA
    # tiles stay large while live vregs for the score/softmax slabs stay small.
    for c in range(n_chunks):
        h = h_ref[:, pl.ds(c * inner_chunk, inner_chunk), :]      # (tb, ck, D)
        s = jnp.einsum("bqd,bkd->bqk", q1, h,
                       preferred_element_type=jnp.float32)        # (tb, 1, ck)

        # Online softmax update (f32 math).
        m_prev = m_sc[...]                                        # (tb, 1, 1)
        m_new = jnp.maximum(m_prev, jnp.max(s, axis=-1, keepdims=True))
        alpha = jnp.exp(m_prev - m_new)
        p = jnp.exp(s - m_new)                                    # (tb, 1, ck)
        l_sc[...] = alpha * l_sc[...] + jnp.sum(p, axis=-1, keepdims=True)
        acc_sc[...] = alpha * acc_sc[...] + jnp.einsum(
            "bqk,bkd->bqd", p.astype(h.dtype), h,
            preferred_element_type=jnp.float32)                   # (tb, 1, D)
        m_sc[...] = m_new

    @pl.when(si == last_si)
    def _finalize():
        q = q_ref[...]                                            # (tb, D)
        # Exact normalization: runs once per batch tile, so an approximate
        # reciprocal saves nothing but costs ~1e-3 accuracy.
        c_ctx = (acc_sc[...] / l_sc[...])[:, 0, :].astype(q.dtype)    # (tb, D)
        out = jnp.tanh(
            jnp.dot(c_ctx, w2at_ref[...], preferred_element_type=jnp.float32)
            + jnp.dot(q, w2bt_ref[...], preferred_element_type=jnp.float32))
        o_ref[...] = out.astype(o_ref.dtype)


def _pick_seq_tile(dim, cap):
    """Largest divisor of `dim` that is <= cap and sublane-aligned (or dim)."""
    if dim <= cap:
        return dim
    valid = [d for d in range(1, cap + 1) if dim % d == 0 and d % 8 == 0]
    # TODO(synk): for large S with no aligned divisor, pad S and mask padded
    # keys with -inf instead of falling back to a full-extent tile.
    return max(valid) if valid else dim


def _pick_batch_tile(batch, cap):
    """Divisor of `batch`, sublane-aligned (or == batch); prefer an even
    number of batch programs (>= 2) so both v7x TensorCores are used."""
    valid = [d for d in range(1, batch + 1)
             if batch % d == 0 and (d % 8 == 0 or d == batch)]
    capped = [d for d in valid if d <= cap] or valid
    even = [d for d in capped if (batch // d) >= 2 and (batch // d) % 2 == 0]
    return max(even) if even else max(capped)


def _vmem_limit_bytes(requested_bytes):
    """Generation-aware VMEM limit: ~75% of physical capacity as the cap."""
    try:
        capacity = int(pltpu.get_tpu_info().vmem_capacity_bytes)
    except Exception:  # not a real TPU (interpret mode) or older jax
        capacity = 128 << 20
    return int(max(4 << 20, min(requested_bytes, capacity * 3 // 4)))


def global_attention(q, H, w1, w2, *, block_b=16, block_s=1024, inner_chunk=256):
    """q: (B, D), H: (B, S, D), w1 = L1.weight (D, D), w2 = L2.weight (D, 2D)."""
    B, D = q.shape
    Bh, S, Dh = H.shape
    assert Bh == B and Dh == D
    assert w1.shape == (D, D) and w2.shape == (D, 2 * D)

    # NOTE: when weights are jit constants these fold away; for traced
    # parameters, hoist this split/transpose to parameter-init time.
    w1t = w1.T
    w2at = w2[:, :D].T           # multiplies the attention context c
    w2bt = w2[:, D:].T           # multiplies q

    tb = _pick_batch_tile(B, block_b)
    ts = _pick_seq_tile(S, block_s)
    ck = _pick_seq_tile(ts, min(inner_chunk, ts))
    nb, ns = B // tb, S // ts

    in_dtype = q.dtype
    itemsize = jnp.dtype(in_dtype).itemsize

    cost = pl.CostEstimate(
        flops=6 * B * D * D + 4 * B * S * D,
        transcendentals=B * S + B * D,
        bytes_accessed=(B * S * D + 2 * B * D + 3 * D * D) * itemsize,
    )

    requested_vmem = (
        2 * (tb * D + tb * ts * D) * itemsize      # double-buffered q / H blocks
        + 2 * 3 * D * D * itemsize                 # weight blocks
        + 2 * tb * D * itemsize                    # output block
        + tb * D * itemsize                        # q1 scratch
        + (tb * D + 2 * tb) * 4                    # acc / m / l scratch (f32)
    )
    vmem_limit = _vmem_limit_bytes(int(1.5 * requested_vmem) + (2 << 20))

    kernel = functools.partial(_global_attention_kernel, inner_chunk=ck)

    grid_spec = pltpu.PrefetchScalarGridSpec(
        num_scalar_prefetch=0,
        grid=(nb, ns),
        in_specs=[
            pl.BlockSpec((tb, D), lambda bi, si: (bi, 0)),          # q
            pl.BlockSpec((tb, ts, D), lambda bi, si: (bi, si, 0)),  # H
            # TODO(synk): constant-index weight blocks could be single-buffered
            # (pipeline_mode=pl.Buffered(1)) to save 3*D^2*itemsize of VMEM.
            pl.BlockSpec((D, D), lambda bi, si: (0, 0)),            # w1t
            pl.BlockSpec((D, D), lambda bi, si: (0, 0)),            # w2at
            pl.BlockSpec((D, D), lambda bi, si: (0, 0)),            # w2bt
        ],
        out_specs=pl.BlockSpec((tb, D), lambda bi, si: (bi, 0)),
        scratch_shapes=[
            pltpu.VMEM((tb, 1, D), in_dtype),      # q1 (resident per batch tile)
            pltpu.VMEM((tb, 1, 1), jnp.float32),   # running max
            pltpu.VMEM((tb, 1, 1), jnp.float32),   # running denominator
            pltpu.VMEM((tb, 1, D), jnp.float32),   # context accumulator
        ],
    )

    return pl.pallas_call(
        kernel,
        out_shape=jax.ShapeDtypeStruct((B, D), q.dtype),
        grid_spec=grid_spec,
        compiler_params=pltpu.CompilerParams(
            dimension_semantics=("parallel", "arbitrary"),
            vmem_limit_bytes=vmem_limit,
        ),
        cost_estimate=cost,
    )(q, H, w1t, w2at, w2bt)


def global_attention_ref(q, H, w1, w2):
    """Pure-JAX reference mirroring the PyTorch forward (f32-accurate dots)."""
    hp = jax.lax.Precision.HIGHEST
    q1 = jnp.dot(q, w1.T, precision=hp)                      # (B, D)
    s = jnp.einsum("bsd,bd->bs", H, q1, precision=hp)        # (B, S)
    a = jax.nn.softmax(s, axis=1)                            # (B, S)
    c = jnp.einsum("bs,bsd->bd", a, H, precision=hp)         # (B, D)
    cq = jnp.concatenate([c, q], axis=1)                     # (B, 2D)
    return jnp.tanh(jnp.dot(cq, w2.T, precision=hp))         # (B, D)


if __name__ == "__main__":
    # Small but lane/sublane-dense shapes: D=128 (full lanes), B=16, S=512.
    # block_b=8  -> 2 batch programs (parallel axis; both v7x TCs),
    # block_s=256 -> 2 S tiles (exercises cross-tile online-softmax state),
    # inner_chunk=128 -> 2 key chunks per tile (exercises the inner loop).
    B, S, D = 16, 512, 128

    key = jax.random.PRNGKey(0)
    kq, kh, k1, k2 = jax.random.split(key, 4)

    q = jax.random.normal(kq, (B, D), dtype=jnp.float32)
    H = jax.random.normal(kh, (B, S, D), dtype=jnp.float32)
    # Deterministic "Linear" weights (bias=False in the module).
    w1 = jax.random.normal(k1, (D, D), dtype=jnp.float32) * 0.05       # L1.weight
    w2 = jax.random.normal(k2, (D, 2 * D), dtype=jnp.float32) * 0.05   # L2.weight

    out = global_attention(q, H, w1, w2, block_b=8, block_s=256, inner_chunk=128)
    out = jax.block_until_ready(out)

    ref = global_attention_ref(q, H, w1, w2)
    assert out.shape == (B, D)
    max_err = float(jnp.max(jnp.abs(out - ref)))
    assert jnp.allclose(out, ref, atol=1e-3, rtol=1e-3), (
        f"mismatch vs reference, max|diff|={max_err}")

    print("KERNEL_OK")
</pallas_src>

<mosaic_0001>
module attributes {stable_mosaic.version = 11 : i64} {
  func.func @_global_attention_kernel(%arg0: i32, %arg1: i32, %arg2: memref<8x128xf32, #tpu.memory_space<vmem>>, %arg3: memref<8x256x128xf32, #tpu.memory_space<vmem>>, %arg4: memref<128x128xf32, #tpu.memory_space<vmem>>, %arg5: memref<128x128xf32, #tpu.memory_space<vmem>>, %arg6: memref<128x128xf32, #tpu.memory_space<vmem>>, %arg7: memref<8x128xf32, #tpu.memory_space<vmem>>, %arg8: memref<8x1x128xf32, #tpu.memory_space<vmem>>, %arg9: memref<8x1x1xf32, #tpu.memory_space<vmem>>, %arg10: memref<8x1x1xf32, #tpu.memory_space<vmem>>, %arg11: memref<8x1x128xf32, #tpu.memory_space<vmem>>) attributes {dimension_semantics = [#tpu.dimension_semantics<parallel>, #tpu.dimension_semantics<arbitrary>], iteration_bounds = array<i64: 2, 2>, scalar_prefetch = 0 : i64, scratch_operands = 4 : i64, tpu.core_type = #tpu.core_type<tc>, window_params = [{transform_indices = @transform_0, window_bounds = array<i64: 8, 128>}, {transform_indices = @transform_1, window_bounds = array<i64: 8, 256, 128>}, {pipeline_mode = #tpu.pipeline_mode<synchronous>, transform_indices = @transform_2, window_bounds = array<i64: 128, 128>}, {pipeline_mode = #tpu.pipeline_mode<synchronous>, transform_indices = @transform_3, window_bounds = array<i64: 128, 128>}, {pipeline_mode = #tpu.pipeline_mode<synchronous>, transform_indices = @transform_4, window_bounds = array<i64: 128, 128>}, {transform_indices = @transform_5, window_bounds = array<i64: 8, 128>}]} {
    %c0_i32 = arith.constant 0 : i32
    %0 = arith.cmpi eq, %arg1, %c0_i32 : i32
    %1 = arith.extui %0 : i1 to i32
    %c0_i32_0 = arith.constant 0 : i32
    %2 = arith.cmpi ne, %1, %c0_i32_0 : i32
    scf.if %2 {
      %c0_52 = arith.constant 0 : index
      %c0_53 = arith.constant 0 : index
      %55 = vector.load %arg2[%c0_52, %c0_53] : memref<8x128xf32, #tpu.memory_space<vmem>>, vector<8x128xf32>
      %c0_54 = arith.constant 0 : index
      %c0_55 = arith.constant 0 : index
      %56 = vector.load %arg4[%c0_54, %c0_55] : memref<128x128xf32, #tpu.memory_space<vmem>>, vector<128x128xf32>
      %cst_56 = arith.constant dense<0.000000e+00> : vector<8x128xf32>
      %57 = tpu.matmul %55, %56, %cst_56 {dimension_numbers = #tpu.dot_dimension_numbers<[1], [0], [0], [1], [0, 0, 1, 1], [], []>} : vector<8x128xf32>, vector<128x128xf32>, vector<8x128xf32> -> vector<8x128xf32>
      %58 = vector.shape_cast %57 : vector<8x128xf32> to vector<8x1x128xf32>
      %c0_57 = arith.constant 0 : index
      %c0_58 = arith.constant 0 : index
      %c0_59 = arith.constant 0 : index
      %59 = vector.load %arg8[%c0_57, %c0_58, %c0_59] : memref<8x1x128xf32, #tpu.memory_space<vmem>>, vector<8x1x128xf32>
      tpu.vector_store %arg8[%c0_57, %c0_58, %c0_59], %58 {strides = array<i32>} : memref<8x1x128xf32, #tpu.memory_space<vmem>>, vector<8x1x128xf32>,
      %cst_60 = arith.constant 0xFF800000 : f32
      %60 = vector.broadcast %cst_60 : f32 to vector<8x1x1xf32>
      %c0_61 = arith.constant 0 : index
      %c0_62 = arith.constant 0 : index
      %c0_63 = arith.constant 0 : index
      %61 = vector.load %arg9[%c0_61, %c0_62, %c0_63] : memref<8x1x1xf32, #tpu.memory_space<vmem>>, vector<8x1x1xf32>
      tpu.vector_store %arg9[%c0_61, %c0_62, %c0_63], %60 {strides = array<i32>} : memref<8x1x1xf32, #tpu.memory_space<vmem>>, vector<8x1x1xf32>,
      %cst_64 = arith.constant 0.000000e+00 : f32
      %62 = vector.broadcast %cst_64 : f32 to vector<8x1x1xf32>
      %c0_65 = arith.constant 0 : index
      %c0_66 = arith.constant 0 : index
      %c0_67 = arith.constant 0 : index
      %63 = vector.load %arg10[%c0_65, %c0_66, %c0_67] : memref<8x1x1xf32, #tpu.memory_space<vmem>>, vector<8x1x1xf32>
      tpu.vector_store %arg10[%c0_65, %c0_66, %c0_67], %62 {strides = array<i32>} : memref<8x1x1xf32, #tpu.memory_space<vmem>>, vector<8x1x1xf32>,
      %cst_68 = arith.constant 0.000000e+00 : f32
      %64 = vector.broadcast %cst_68 : f32 to vector<8x1x128xf32>
      %c0_69 = arith.constant 0 : index
      %c0_70 = arith.constant 0 : index
      %c0_71 = arith.constant 0 : index
      %65 = vector.load %arg11[%c0_69, %c0_70, %c0_71] : memref<8x1x128xf32, #tpu.memory_space<vmem>>, vector<8x1x128xf32>
      tpu.vector_store %arg11[%c0_69, %c0_70, %c0_71], %64 {strides = array<i32>} : memref<8x1x128xf32, #tpu.memory_space<vmem>>, vector<8x1x128xf32>,
    } else {
    }
    %c0 = arith.constant 0 : index
    %c0_1 = arith.constant 0 : index
    %c0_2 = arith.constant 0 : index
    %3 = vector.load %arg8[%c0, %c0_1, %c0_2] : memref<8x1x128xf32, #tpu.memory_space<vmem>>, vector<8x1x128xf32>
    %c0_3 = arith.constant 0 : index
    %c0_4 = arith.constant 0 : index
    %c0_5 = arith.constant 0 : index
    %4 = vector.load %arg3[%c0_3, %c0_4, %c0_5] : memref<8x256x128xf32, #tpu.memory_space<vmem>>, vector<8x128x128xf32>
    "tpu.trace_start"() <{level = 10 : i32, message = "bqd,bkd->bqk"}> : () -> ()
    %cst = arith.constant dense<0.000000e+00> : vector<8x1x128xf32>
    %5 = tpu.matmul %3, %4, %cst {dimension_numbers = #tpu.dot_dimension_numbers<[2], [2], [1], [1], [0, 0, 0, 1, 1, 1], [0], [0]>} : vector<8x1x128xf32>, vector<8x128x128xf32>, vector<8x1x128xf32> -> vector<8x1x128xf32>
    "tpu.trace_stop"() : () -> ()
    %c0_6 = arith.constant 0 : index
    %c0_7 = arith.constant 0 : index
    %c0_8 = arith.constant 0 : index
    %6 = vector.load %arg9[%c0_6, %c0_7, %c0_8] : memref<8x1x1xf32, #tpu.memory_space<vmem>>, vector<8x1x1xf32>
    %cst_9 = arith.constant dense<0xFF800000> : vector<8x1xf32>
    %7 = vector.multi_reduction <maximumf>, %5, %cst_9 [2] : vector<8x1x128xf32> to vector<8x1xf32>
    %8 = vector.shape_cast %7 : vector<8x1xf32> to vector<8x1x1xf32>
    %9 = arith.maximumf %6, %8 : vector<8x1x1xf32>
    %10 = arith.subf %6, %9 : vector<8x1x1xf32>
    %11 = math.exp %10 : vector<8x1x1xf32>
    %12 = vector.broadcast %9 : vector<8x1x1xf32> to vector<8x1x128xf32>
    %13 = arith.subf %5, %12 : vector<8x1x128xf32>
    %14 = math.exp %13 : vector<8x1x128xf32>
    %c0_10 = arith.constant 0 : index
    %c0_11 = arith.constant 0 : index
    %c0_12 = arith.constant 0 : index
    %15 = vector.load %arg10[%c0_10, %c0_11, %c0_12] : memref<8x1x1xf32, #tpu.memory_space<vmem>>, vector<8x1x1xf32>
    %16 = arith.mulf %11, %15 : vector<8x1x1xf32>
    %cst_13 = arith.constant dense<0.000000e+00> : vector<8x1xf32>
    %17 = vector.multi_reduction <add>, %14, %cst_13 [2] : vector<8x1x128xf32> to vector<8x1xf32>
    %18 = vector.shape_cast %17 : vector<8x1xf32> to vector<8x1x1xf32>
    %19 = arith.addf %16, %18 : vector<8x1x1xf32>
    %c0_14 = arith.constant 0 : index
    %c0_15 = arith.constant 0 : index
    %c0_16 = arith.constant 0 : index
    %20 = vector.load %arg10[%c0_14, %c0_15, %c0_16] : memref<8x1x1xf32, #tpu.memory_space<vmem>>, vector<8x1x1xf32>
    tpu.vector_store %arg10[%c0_14, %c0_15, %c0_16], %19 {strides = array<i32>} : memref<8x1x1xf32, #tpu.memory_space<vmem>>, vector<8x1x1xf32>,
    %c0_17 = arith.constant 0 : index
    %c0_18 = arith.constant 0 : index
    %c0_19 = arith.constant 0 : index
    %21 = vector.load %arg11[%c0_17, %c0_18, %c0_19] : memref<8x1x128xf32, #tpu.memory_space<vmem>>, vector<8x1x128xf32>
    %22 = vector.broadcast %11 : vector<8x1x1xf32> to vector<8x1x128xf32>
    %23 = arith.mulf %22, %21 : vector<8x1x128xf32>
    "tpu.trace_start"() <{level = 10 : i32, message = "bqk,bkd->bqd"}> : () -> ()
    %cst_20 = arith.constant dense<0.000000e+00> : vector<8x1x128xf32>
    %24 = tpu.matmul %14, %4, %cst_20 {dimension_numbers = #tpu.dot_dimension_numbers<[2], [1], [1], [2], [0, 0, 0, 1, 1, 2], [0], [0]>} : vector<8x1x128xf32>, vector<8x128x128xf32>, vector<8x1x128xf32> -> vector<8x1x128xf32>
    "tpu.trace_stop"() : () -> ()
    %25 = arith.addf %23, %24 : vector<8x1x128xf32>
    %c0_21 = arith.constant 0 : index
    %c0_22 = arith.constant 0 : index
    %c0_23 = arith.constant 0 : index
    %26 = vector.load %arg11[%c0_21, %c0_22, %c0_23] : memref<8x1x128xf32, #tpu.memory_space<vmem>>, vector<8x1x128xf32>
    tpu.vector_store %arg11[%c0_21, %c0_22, %c0_23], %25 {strides = array<i32>} : memref<8x1x128xf32, #tpu.memory_space<vmem>>, vector<8x1x128xf32>,
    %c0_24 = arith.constant 0 : index
    %c0_25 = arith.constant 0 : index
    %c0_26 = arith.constant 0 : index
    %27 = vector.load %arg9[%c0_24, %c0_25, %c0_26] : memref<8x1x1xf32, #tpu.memory_space<vmem>>, vector<8x1x1xf32>
    tpu.vector_store %arg9[%c0_24, %c0_25, %c0_26], %9 {strides = array<i32>} : memref<8x1x1xf32, #tpu.memory_space<vmem>>, vector<8x1x1xf32>,
    %c0_27 = arith.constant 0 : index
    %c128 = arith.constant 128 : index
    %c0_28 = arith.constant 0 : index
    %28 = vector.load %arg3[%c0_27, %c128, %c0_28] : memref<8x256x128xf32, #tpu.memory_space<vmem>>, vector<8x128x128xf32>
    "tpu.trace_start"() <{level = 10 : i32, message = "bqd,bkd->bqk"}> : () -> ()
    %cst_29 = arith.constant dense<0.000000e+00> : vector<8x1x128xf32>
    %29 = tpu.matmul %3, %28, %cst_29 {dimension_numbers = #tpu.dot_dimension_numbers<[2], [2], [1], [1], [0, 0, 0, 1, 1, 1], [0], [0]>} : vector<8x1x128xf32>, vector<8x128x128xf32>, vector<8x1x128xf32> -> vector<8x1x128xf32>
    "tpu.trace_stop"() : () -> ()
    %c0_30 = arith.constant 0 : index
    %c0_31 = arith.constant 0 : index
    %c0_32 = arith.constant 0 : index
    %30 = vector.load %arg9[%c0_30, %c0_31, %c0_32] : memref<8x1x1xf32, #tpu.memory_space<vmem>>, vector<8x1x1xf32>
    %cst_33 = arith.constant dense<0xFF800000> : vector<8x1xf32>
    %31 = vector.multi_reduction <maximumf>, %29, %cst_33 [2] : vector<8x1x128xf32> to vector<8x1xf32>
    %32 = vector.shape_cast %31 : vector<8x1xf32> to vector<8x1x1xf32>
    %33 = arith.maximumf %30, %32 : vector<8x1x1xf32>
    %34 = arith.subf %30, %33 : vector<8x1x1xf32>
    %35 = math.exp %34 : vector<8x1x1xf32>
    %36 = vector.broadcast %33 : vector<8x1x1xf32> to vector<8x1x128xf32>
    %37 = arith.subf %29, %36 : vector<8x1x128xf32>
    %38 = math.exp %37 : vector<8x1x128xf32>
    %c0_34 = arith.constant 0 : index
    %c0_35 = arith.constant 0 : index
    %c0_36 = arith.constant 0 : index
    %39 = vector.load %arg10[%c0_34, %c0_35, %c0_36] : memref<8x1x1xf32, #tpu.memory_space<vmem>>, vector<8x1x1xf32>
    %40 = arith.mulf %35, %39 : vector<8x1x1xf32>
    %cst_37 = arith.constant dense<0.000000e+00> : vector<8x1xf32>
    %41 = vector.multi_reduction <add>, %38, %cst_37 [2] : vector<8x1x128xf32> to vector<8x1xf32>
    %42 = vector.shape_cast %41 : vector<8x1xf32> to vector<8x1x1xf32>
    %43 = arith.addf %40, %42 : vector<8x1x1xf32>
    %c0_38 = arith.constant 0 : index
    %c0_39 = arith.constant 0 : index
    %c0_40 = arith.constant 0 : index
    %44 = vector.load %arg10[%c0_38, %c0_39, %c0_40] : memref<8x1x1xf32, #tpu.memory_space<vmem>>, vector<8x1x1xf32>
    tpu.vector_store %arg10[%c0_38, %c0_39, %c0_40], %43 {strides = array<i32>} : memref<8x1x1xf32, #tpu.memory_space<vmem>>, vector<8x1x1xf32>,
    %c0_41 = arith.constant 0 : index
    %c0_42 = arith.constant 0 : index
    %c0_43 = arith.constant 0 : index
    %45 = vector.load %arg11[%c0_41, %c0_42, %c0_43] : memref<8x1x128xf32, #tpu.memory_space<vmem>>, vector<8x1x128xf32>
    %46 = vector.broadcast %35 : vector<8x1x1xf32> to vector<8x1x128xf32>
    %47 = arith.mulf %46, %45 : vector<8x1x128xf32>
    "tpu.trace_start"() <{level = 10 : i32, message = "bqk,bkd->bqd"}> : () -> ()
    %cst_44 = arith.constant dense<0.000000e+00> : vector<8x1x128xf32>
    %48 = tpu.matmul %38, %28, %cst_44 {dimension_numbers = #tpu.dot_dimension_numbers<[2], [1], [1], [2], [0, 0, 0, 1, 1, 2], [0], [0]>} : vector<8x1x128xf32>, vector<8x128x128xf32>, vector<8x1x128xf32> -> vector<8x1x128xf32>
    "tpu.trace_stop"() : () -> ()
    %49 = arith.addf %47, %48 : vector<8x1x128xf32>
    %c0_45 = arith.constant 0 : index
    %c0_46 = arith.constant 0 : index
    %c0_47 = arith.constant 0 : index
    %50 = vector.load %arg11[%c0_45, %c0_46, %c0_47] : memref<8x1x128xf32, #tpu.memory_space<vmem>>, vector<8x1x128xf32>
    tpu.vector_store %arg11[%c0_45, %c0_46, %c0_47], %49 {strides = array<i32>} : memref<8x1x128xf32, #tpu.memory_space<vmem>>, vector<8x1x128xf32>,
    %c0_48 = arith.constant 0 : index
    %c0_49 = arith.constant 0 : index
    %c0_50 = arith.constant 0 : index
    %51 = vector.load %arg9[%c0_48, %c0_49, %c0_50] : memref<8x1x1xf32, #tpu.memory_space<vmem>>, vector<8x1x1xf32>
    tpu.vector_store %arg9[%c0_48, %c0_49, %c0_50], %33 {strides = array<i32>} : memref<8x1x1xf32, #tpu.memory_space<vmem>>, vector<8x1x1xf32>,
    %c1_i32 = arith.constant 1 : i32
    %52 = arith.cmpi eq, %arg1, %c1_i32 : i32
    %53 = arith.extui %52 : i1 to i32
    %c0_i32_51 = arith.constant 0 : i32
    %54 = arith.cmpi ne, %53, %c0_i32_51 : i32
    scf.if %54 {
      %c0_52 = arith.constant 0 : index
      %c0_53 = arith.constant 0 : index
      %55 = vector.load %arg2[%c0_52, %c0_53] : memref<8x128xf32, #tpu.memory_space<vmem>>, vector<8x128xf32>
      %c0_54 = arith.constant 0 : index
      %c0_55 = arith.constant 0 : index
      %c0_56 = arith.constant 0 : index
      %56 = vector.load %arg11[%c0_54, %c0_55, %c0_56] : memref<8x1x128xf32, #tpu.memory_space<vmem>>, vector<8x1x128xf32>
      %c0_57 = arith.constant 0 : index
      %c0_58 = arith.constant 0 : index
      %c0_59 = arith.constant 0 : index
      %57 = vector.load %arg10[%c0_57, %c0_58, %c0_59] : memref<8x1x1xf32, #tpu.memory_space<vmem>>, vector<8x1x1xf32>
      %58 = vector.broadcast %57 : vector<8x1x1xf32> to vector<8x1x128xf32>
      %59 = arith.divf %56, %58 : vector<8x1x128xf32>
      %60 = vector.shape_cast %59 : vector<8x1x128xf32> to vector<8x128xf32>
      %c0_60 = arith.constant 0 : index
      %c0_61 = arith.constant 0 : index
      %61 = vector.load %arg5[%c0_60, %c0_61] : memref<128x128xf32, #tpu.memory_space<vmem>>, vector<128x128xf32>
      %cst_62 = arith.constant dense<0.000000e+00> : vector<8x128xf32>
      %62 = tpu.matmul %60, %61, %cst_62 {dimension_numbers = #tpu.dot_dimension_numbers<[1], [0], [0], [1], [0, 0, 1, 1], [], []>} : vector<8x128xf32>, vector<128x128xf32>, vector<8x128xf32> -> vector<8x128xf32>
      %c0_63 = arith.constant 0 : index
      %c0_64 = arith.constant 0 : index
      %63 = vector.load %arg6[%c0_63, %c0_64] : memref<128x128xf32, #tpu.memory_space<vmem>>, vector<128x128xf32>
      %cst_65 = arith.constant dense<0.000000e+00> : vector<8x128xf32>
      %64 = tpu.matmul %55, %63, %cst_65 {dimension_numbers = #tpu.dot_dimension_numbers<[1], [0], [0], [1], [0, 0, 1, 1], [], []>} : vector<8x128xf32>, vector<128x128xf32>, vector<8x128xf32> -> vector<8x128xf32>
      %65 = arith.addf %62, %64 : vector<8x128xf32>
      %66 = math.tanh %65 : vector<8x128xf32>
      %c0_66 = arith.constant 0 : index
      %c0_67 = arith.constant 0 : index
      %67 = vector.load %arg7[%c0_66, %c0_67] : memref<8x128xf32, #tpu.memory_space<vmem>>, vector<8x128xf32>
      tpu.vector_store %arg7[%c0_66, %c0_67], %66 {strides = array<i32>} : memref<8x128xf32, #tpu.memory_space<vmem>>, vector<8x128xf32>,
    } else {
    }
    return
  }
  func.func @transform_0(%arg0: i32, %arg1: i32) -> (i32, i32) {
    %c0_i32 = arith.constant 0 : i32
    %c0_i32_0 = arith.constant 0 : i32
    return %arg0, %c0_i32 : i32, i32
  }
  func.func @transform_1(%arg0: i32, %arg1: i32) -> (i32, i32, i32) {
    %c0_i32 = arith.constant 0 : i32
    %c0_i32_0 = arith.constant 0 : i32
    return %arg0, %arg1, %c0_i32 : i32, i32, i32
  }
  func.func @transform_2(%arg0: i32, %arg1: i32) -> (i32, i32) {
    %c0_i32 = arith.constant 0 : i32
    %c0_i32_0 = arith.constant 0 : i32
    %c0_i32_1 = arith.constant 0 : i32
    return %c0_i32, %c0_i32_0 : i32, i32
  }
  func.func @transform_3(%arg0: i32, %arg1: i32) -> (i32, i32) {
    %c0_i32 = arith.constant 0 : i32
    %c0_i32_0 = arith.constant 0 : i32
    %c0_i32_1 = arith.constant 0 : i32
    return %c0_i32, %c0_i32_0 : i32, i32
  }
  func.func @transform_4(%arg0: i32, %arg1: i32) -> (i32, i32) {
    %c0_i32 = arith.constant 0 : i32
    %c0_i32_0 = arith.constant 0 : i32
    %c0_i32_1 = arith.constant 0 : i32
    return %c0_i32, %c0_i32_0 : i32, i32
  }
  func.func @transform_5(%arg0: i32, %arg1: i32) -> (i32, i32) {
    %c0_i32 = arith.constant 0 : i32
    %c0_i32_0 = arith.constant 0 : i32
    return %arg0, %c0_i32 : i32, i32
  }
}

</mosaic_0001>

<bundles_post_ra>
// kernel: tpu_custom_call.1
= control target key start
LH: loop header
LB: loop body
LE: loop exit
PB: predicated region body
PF: predicated region fallthrough
CT: control target
= control target key end

     0   :  { %s9334_s0 = inlined_call_operand.hbm [shape: f32[16,128], index: 0, kind: input, shape index: {}]   ;;  %s9335_s1 = inlined_call_operand.hbm [shape: f32[16,512,128], index: 1, kind: input, shape index: {}]   ;;  %s9336_s2 = inlined_call_operand.hbm [shape: f32[128,128], index: 2, kind: input, shape index: {}]   ;;  %s9337_s3 = inlined_call_operand.hbm [shape: f32[128,128], index: 3, kind: input, shape index: {}]   ;;  %s9338_s4 = inlined_call_operand.hbm [shape: f32[128,128], index: 4, kind: input, shape index: {}]   ;;  %s9339_s5 = inlined_call_operand.hbm [shape: f32[16,128], index: 5, kind: output, shape index: {}]  }
   0x1   :  { %9521 = sst [smem:[#allocation138_spill]] %s9336_s2 }
   0x2   :  { %9522 = sst [smem:[#allocation139_spill]] %s9337_s3 }
   0x3   :  { %9523 = sst [smem:[#allocation140_spill]] %s9339_s5 }
   0x4   :  { %10 = vsyncpa [#allocation7], 0 }
   0x5   :  { %12 = vsyncpa [#allocation7 + $0x1], 0 }
   0x6   :  { %13 = vsyncpa [#allocation10], 0 }
   0x7   :  { %15 = vsyncpa [#allocation10 + $0x1], 0 }
   0x8   :  { %16 = vsyncpa [#allocation13], 0 }
   0x9   :  { %17 = vsyncpa [#allocation8], 0 }
   0xa   :  { %19 = vsyncpa [#allocation8 + $0x1], 0  ;;  %s6597_s18 = smov 0   ;;  %s6599_s19 = smov 0  }
   0xb   :  { %s6601_s20 = smov 0   ;;  %s6603_s21 = smov 0  }
   0xc   :  { %s6605_s22 = smov 0   ;;  %s6607_s23 = smov 0  }
   0xd   :  { %s6609_s24 = smov 0   ;;  %s6611_s25 = smov 0  }
   0xe   :  { %s6613_s26 = smov 0   ;;  %s6615_s27 = smov 0  }
   0xf   :  { %s6617_s28 = smov 0  }
  0x10 LB: > { %9524 = sst [smem:[#allocation24_spill]] %s6513_s21  ;;  %s6653_s29 = sadd.s32 4294967295, %s6541_s28   ;;  %s6541_s28 = sphi %s6617_s28, %s25_s28   ;;  %s6537_s27 = sphi %s6615_s27, %s9925_s27   ;;  %s6533_s26 = sphi %s6613_s26, %s9924_s26   ;;  %s6529_s25 = sphi %s6611_s25, %s9923_s25   ;;  %s6525_s24 = sphi %s6609_s24, %s9922_s24   ;;  %s6521_s23 = sphi %s6607_s23, %s9921_s23   ;;  %s6517_s22 = sphi %s6605_s22, %s9920_s22   ;;  %s6513_s21 = sphi %s6603_s21, %s9919_s21   ;;  %s6509_s20 = sphi %s6601_s20, %s9918_s20   ;;  %s6505_s19 = sphi %s6599_s19, %s9917_s19   ;;  %s6501_s18 = sphi %s6597_s18, %s9916_s18  }
  0x11   : > { %9525 = sst [smem:[#allocation25_spill]] %s6525_s24  ;;  %s4202_s30 = sadd.s32 4294967294, %s6541_s28  }
  0x12   : > { %9526 = sst [smem:[#allocation26_spill]] %s6529_s25  ;;  %s34_s6 = sadd.s32 1, %s6533_s26 }
  0x13   : > { %s37_s7 = sadd.s32 1, %s6537_s27  ;;  %p35_p0 = scmp.ge.s32.totalorder %s34_s6, 2 }
  0x14   : > { %s44_s8 = sadd.s32 1, %s6521_s23  ;;  %p51_p1 = scmp.ne.s32.totalorder %s6521_s23, %s6517_s22 }
  0x15   : > { %p52_p2 = scmp.eq.s32.totalorder %s6541_s28, 0  ;;  %s9927_s6 = smov (%p35_p0, %s34_s6), 0 }
  0x16   : > { %9527 = sst [smem:[#allocation27_spill]] %s9927_s6  ;;  %s9929_s7 = smov (!%p35_p0, %s37_s7), %s6537_s27 }
  0x17   : > { %p6670_p3 = por %p52_p2, %p51_p1  ;;  %p9341_p4 = scmp.ne.s32.totalorder %s6517_s22, %s6513_s21 }
  0x18   : > { %p39_p5 = scmp.ge.s32.totalorder %s9929_s7, 2  ;;  %p58_p6 = scmp.eq.s32.totalorder %s6653_s29, 0 }
  0x19   : > { %s68_s10 = ssub.s32 %s6533_s26, %s9927_s6  ;;  %s72_s11 = sadd.s32 1, %s6509_s20 }
  0x1a   : > { %s9931_s7 = smov (%p39_p5, %s9929_s7), 0  ;;  %p6687_p7 = por %p58_p6, %p9341_p4 }
  0x1b   : > { %9529 = sst [smem:[#allocation28_spill]] %s9931_s7  ;;  %p79_p8 = scmp.ne.s32.totalorder %s6509_s20, %s6505_s19 }
  0x1c   : > { %s9530_s12 = scalar_select %p6687_p7, 1, 0 }
  0x1d   : > { %s41_s13 = ssub.s32 %s6537_s27, %s9931_s7  ;;  %p85_p9 = scmp.ne.s32.totalorder %s6505_s19, %s6501_s18 }
  0x1e   : > { %p42_p10 = scmp.eq.s32.totalorder %s41_s13, 0  ;;  %s69_s14 = sor.u32 %s68_s10, %s41_s13 }
  0x1f   : > { %p70_p11 = scmp.eq.s32.totalorder %s69_s14, 0  ;;  %p6699_p12 = por %p79_p8, %p52_p2 }
  0x20   : > { %s6704_s16 = scalar_select %p42_p10, %s6521_s23, %s44_s8  }
  0x21   : > { %s9531_s15 = scalar_select %p6699_p12, 1, 0 }
  0x22   : > { %9532 = sst [smem:[#allocation29_spill]] %s6704_s16  ;;  %p6711_p13 = por %p85_p9, %p58_p6 }
  0x23   : > { %s6707_s17 = scalar_select %p70_p11, %s6509_s20, %s72_s11  }
  0x24   : > { %p172_p0 = scmp.eq.s32.totalorder %s6653_s29, 3  ;;  %p178_p5 = scmp.eq.s32.totalorder %s4202_s30, 3 }
  0x25   : > { %9533 = sst [smem:[#allocation30_spill]] %s6707_s17  ;;  %p4203_p4 = scmp.ge.s32.totalorder %s6541_s28, 1 }
  0x26   : > { %p6720_p7 = por %p172_p0, %p51_p1  ;;  %p185_p2 = scmp.lt.s32.totalorder %s6541_s28, 5 }
  0x27   : > { %p9537_p8 = scmp.ne.s32.totalorder %s6517_s22, %s6513_s21  ;;  %s6543_s30 = smov [#allocation12]  }
  0x28   : > { %s9535_s18 = scalar_select %p6720_p7, 1, 0 }
  0x29   : > { %p6728_p12 = por %p178_p5, %p9537_p8  ;;  %p6732_p10 = pnand %p4203_p4, %p185_p2 }
  0x2a   : > { %9536 = sst [smem:[#allocation31_spill]] %s9535_s18  ;;  %s210_s11 = sshll.u32 %s6543_s30, 4  ;;  %s211_s11 = int_to_ptr.vmem [resolvable:$true] %s210_s11 }
  0x2b   : > { %s9538_s8 = scalar_select %p6728_p12, 1, 0 }
  0x2c   : > { %p6080_p9 = pneg %p6732_p10  ;;  %s6316_s14 = scalar_lea.vmem %s211_s11, 2048 }
  0x2d   : > { %9539 = sst [smem:[#allocation32_spill]] %s9538_s8  ;;  %p6317_p4 = scmp.ne.s32.totalorder %s211_s11, %s6316_s14 }
  0x2e   : > { %p6740_p1 = pnand %p6080_p9, %p58_p6  ;;  %p6324_p2 = scmp.lt.s32.totalorder %s211_s11, %s211_s11 }
  0x2f   : > { %p6325_p8 = scmp.lt.s32.totalorder %s6316_s14, %s6316_s14 }
  0x30   : > { %p6307_p11 = pneg %p6740_p1 }
  0x31   : > { %p6326_p12 = por %p6325_p8, %p6324_p2 }
  0x32   : > { %p6319_p0 = pnand %p6317_p4, %p6307_p11 }
  0x34   : > { %p6320_p5 = pneg %p6319_p0 }
  0x36   : > { %p6327_p7 = pnand %p6326_p12, %p6320_p5 }
  0x38   : > { %6330 = shalt.err (!%p6327_p7)
}
  0x39   : > { %s6544_s30 = smov 128   ;;  %s6545_s7 = smov 8  }
  0x3a   : > { %s9542_s3 = sld [smem:[#allocation139_spill]]  ;;  %s6546_s8 = smov [#allocation11]  }
  0x3b   : > { %s197_s21 = sshll.u32 %s6546_s8, 4  ;;  %s6547_s5 = smov [#allocation14]   ;;  %s198_s21 = int_to_ptr.vmem [resolvable:$true] %s197_s21 }
  0x3c   : > { %s223_s14 = sshll.u32 %s6547_s5, 4  ;;  %s6342_s18 = scalar_lea.vmem %s198_s21, 2048  ;;  %s224_s14 = int_to_ptr.vmem [resolvable:$true] %s223_s14 }
  0x3d   : > { %p6343_p12 = scmp.ne.s32.totalorder %s198_s21, %s6342_s18  ;;  %p6350_p4 = scmp.lt.s32.totalorder %s198_s21, %s198_s21 }
  0x3e   : > { %p6351_p0 = scmp.lt.s32.totalorder %s6342_s18, %s6342_s18 }
  0x3f   : > { %p6345_p7 = pnand %p6343_p12, %p6307_p11 }
  0x40   : > { %6086 = dma.hbm_to_vmem [thread:$0]  (!%p6740_p1), %s9542_s3, 2048, %s211_s11, [#allocation13], %s6544_s30, %s6544_s30, %s6545_s7  }
  0x41   : > { %p6346_p9 = pneg %p6345_p7  ;;  %p6352_p5 = por %p6351_p0, %p6350_p4 }
  0x43   : > { %p6353_p2 = pnand %p6352_p5, %p6346_p9 }
  0x45   : > { %6356 = shalt.err (!%p6353_p2)
}
  0x46   : > { %s9543_s2 = sld [smem:[#allocation138_spill]]  ;;  %s6368_s5 = scalar_lea.vmem %s224_s14, 2048 }
  0x47   : > { %p6369_p8 = scmp.ne.s32.totalorder %s224_s14, %s6368_s5  ;;  %p6376_p4 = scmp.lt.s32.totalorder %s224_s14, %s224_s14 }
  0x48   : > { %p6377_p9 = scmp.lt.s32.totalorder %s6368_s5, %s6368_s5 }
  0x49   : > { %p6371_p12 = pnand %p6369_p8, %p6307_p11 }
  0x4a   : > { %p6378_p0 = por %p6377_p9, %p6376_p4 }
  0x4b   : > { %p6372_p7 = pneg %p6371_p12 }
  0x4c   : > { %6083 = dma.hbm_to_vmem [thread:$0]  (!%p6740_p1), %s9543_s2, 2048, %s198_s21, [#allocation10], %s6544_s30, %s6544_s30, %s6545_s7  }
  0x4d   : > { %p6379_p5 = pnand %p6378_p0, %p6372_p7 }
  0x4f   : > { %6382 = shalt.err (!%p6379_p5)
}
  0x50   : > { %6089 = dma.hbm_to_vmem [thread:$0]  (!%p6740_p1), %s9338_s4, 2048, %s224_s14, [#allocation13], %s6544_s30, %s6544_s30, %s6545_s7  }
  0x51   : > { %p4207_p2 = scmp.ge.s32.totalorder %s6541_s28, 4 }
  0x52   : > { %s237_s21 = sand.u32 (!%p4207_p2), 1, %s6521_s23   ;;  %s4209_s11 = sshll.u32 (!%p4207_p2), %s6537_s27, 7 }
  0x53   : > { %233 = sbr.rel (%p4207_p2) target bundleno = 115 (0x73), region = 28  ;;  %s4208_s16 = sshll.u32 (!%p4207_p2), %s237_s21, 3 }
  0x54   : > { %s246_s13 = scalar_lea.hbm (!%p4207_p2), %s9334_s0, %s4209_s11  ;;  %s241_s2 = scalar_lea.vmem (!%p4207_p2), [#allocation6], %s4208_s16 }
  0x55   : > { %s248_s3 = sshll.u32 (!%p4207_p2), %s241_s2, 4  ;;  %s238_s25 = scalar_lea.sflag (!%p4207_p2), [#allocation7], %s237_s21  ;;  %s249_s3 = int_to_ptr.vmem [resolvable:$true] %s248_s3 }
  0x56   : > { %s6395_s24 = scalar_lea.vmem (!%p4207_p2), %s249_s3, 128  ;;  %s6548_s7 = smov (!%p4207_p2), [#allocation6]  }
  0x57   : > { %p6396_p11 = scmp.ne.s32.totalorder (!%p4207_p2), %s249_s3, %s6395_s24  ;;  %s6399_s30 = sshll.u32 (!%p4207_p2), %s6548_s7, 4  ;;  %s6400_s30 = int_to_ptr.vmem [resolvable:$false] %s6399_s30 }
  0x58   : > { %s6401_s14 = scalar_lea.vmem %s6400_s30, 256  ;;  %p6402_p12 = scmp.lt.s32.totalorder %s249_s3, %s6400_s30 }
  0x59   : > { %p6397_p1 = pnand %p6396_p11, %p6670_p3  ;;  %p6403_p7 = scmp.lt.s32.totalorder %s6401_s14, %s6395_s24 }
  0x5b   : > { %p6398_p8 = pneg %p6397_p1  ;;  %p6404_p4 = por %p6403_p7, %p6402_p12 }
  0x5d   : > { %p6405_p9 = pnand %p6404_p4, %p6398_p8 }
  0x5f   : > { %6408 = shalt.err (!%p6405_p9)
}
  0x60   : > { %6061 = dma.hbm_to_vmem [thread:$0]  (%p6670_p3), %s246_s13, 128, %s249_s3, %s238_s25  }
  0x61   : > { %s257_s2 = sand.u32 1, %s6509_s20   ;;  %s255_s18 = sand.u32 1, %s6541_s28  }
  0x62   : > { %s4210_s8 = sshll.u32 %s257_s2, 11  ;;  %s4212_s21 = sshll.u32 %s6533_s26, 5 }
  0x63   : > { %s4234_s24 = sshll.u32 %s6537_s27, 9  ;;  %s259_s11 = scalar_lea.vmem [#allocation9], %s4210_s8 }
  0x64   : > { %s281_s16 = sshll.u32 %s259_s11, 4  ;;  %s266_s17 = sadd.s32 %s4234_s24, %s4212_s21  ;;  %s282_s16 = int_to_ptr.vmem [resolvable:$true] %s281_s16 }
  0x65   : > { %s6549_s3 = smov 8192   ;;  %p9544_p3 = scmp.ne.s32.totalorder %s9531_s15, 0 }
  0x66   : > { %s4214_s5 = sshll.u32 %s266_s17, 7  ;;  %s6550_s13 = smov 4096  }
  0x67   : > { %6063 = sst [smem:[#allocation17]] (%p9544_p3), %s6549_s3  ;;  %s6551_s7 = smov 32  }
  0x68   : > { %s6062_s25 = scalar_select %p9544_p3, [#allocation0], [#allocation18] }
  0x69   : > { %6064 = sst [smem:[#allocation17 + $0x1]] (%p9544_p3), %s6550_s13  ;;  %s6552_s30 = smov 128  }
  0x6a   : > { %s273_s9 = sld [smem:[%s6062_s25]]   ;;  %s268_s8 = scalar_lea.hbm %s9335_s1, %s4214_s5 }
  0x6b   : > { %6065 = sst [smem:[#allocation17 + $0x2]] (%p9544_p3), %s6551_s7  ;;  %s6553_s21 = smov 8  }
  0x6c   : > { %6066 = sst [smem:[#allocation17 + $0x3]] (%p9544_p3), %s6552_s30  ;;  %s256_s17 = scalar_lea.sflag [#allocation10], %s255_s18 }
  0x6d   : > { %6067 = sst [smem:[#allocation17 + $0x4]] (%p9544_p3), %s6552_s30  ;;  %s6554_s3 = smov 131072  }
  0x6e   : > { %6068 = sst [smem:[#allocation17 + $0x5]] (%p9544_p3), %s6553_s21 }
  0x70   : > { %s4215_s24 = sshll.u32 %s273_s9, 26 }
  0x71   : > { %s4216_s11 = sadd.s32 134217728, %s4215_s24 }
  0x72   : > { %6069 = dma.general (%p9544_p3), %s268_s8, 32768, %s282_s16, %s256_s17, %s6554_s3, [#allocation17], %s4216_s11, 0  }
  0x73 PF: > { %306 = sbr.rel (%p6732_p10) target bundleno = 2455 (0x997), region = 40 }
  0x78   : > { %s6815_s25 = sand.u32 1, %s6517_s22   ;;  %p9545_p0 = scmp.ne.s32.totalorder %s9530_s12, 0 }
  0x79   : > { %s4218_s5 = sshll.u32 %s6815_s25, 3  ;;  %s309_s13 = scalar_lea.sflag [#allocation7], %s6815_s25 }
  0x7a   : > { %s6819_s7 = scalar_lea.vmem [#allocation6], %s4218_s5 }
  0x7b   : > { %6480 = dma.done.wait (%p9545_p0), %s309_s13, 128  }
  0x7c   : > { %6482 = vsyncadd (%p9545_p0), %s309_s13, 4294967168  ;;  %s317_s15 = sand.u32 1, %s6653_s29   ;;  %s319_s10 = sand.u32 1, %s6505_s19  }
  0x7d   : > { %s4219_s18 = sshll.u32 %s319_s10, 11  ;;  %s318_s16 = scalar_lea.sflag [#allocation10], %s317_s15 }
  0x7e   : > { %s6827_s9 = scalar_lea.vmem [#allocation9], %s4219_s18 }
  0x7f   : > { %6484 = dma.done.wait (%p6711_p13), %s318_s16, 32768  }
  0x80   : > { %6486 = vsyncadd (%p6711_p13), %s318_s16, 4294934528 }
  0x81   : > { %6488 = dma.done.wait (%p58_p6), [#allocation10], 2048  }
  0x82   : > { %6490 = vsyncadd (%p58_p6), [#allocation10], 4294965248 }
  0x83   : > { %6492 = dma.done.wait (%p58_p6), [#allocation13], 4096  }
  0x84   : > { %6494 = vsyncadd (%p58_p6), [#allocation13], 4294963200  ;;  %s6841_s12 = scalar_lea.vmem [#allocation15], %s4218_s5  ;;  %s9546_s30 = sld [smem:[#allocation25_spill]] }
  0x8a   : > { %p4224_p10 = scmp.ne.s32.totalorder %s9546_s30, 0 }
  0x8c   : > { %370 = sbr.rel (%p4224_p10) target bundleno = 382 (0x17e), region = 64 }
  0x91   : > { %vm524_vm0 = vcmask 0   ;;  %v387_v0 = vld [vmem:[#allocation11 + $0x78] sm:$0xff]  ;;  %v6555_v1 = vmov 0.0   ;;  %v6556_v2 = vmov -inf   ;;  %v386_v3 = vld [vmem:[#allocation11 + $0x70] sm:$0xff]  ;;  %vm6557_vm1 = vmmov 0  }
  0x92   : > { %4830 = vmatprep.subr.mxu0 %v6555_v1  ;;  %525 = vst.msk [vmem:[#allocation3] sm:$0x1] %vm524_vm0, %v6556_v2  ;;  %526 = vst.msk [vmem:[#allocation3 + $0x1] sm:$0x1] %vm524_vm0, %v6556_v2  ;;  %4862 = vmatprep.mubr.msk.f32.mxu0 %vm6557_vm1, %v6555_v1  ;;  %v385_v4 = vld [vmem:[#allocation11 + $0x68] sm:$0xff]  ;;  %v384_v5 = vld [vmem:[#allocation11 + $0x60] sm:$0xff]  ;;  %v463_v21 = vlaneseq }
  0x93   : > { %527 = vst.msk [vmem:[#allocation3 + $0x2] sm:$0x1] %vm524_vm0, %v6556_v2  ;;  %528 = vst.msk [vmem:[#allocation3 + $0x3] sm:$0x1] %vm524_vm0, %v6556_v2  ;;  %4831 = vmatpush3.msra.mxu0 %v387_v0  ;;  %v383_v6 = vld [vmem:[#allocation11 + $0x58] sm:$0xff]  ;;  %v382_v7 = vld [vmem:[#allocation11 + $0x50] sm:$0xff] }
  0x94   : > { %529 = vst.msk [vmem:[#allocation3 + $0x4] sm:$0x1] %vm524_vm0, %v6556_v2  ;;  %530 = vst.msk [vmem:[#allocation3 + $0x5] sm:$0x1] %vm524_vm0, %v6556_v2  ;;  %4832 = vmatprep.subr.mxu0 %v6555_v1  ;;  %v381_v8 = vld [vmem:[#allocation11 + $0x48] sm:$0xff]  ;;  %v380_v9 = vld [vmem:[#allocation11 + $0x40] sm:$0xff] }
  0x95   : > { %531 = vst.msk [vmem:[#allocation3 + $0x6] sm:$0x1] %vm524_vm0, %v6556_v2  ;;  %532 = vst.msk [vmem:[#allocation3 + $0x7] sm:$0x1] %vm524_vm0, %v6556_v2  ;;  %4833 = vmatpush3.msra.mxu0 %v386_v3  ;;  %v379_v10 = vld [vmem:[#allocation11 + $0x38] sm:$0xff]  ;;  %v378_v11 = vld [vmem:[#allocation11 + $0x30] sm:$0xff] }
  0x96   : > { %533 = vst.msk [vmem:[#allocation4] sm:$0x1] %vm524_vm0, %v6555_v1  ;;  %534 = vst.msk [vmem:[#allocation4 + $0x1] sm:$0x1] %vm524_vm0, %v6555_v1  ;;  %4834 = vmatprep.subr.mxu0 %v6555_v1  ;;  %v377_v12 = vld [vmem:[#allocation11 + $0x28] sm:$0xff]  ;;  %v376_v13 = vld [vmem:[#allocation11 + $0x20] sm:$0xff] }
  0x97   : > { %535 = vst.msk [vmem:[#allocation4 + $0x2] sm:$0x1] %vm524_vm0, %v6555_v1  ;;  %536 = vst.msk [vmem:[#allocation4 + $0x3] sm:$0x1] %vm524_vm0, %v6555_v1  ;;  %4835 = vmatpush3.msra.mxu0 %v385_v4  ;;  %v375_v14 = vld [vmem:[#allocation11 + $0x18] sm:$0xff]  ;;  %v374_v15 = vld [vmem:[#allocation11 + $0x10] sm:$0xff] }
  0x98   : > { %537 = vst.msk [vmem:[#allocation4 + $0x4] sm:$0x1] %vm524_vm0, %v6555_v1  ;;  %538 = vst.msk [vmem:[#allocation4 + $0x5] sm:$0x1] %vm524_vm0, %v6555_v1  ;;  %4836 = vmatprep.subr.mxu0 %v6555_v1  ;;  %v373_v16 = vld [vmem:[#allocation11 + $0x8] sm:$0xff]  ;;  %v372_v17 = vld [vmem:[#allocation11] sm:$0xff] }
  0x99   : > { %539 = vst.msk [vmem:[#allocation4 + $0x6] sm:$0x1] %vm524_vm0, %v6555_v1  ;;  %540 = vst.msk [vmem:[#allocation4 + $0x7] sm:$0x1] %vm524_vm0, %v6555_v1  ;;  %4837 = vmatpush3.msra.mxu0 %v384_v5  ;;  %v371_v18 = vld [vmem:[%s6819_s7] sm:$0xff]  ;;  %v464_v23 = vshrl.u32 %v463_v21, 7 }
  0x9a   : > { %541 = vst [vmem:[#allocation5] sm:$0x1] %v6555_v1  ;;  %542 = vst [vmem:[#allocation5 + $0x1] sm:$0x1] %v6555_v1  ;;  %4838 = vmatprep.subr.mxu0 %v6555_v1  ;;  %v6558_v19 = vmov 1966171168  }
  0x9b   : > { %543 = vst [vmem:[#allocation5 + $0x2] sm:$0x1] %v6555_v1  ;;  %544 = vst [vmem:[#allocation5 + $0x3] sm:$0x1] %v6555_v1  ;;  %4839 = vmatpush3.msra.mxu0 %v383_v6  ;;  %v461_v20 = vunpack.c.l.s4 %v6558_v19 }
  0x9c   : > { %545 = vst [vmem:[#allocation5 + $0x4] sm:$0x1] %v6555_v1  ;;  %546 = vst [vmem:[#allocation5 + $0x5] sm:$0x1] %v6555_v1  ;;  %4840 = vmatprep.subr.mxu0 %v6555_v1 }
  0x9d   : > { %547 = vst [vmem:[#allocation5 + $0x6] sm:$0x1] %v6555_v1  ;;  %548 = vst [vmem:[#allocation5 + $0x7] sm:$0x1] %v6555_v1  ;;  %4841 = vmatpush3.msra.mxu0 %v382_v7  ;;  %v462_v22 = vunpack.c.0.s8 %v461_v20 }
  0x9e   : > { %4842 = vmatprep.subr.mxu0 %v6555_v1 }
  0x9f   : > { %4843 = vmatpush3.msra.mxu0 %v381_v8  ;;  %v465_v24 = vsub.s32 %v462_v22, %v464_v23 }
  0xa0   : > { %4844 = vmatprep.subr.mxu0 %v6555_v1 }
  0xa1   : > { %4845 = vmatpush3.msra.mxu0 %v380_v9 }
  0xa2   : > { %4846 = vmatprep.subr.mxu0 %v6555_v1 }
  0xa3   : > { %4847 = vmatpush3.msra.mxu0 %v379_v10 }
  0xa4   : > { %4848 = vmatprep.subr.mxu0 %v6555_v1 }
  0xa5   : > { %4849 = vmatpush3.msra.mxu0 %v378_v11 }
  0xa6   : > { %4850 = vmatprep.subr.mxu0 %v6555_v1 }
  0xa7   : > { %4851 = vmatpush3.msra.mxu0 %v377_v12 }
  0xa8   : > { %4852 = vmatprep.subr.mxu0 %v6555_v1 }
  0xa9   : > { %4853 = vmatpush3.msra.mxu0 %v376_v13 }
  0xaa   : > { %4854 = vmatprep.subr.mxu0 %v6555_v1 }
  0xab   : > { %4855 = vmatpush3.msra.mxu0 %v375_v14 }
  0xac   : > { %4856 = vmatprep.subr.mxu0 %v6555_v1 }
  0xad   : > { %4857 = vmatpush3.msra.mxu0 %v374_v15 }
  0xae   : > { %4858 = vmatprep.subr.mxu0 %v6555_v1 }
  0xaf   : > { %4859 = vmatpush3.msra.mxu0 %v373_v16 }
  0xb0   : > { %4860 = vmatprep.subr.mxu0 %v6555_v1 }
  0xb1   : > { %4861 = vmatpush3.msra.mxu0 %v372_v17 }
  0xb2   : > { %4863 = vmatmul.mubr.f32.vlgmr.msra.gmra.mxu0 %v371_v18 }
 0x172   : > { %v454_v25 = vpop.f32.mrf.mxu0 }
 0x173   : > { %v459_v26 = vcombine.high %v454_v25, %v454_v25  ;;  %v466_v27 = vrot.slane %v454_v25, %v465_v24 }
 0x174   : > { %v4864_v28 = vpop.f32.mrf.mxu0 }
 0x175   : > { %v473_v29 = vrot.slane %v459_v26, %v465_v24  ;;  %v474_v30 = vcombine.high %v466_v27, %v466_v27  ;;  %v482_v31 = vrot.slane %v466_v27, %v465_v24  ;;  %4225 = vst.sshfl [vmem:[#allocation2] sm:$0x1 pattern:$0x73625140] %v466_v27 }
 0x177   : > { %v475_v32 = vcombine.high %v473_v29, %v473_v29  ;;  %v489_v33 = vrot.slane %v473_v29, %v465_v24  ;;  %v496_v34 = vrot.slane %v474_v30, %v465_v24  ;;  %v504_v35 = vcombine.high %v482_v31, %v482_v31  ;;  %4226 = vst.sshfl [vmem:[#allocation2 + $0x1] sm:$0x1 pattern:$0x73625140] %v474_v30 }
 0x178   : > { %4227 = vst.sshfl [vmem:[#allocation2 + $0x4] sm:$0x1 pattern:$0x73625140] %v473_v29 }
 0x179   : > { %v503_v36 = vrot.slane %v475_v32, %v465_v24  ;;  %v505_v37 = vcombine.high %v489_v33, %v489_v33  ;;  %v506_v38 = vcombine.high %v496_v34, %v496_v34  ;;  %518 = vst [vmem:[#allocation2 + $0x2] sm:$0x1] %v504_v35  ;;  %4228 = vst.sshfl [vmem:[#allocation2 + $0x5] sm:$0x1 pattern:$0x73625140] %v475_v32 }
 0x17b   : > { %v507_v39 = vcombine.high %v503_v36, %v503_v36  ;;  %519 = vst [vmem:[#allocation2 + $0x3] sm:$0x1] %v506_v38  ;;  %522 = vst [vmem:[#allocation2 + $0x6] sm:$0x1] %v505_v37 }
 0x17d   : > { %523 = vst [vmem:[#allocation2 + $0x7] sm:$0x1] %v507_v39 }
 0x17e PF: > { %v6895_v40 = vld [vmem:[%s6827_s9 + $0x78] sm:$0xff]  ;;  %v6559_v42 = vmov 0.0   ;;  %v6907_v43 = vld [vmem:[%s6827_s9 + $0x70] sm:$0xff]  ;;  %vm6560_vm2 = vmmov 0   ;;  %v6921_v45 = vld [vmem:[%s6827_s9 + $0x68] sm:$0xff]  ;;  %vm1253_vm3 = vcmask 1040384  }
 0x17f   : > { %v6898_v41 = vld [vmem:[%s6827_s9 + $0x178] sm:$0xff]  ;;  %4865 = vmatprep.subr.mxu0 %v6559_v42  ;;  %4900 = vmatprep.subr.mxu1 %v6559_v42  ;;  %v6910_v44 = vld [vmem:[%s6827_s9 + $0x170] sm:$0xff]  ;;  %v6924_v46 = vld [vmem:[%s6827_s9 + $0x168] sm:$0xff]  ;;  %vm1454_vm4 = vcmask 0   ;;  %s9902_s29 = sld [smem:[#allocation25_spill]] }
 0x180   : > { %4866 = vmatpush3.xpose.msra.mxu0 %v6895_v40  ;;  %4901 = vmatpush3.xpose.msra.mxu1 %v6898_v41  ;;  %v6931_v47 = vld [vmem:[%s6827_s9 + $0x60] sm:$0xff]  ;;  %v6941_v49 = vld [vmem:[%s6827_s9 + $0x58] sm:$0xff]  ;;  %v6951_v51 = vld [vmem:[%s6827_s9 + $0x50] sm:$0xff] }
 0x181   : > { %4867 = vmatprep.subr.mxu0 %v6559_v42  ;;  %4902 = vmatprep.subr.mxu1 %v6559_v42  ;;  %v6934_v48 = vld [vmem:[%s6827_s9 + $0x160] sm:$0xff]  ;;  %v6944_v50 = vld [vmem:[%s6827_s9 + $0x158] sm:$0xff]  ;;  %v6954_v52 = vld [vmem:[%s6827_s9 + $0x150] sm:$0xff] }
 0x182   : > { %4897 = vmatprep.mubr.msk.f32.mxu0 %vm6560_vm2, %v6559_v42  ;;  %4932 = vmatprep.mubr.msk.f32.mxu1 %vm6560_vm2, %v6559_v42  ;;  %v6961_v53 = vld [vmem:[%s6827_s9 + $0x48] sm:$0xff]  ;;  %v6971_v55 = vld [vmem:[%s6827_s9 + $0x40] sm:$0xff]  ;;  %v6981_v57 = vld [vmem:[%s6827_s9 + $0x38] sm:$0xff] }
 0x183   : > { %v6964_v54 = vld [vmem:[%s6827_s9 + $0x148] sm:$0xff]  ;;  %v6974_v56 = vld [vmem:[%s6827_s9 + $0x140] sm:$0xff]  ;;  %v6984_v58 = vld [vmem:[%s6827_s9 + $0x138] sm:$0xff] }
 0x184   : > { %4868 = vmatpush3.xpose.msra.mxu0 %v6907_v43  ;;  %4903 = vmatpush3.xpose.msra.mxu1 %v6910_v44  ;;  %v6991_v59 = vld [vmem:[%s6827_s9 + $0x30] sm:$0xff]  ;;  %v7001_v61 = vld [vmem:[%s6827_s9 + $0x28] sm:$0xff]  ;;  %v7011_v63 = vld [vmem:[%s6827_s9 + $0x20] sm:$0xff] }
 0x185   : > { %4869 = vmatprep.subr.mxu0 %v6559_v42  ;;  %4904 = vmatprep.subr.mxu1 %v6559_v42  ;;  %v6994_v60 = vld [vmem:[%s6827_s9 + $0x130] sm:$0xff]  ;;  %v7004_v62 = vld [vmem:[%s6827_s9 + $0x128] sm:$0xff]  ;;  %v7014_v0 = vld [vmem:[%s6827_s9 + $0x120] sm:$0xff]  ;;  %p4229_p6 = scmp.ne.s32.totalorder %s9902_s29, 1 }
 0x186   : > { %v7021_v1 = vld [vmem:[%s6827_s9 + $0x18] sm:$0xff]  ;;  %v7031_v3 = vld [vmem:[%s6827_s9 + $0x10] sm:$0xff]  ;;  %v7041_v5 = vld [vmem:[%s6827_s9 + $0x8] sm:$0xff] }
 0x187   : > { %v7024_v2 = vld [vmem:[%s6827_s9 + $0x118] sm:$0xff]  ;;  %v7034_v4 = vld [vmem:[%s6827_s9 + $0x110] sm:$0xff]  ;;  %v7044_v6 = vld [vmem:[%s6827_s9 + $0x108] sm:$0xff] }
 0x188   : > { %4870 = vmatpush3.xpose.msra.mxu0 %v6921_v45  ;;  %4905 = vmatpush3.xpose.msra.mxu1 %v6924_v46  ;;  %v7051_v7 = vld [vmem:[%s6827_s9] sm:$0xff]  ;;  %v549_v9 = vld [vmem:[#allocation2] sm:$0x1]  ;;  %v550_v10 = vld [vmem:[#allocation2 + $0x1] sm:$0x1] }
 0x189   : > { %4871 = vmatprep.subr.mxu0 %v6559_v42  ;;  %4906 = vmatprep.subr.mxu1 %v6559_v42  ;;  %v7054_v8 = vld [vmem:[%s6827_s9 + $0x100] sm:$0xff]  ;;  %v7061_v11 = vld [vmem:[%s6827_s9 + $0x278] sm:$0xff]  ;;  %v7071_v13 = vld [vmem:[%s6827_s9 + $0x270] sm:$0xff] }
 0x18a   : > { %v7064_v12 = vld [vmem:[%s6827_s9 + $0x378] sm:$0xff]  ;;  %v7074_v14 = vld [vmem:[%s6827_s9 + $0x370] sm:$0xff]  ;;  %v7085_v15 = vld [vmem:[%s6827_s9 + $0x268] sm:$0xff] }
 0x18b   : > { %v7088_v16 = vld [vmem:[%s6827_s9 + $0x368] sm:$0xff]  ;;  %v7095_v17 = vld [vmem:[%s6827_s9 + $0x260] sm:$0xff]  ;;  %v7105_v19 = vld [vmem:[%s6827_s9 + $0x258] sm:$0xff] }
 0x18c   : > { %4872 = vmatpush3.xpose.msra.mxu0 %v6931_v47  ;;  %4907 = vmatpush3.xpose.msra.mxu1 %v6934_v48  ;;  %v7098_v18 = vld [vmem:[%s6827_s9 + $0x360] sm:$0xff]  ;;  %v7108_v20 = vld [vmem:[%s6827_s9 + $0x358] sm:$0xff]  ;;  %v7115_v21 = vld [vmem:[%s6827_s9 + $0x250] sm:$0xff] }
 0x18d   : > { %4873 = vmatprep.subr.mxu0 %v6559_v42  ;;  %4908 = vmatprep.subr.mxu1 %v6559_v42  ;;  %v7118_v22 = vld [vmem:[%s6827_s9 + $0x350] sm:$0xff]  ;;  %v7125_v23 = vld [vmem:[%s6827_s9 + $0x248] sm:$0xff]  ;;  %v7135_v25 = vld [vmem:[%s6827_s9 + $0x240] sm:$0xff] }
 0x18e   : > { %v7128_v24 = vld [vmem:[%s6827_s9 + $0x348] sm:$0xff]  ;;  %v7138_v26 = vld [vmem:[%s6827_s9 + $0x340] sm:$0xff]  ;;  %v7145_v27 = vld [vmem:[%s6827_s9 + $0x238] sm:$0xff] }
 0x18f   : > { %v7148_v28 = vld [vmem:[%s6827_s9 + $0x338] sm:$0xff]  ;;  %v7155_v29 = vld [vmem:[%s6827_s9 + $0x230] sm:$0xff]  ;;  %v7165_v31 = vld [vmem:[%s6827_s9 + $0x228] sm:$0xff] }
 0x190   : > { %4874 = vmatpush3.xpose.msra.mxu0 %v6941_v49  ;;  %4909 = vmatpush3.xpose.msra.mxu1 %v6944_v50  ;;  %v7158_v30 = vld [vmem:[%s6827_s9 + $0x330] sm:$0xff]  ;;  %v7168_v32 = vld [vmem:[%s6827_s9 + $0x328] sm:$0xff]  ;;  %v7175_v33 = vld [vmem:[%s6827_s9 + $0x220] sm:$0xff] }
 0x191   : > { %4875 = vmatprep.subr.mxu0 %v6559_v42  ;;  %4910 = vmatprep.subr.mxu1 %v6559_v42  ;;  %9547 = vst [vmem:[#allocation33_spill] sm:$0xff] %v7175_v33  ;;  %v7178_v34 = vld [vmem:[%s6827_s9 + $0x320] sm:$0xff]  ;;  %v7185_v35 = vld [vmem:[%s6827_s9 + $0x218] sm:$0xff]  ;;  %v7195_v37 = vld [vmem:[%s6827_s9 + $0x210] sm:$0xff] }
 0x192   : > { %9548 = vst [vmem:[#allocation34_spill] sm:$0xff] %v7185_v35  ;;  %v7188_v36 = vld [vmem:[%s6827_s9 + $0x318] sm:$0xff]  ;;  %9550 = vst [vmem:[#allocation36_spill] sm:$0xff] %v7195_v37  ;;  %v7198_v38 = vld [vmem:[%s6827_s9 + $0x310] sm:$0xff] }
 0x193   : > { %9549 = vst [vmem:[#allocation35_spill] sm:$0xff] %v7188_v36  ;;  %9551 = vst [vmem:[#allocation37_spill] sm:$0xff] %v7198_v38  ;;  %v7205_v39 = vld [vmem:[%s6827_s9 + $0x208] sm:$0xff] }
 0x194   : > { %4876 = vmatpush3.xpose.msra.mxu0 %v6951_v51  ;;  %4911 = vmatpush3.xpose.msra.mxu1 %v6954_v52  ;;  %9552 = vst [vmem:[#allocation38_spill] sm:$0xff] %v7205_v39 }
 0x195   : > { %4877 = vmatprep.subr.mxu0 %v6559_v42  ;;  %4912 = vmatprep.subr.mxu1 %v6559_v42 }
 0x198   : > { %4878 = vmatpush3.xpose.msra.mxu0 %v6961_v53  ;;  %4913 = vmatpush3.xpose.msra.mxu1 %v6964_v54 }
 0x199   : > { %4879 = vmatprep.subr.mxu0 %v6559_v42  ;;  %4914 = vmatprep.subr.mxu1 %v6559_v42 }
 0x19c   : > { %4880 = vmatpush3.xpose.msra.mxu0 %v6971_v55  ;;  %4915 = vmatpush3.xpose.msra.mxu1 %v6974_v56 }
 0x19d   : > { %4881 = vmatprep.subr.mxu0 %v6559_v42  ;;  %4916 = vmatprep.subr.mxu1 %v6559_v42 }
 0x1a0   : > { %4882 = vmatpush3.xpose.msra.mxu0 %v6981_v57  ;;  %4917 = vmatpush3.xpose.msra.mxu1 %v6984_v58 }
 0x1a1   : > { %4883 = vmatprep.subr.mxu0 %v6559_v42  ;;  %4918 = vmatprep.subr.mxu1 %v6559_v42 }
 0x1a4   : > { %4884 = vmatpush3.xpose.msra.mxu0 %v6991_v59  ;;  %4919 = vmatpush3.xpose.msra.mxu1 %v6994_v60 }
 0x1a5   : > { %4885 = vmatprep.subr.mxu0 %v6559_v42  ;;  %4920 = vmatprep.subr.mxu1 %v6559_v42 }
 0x1a8   : > { %4886 = vmatpush3.xpose.msra.mxu0 %v7001_v61  ;;  %4921 = vmatpush3.xpose.msra.mxu1 %v7004_v62 }
 0x1a9   : > { %4887 = vmatprep.subr.mxu0 %v6559_v42  ;;  %4922 = vmatprep.subr.mxu1 %v6559_v42 }
 0x1ac   : > { %4888 = vmatpush3.xpose.msra.mxu0 %v7011_v63  ;;  %4923 = vmatpush3.xpose.msra.mxu1 %v7014_v0 }
 0x1ad   : > { %4889 = vmatprep.subr.mxu0 %v6559_v42  ;;  %4924 = vmatprep.subr.mxu1 %v6559_v42 }
 0x1b0   : > { %4890 = vmatpush3.xpose.msra.mxu0 %v7021_v1  ;;  %4925 = vmatpush3.xpose.msra.mxu1 %v7024_v2 }
 0x1b1   : > { %4891 = vmatprep.subr.mxu0 %v6559_v42  ;;  %4926 = vmatprep.subr.mxu1 %v6559_v42 }
 0x1b4   : > { %4892 = vmatpush3.xpose.msra.mxu0 %v7031_v3  ;;  %4927 = vmatpush3.xpose.msra.mxu1 %v7034_v4 }
 0x1b5   : > { %4893 = vmatprep.subr.mxu0 %v6559_v42  ;;  %4928 = vmatprep.subr.mxu1 %v6559_v42 }
 0x1b8   : > { %4894 = vmatpush3.xpose.msra.mxu0 %v7041_v5  ;;  %4929 = vmatpush3.xpose.msra.mxu1 %v7044_v6 }
 0x1b9   : > { %4895 = vmatprep.subr.mxu0 %v6559_v42  ;;  %4930 = vmatprep.subr.mxu1 %v6559_v42 }
 0x1bc   : > { %4896 = vmatpush3.xpose.msra.mxu0 %v7051_v7  ;;  %4931 = vmatpush3.xpose.msra.mxu1 %v7054_v8 }
 0x1bd   : > { %4935 = vmatprep.subr.mxu0 %v6559_v42  ;;  %4970 = vmatprep.subr.mxu1 %v6559_v42 }
 0x1bf   : > { %4898 = vmatmul.mubr.f32.vlgmr.msra.gmra.mxu0 %v549_v9  ;;  %4933 = vmatmul.mubr.f32.vlgmr.msra.gmra.mxu1 %v550_v10  ;;  %v7208_v9 = vld [vmem:[%s6827_s9 + $0x308] sm:$0xff]  ;;  %v7215_v10 = vld [vmem:[%s6827_s9 + $0x200] sm:$0xff] }
 0x1c0   : > { %4936 = vmatpush3.xpose.msra.mxu0 %v7061_v11  ;;  %4971 = vmatpush3.xpose.msra.mxu1 %v7064_v12  ;;  %9553 = vst [vmem:[#allocation39_spill] sm:$0xff] %v7208_v9  ;;  %9554 = vst [vmem:[#allocation40_spill] sm:$0xff] %v7215_v10 }
 0x1c1   : > { %4937 = vmatprep.subr.mxu0 %v6559_v42  ;;  %4972 = vmatprep.subr.mxu1 %v6559_v42 }
 0x1c2   : > { %4967 = vmatprep.mubr.msk.f32.mxu0 %vm6560_vm2, %v6559_v42  ;;  %5002 = vmatprep.mubr.msk.f32.mxu1 %vm6560_vm2, %v6559_v42 }
 0x1c4   : > { %4938 = vmatpush3.xpose.msra.mxu0 %v7071_v13  ;;  %4973 = vmatpush3.xpose.msra.mxu1 %v7074_v14 }
 0x1c5   : > { %4939 = vmatprep.subr.mxu0 %v6559_v42  ;;  %4974 = vmatprep.subr.mxu1 %v6559_v42 }
 0x1c8   : > { %4940 = vmatpush3.xpose.msra.mxu0 %v7085_v15  ;;  %4975 = vmatpush3.xpose.msra.mxu1 %v7088_v16 }
 0x1c9   : > { %4941 = vmatprep.subr.mxu0 %v6559_v42  ;;  %4976 = vmatprep.subr.mxu1 %v6559_v42 }
 0x1cc   : > { %4942 = vmatpush3.xpose.msra.mxu0 %v7095_v17  ;;  %4977 = vmatpush3.xpose.msra.mxu1 %v7098_v18 }
 0x1cd   : > { %4943 = vmatprep.subr.mxu0 %v6559_v42  ;;  %4978 = vmatprep.subr.mxu1 %v6559_v42 }
 0x1d0   : > { %4944 = vmatpush3.xpose.msra.mxu0 %v7105_v19  ;;  %4979 = vmatpush3.xpose.msra.mxu1 %v7108_v20 }
 0x1d1   : > { %4945 = vmatprep.subr.mxu0 %v6559_v42  ;;  %4980 = vmatprep.subr.mxu1 %v6559_v42 }
 0x1d4   : > { %4946 = vmatpush3.xpose.msra.mxu0 %v7115_v21  ;;  %4981 = vmatpush3.xpose.msra.mxu1 %v7118_v22 }
 0x1d5   : > { %4947 = vmatprep.subr.mxu0 %v6559_v42  ;;  %4982 = vmatprep.subr.mxu1 %v6559_v42 }
 0x1d8   : > { %4948 = vmatpush3.xpose.msra.mxu0 %v7125_v23  ;;  %4983 = vmatpush3.xpose.msra.mxu1 %v7128_v24 }
 0x1d9   : > { %4949 = vmatprep.subr.mxu0 %v6559_v42  ;;  %4984 = vmatprep.subr.mxu1 %v6559_v42 }
 0x1dc   : > { %4950 = vmatpush3.xpose.msra.mxu0 %v7135_v25  ;;  %4985 = vmatpush3.xpose.msra.mxu1 %v7138_v26 }
 0x1dd   : > { %4951 = vmatprep.subr.mxu0 %v6559_v42  ;;  %4986 = vmatprep.subr.mxu1 %v6559_v42 }
 0x1e0   : > { %4952 = vmatpush3.xpose.msra.mxu0 %v7145_v27  ;;  %4987 = vmatpush3.xpose.msra.mxu1 %v7148_v28 }
 0x1e1   : > { %4953 = vmatprep.subr.mxu0 %v6559_v42  ;;  %4988 = vmatprep.subr.mxu1 %v6559_v42 }
 0x1e4   : > { %4954 = vmatpush3.xpose.msra.mxu0 %v7155_v29  ;;  %4989 = vmatpush3.xpose.msra.mxu1 %v7158_v30 }
 0x1e5   : > { %4955 = vmatprep.subr.mxu0 %v6559_v42  ;;  %4990 = vmatprep.subr.mxu1 %v6559_v42 }
 0x1e8   : > { %4956 = vmatpush3.xpose.msra.mxu0 %v7165_v31  ;;  %4991 = vmatpush3.xpose.msra.mxu1 %v7168_v32 }
 0x1e9   : > { %4957 = vmatprep.subr.mxu0 %v6559_v42  ;;  %4992 = vmatprep.subr.mxu1 %v6559_v42 }
 0x1ec   : > { %4958 = vmatpush3.xpose.msra.mxu0 %v7175_v33  ;;  %4993 = vmatpush3.xpose.msra.mxu1 %v7178_v34 }
 0x1ed   : > { %4959 = vmatprep.subr.mxu0 %v6559_v42  ;;  %4994 = vmatprep.subr.mxu1 %v6559_v42 }
 0x1f0   : > { %4960 = vmatpush3.xpose.msra.mxu0 %v7185_v35  ;;  %4995 = vmatpush3.xpose.msra.mxu1 %v7188_v36  ;;  %v551_v35 = vld [vmem:[#allocation2 + $0x2] sm:$0x1] }
 0x1f1   : > { %4961 = vmatprep.subr.mxu0 %v6559_v42  ;;  %4996 = vmatprep.subr.mxu1 %v6559_v42 }
 0x1f4   : > { %4962 = vmatpush3.xpose.msra.mxu0 %v7195_v37  ;;  %4997 = vmatpush3.xpose.msra.mxu1 %v7198_v38  ;;  %v7218_v37 = vld [vmem:[%s6827_s9 + $0x300] sm:$0xff]  ;;  %v552_v38 = vld [vmem:[#allocation2 + $0x3] sm:$0x1] }
 0x1f5   : > { %4963 = vmatprep.subr.mxu0 %v6559_v42  ;;  %4998 = vmatprep.subr.mxu1 %v6559_v42  ;;  %9555 = vst [vmem:[#allocation41_spill] sm:$0xff] %v7218_v37 }
 0x1f8   : > { %4964 = vmatpush3.xpose.msra.mxu0 %v7205_v39  ;;  %4999 = vmatpush3.xpose.msra.mxu1 %v7208_v9  ;;  %v7225_v39 = vld [vmem:[%s6827_s9 + $0x478] sm:$0xff] }
 0x1f9   : > { %4965 = vmatprep.subr.mxu0 %v6559_v42  ;;  %5000 = vmatprep.subr.mxu1 %v6559_v42  ;;  %9556 = vst [vmem:[#allocation42_spill] sm:$0xff] %v7225_v39  ;;  %v7228_v9 = vld [vmem:[%s6827_s9 + $0x578] sm:$0xff] }
 0x1fa   : > { %9557 = vst [vmem:[#allocation43_spill] sm:$0xff] %v7228_v9 }
 0x1fc   : > { %4966 = vmatpush3.xpose.msra.mxu0 %v7215_v10  ;;  %5001 = vmatpush3.xpose.msra.mxu1 %v7218_v37  ;;  %v7235_v10 = vld [vmem:[%s6827_s9 + $0x470] sm:$0xff] }
 0x1fd   : > { %5005 = vmatprep.subr.mxu0 %v6559_v42  ;;  %5040 = vmatprep.subr.mxu1 %v6559_v42  ;;  %9558 = vst [vmem:[#allocation44_spill] sm:$0xff] %v7235_v10  ;;  %v7238_v37 = vld [vmem:[%s6827_s9 + $0x570] sm:$0xff] }
 0x1fe   : > { %9559 = vst [vmem:[#allocation45_spill] sm:$0xff] %v7238_v37 }
 0x1ff   : > { %4968 = vmatmul.mubr.f32.vlgmr.msra.gmra.mxu0 %v551_v35  ;;  %5003 = vmatmul.mubr.f32.vlgmr.msra.gmra.mxu1 %v552_v38  ;;  %v7249_v35 = vld [vmem:[%s6827_s9 + $0x468] sm:$0xff] }
 0x200   : > { %5006 = vmatpush3.xpose.msra.mxu0 %v7225_v39  ;;  %5041 = vmatpush3.xpose.msra.mxu1 %v7228_v9  ;;  %9560 = vst [vmem:[#allocation46_spill] sm:$0xff] %v7249_v35  ;;  %v7252_v38 = vld [vmem:[%s6827_s9 + $0x568] sm:$0xff]  ;;  %v7262_v9 = vld [vmem:[%s6827_s9 + $0x560] sm:$0xff]  ;;  %v554_v39 = vld [vmem:[#allocation2 + $0x5] sm:$0x1] }
 0x201   : > { %5007 = vmatprep.subr.mxu0 %v6559_v42  ;;  %5042 = vmatprep.subr.mxu1 %v6559_v42  ;;  %9561 = vst [vmem:[#allocation47_spill] sm:$0xff] %v7252_v38  ;;  %9563 = vst [vmem:[#allocation49_spill] sm:$0xff] %v7262_v9 }
 0x202   : > { %5037 = vmatprep.mubr.msk.f32.mxu0 %vm6560_vm2, %v6559_v42  ;;  %5072 = vmatprep.mubr.msk.f32.mxu1 %vm6560_vm2, %v6559_v42 }
 0x204   : > { %5008 = vmatpush3.xpose.msra.mxu0 %v7235_v10  ;;  %5043 = vmatpush3.xpose.msra.mxu1 %v7238_v37  ;;  %v7259_v37 = vld [vmem:[%s6827_s9 + $0x460] sm:$0xff]  ;;  %v553_v10 = vld [vmem:[#allocation2 + $0x4] sm:$0x1] }
 0x205   : > { %5009 = vmatprep.subr.mxu0 %v6559_v42  ;;  %5044 = vmatprep.subr.mxu1 %v6559_v42  ;;  %9562 = vst [vmem:[#allocation48_spill] sm:$0xff] %v7259_v37 }
 0x208   : > { %5010 = vmatpush3.xpose.msra.mxu0 %v7249_v35  ;;  %5045 = vmatpush3.xpose.msra.mxu1 %v7252_v38  ;;  %v7269_v38 = vld [vmem:[%s6827_s9 + $0x458] sm:$0xff] }
 0x209   : > { %5011 = vmatprep.subr.mxu0 %v6559_v42  ;;  %5046 = vmatprep.subr.mxu1 %v6559_v42  ;;  %9564 = vst [vmem:[#allocation50_spill] sm:$0xff] %v7269_v38  ;;  %v7272_v35 = vld [vmem:[%s6827_s9 + $0x558] sm:$0xff] }
 0x20a   : > { %9565 = vst [vmem:[#allocation51_spill] sm:$0xff] %v7272_v35 }
 0x20c   : > { %5012 = vmatpush3.xpose.msra.mxu0 %v7259_v37  ;;  %5047 = vmatpush3.xpose.msra.mxu1 %v7262_v9  ;;  %v7279_v9 = vld [vmem:[%s6827_s9 + $0x450] sm:$0xff] }
 0x20d   : > { %5013 = vmatprep.subr.mxu0 %v6559_v42  ;;  %5048 = vmatprep.subr.mxu1 %v6559_v42  ;;  %9566 = vst [vmem:[#allocation52_spill] sm:$0xff] %v7279_v9  ;;  %v7282_v37 = vld [vmem:[%s6827_s9 + $0x550] sm:$0xff] }
 0x20e   : > { %9567 = vst [vmem:[#allocation53_spill] sm:$0xff] %v7282_v37 }
 0x210   : > { %5014 = vmatpush3.xpose.msra.mxu0 %v7269_v38  ;;  %5049 = vmatpush3.xpose.msra.mxu1 %v7272_v35  ;;  %v7289_v35 = vld [vmem:[%s6827_s9 + $0x448] sm:$0xff] }
 0x211   : > { %5015 = vmatprep.subr.mxu0 %v6559_v42  ;;  %5050 = vmatprep.subr.mxu1 %v6559_v42  ;;  %9568 = vst [vmem:[#allocation54_spill] sm:$0xff] %v7289_v35  ;;  %v7292_v38 = vld [vmem:[%s6827_s9 + $0x548] sm:$0xff] }
 0x212   : > { %9569 = vst [vmem:[#allocation55_spill] sm:$0xff] %v7292_v38 }
 0x214   : > { %5016 = vmatpush3.xpose.msra.mxu0 %v7279_v9  ;;  %5051 = vmatpush3.xpose.msra.mxu1 %v7282_v37  ;;  %v7299_v37 = vld [vmem:[%s6827_s9 + $0x440] sm:$0xff] }
 0x215   : > { %5017 = vmatprep.subr.mxu0 %v6559_v42  ;;  %5052 = vmatprep.subr.mxu1 %v6559_v42  ;;  %9570 = vst [vmem:[#allocation56_spill] sm:$0xff] %v7299_v37  ;;  %v7302_v9 = vld [vmem:[%s6827_s9 + $0x540] sm:$0xff] }
 0x216   : > { %9571 = vst [vmem:[#allocation57_spill] sm:$0xff] %v7302_v9 }
 0x218   : > { %5018 = vmatpush3.xpose.msra.mxu0 %v7289_v35  ;;  %5053 = vmatpush3.xpose.msra.mxu1 %v7292_v38  ;;  %v7309_v38 = vld [vmem:[%s6827_s9 + $0x438] sm:$0xff] }
 0x219   : > { %5019 = vmatprep.subr.mxu0 %v6559_v42  ;;  %5054 = vmatprep.subr.mxu1 %v6559_v42  ;;  %9572 = vst [vmem:[#allocation58_spill] sm:$0xff] %v7309_v38  ;;  %v7312_v35 = vld [vmem:[%s6827_s9 + $0x538] sm:$0xff] }
 0x21a   : > { %9573 = vst [vmem:[#allocation59_spill] sm:$0xff] %v7312_v35 }
 0x21c   : > { %5020 = vmatpush3.xpose.msra.mxu0 %v7299_v37  ;;  %5055 = vmatpush3.xpose.msra.mxu1 %v7302_v9  ;;  %v7319_v9 = vld [vmem:[%s6827_s9 + $0x430] sm:$0xff] }
 0x21d   : > { %5021 = vmatprep.subr.mxu0 %v6559_v42  ;;  %5056 = vmatprep.subr.mxu1 %v6559_v42  ;;  %9574 = vst [vmem:[#allocation60_spill] sm:$0xff] %v7319_v9  ;;  %v7322_v37 = vld [vmem:[%s6827_s9 + $0x530] sm:$0xff] }
 0x21e   : > { %9575 = vst [vmem:[#allocation61_spill] sm:$0xff] %v7322_v37 }
 0x220   : > { %5022 = vmatpush3.xpose.msra.mxu0 %v7309_v38  ;;  %5057 = vmatpush3.xpose.msra.mxu1 %v7312_v35  ;;  %v7329_v35 = vld [vmem:[%s6827_s9 + $0x428] sm:$0xff] }
 0x221   : > { %5023 = vmatprep.subr.mxu0 %v6559_v42  ;;  %5058 = vmatprep.subr.mxu1 %v6559_v42  ;;  %9576 = vst [vmem:[#allocation62_spill] sm:$0xff] %v7329_v35  ;;  %v7332_v38 = vld [vmem:[%s6827_s9 + $0x528] sm:$0xff] }
 0x222   : > { %9577 = vst [vmem:[#allocation63_spill] sm:$0xff] %v7332_v38 }
 0x224   : > { %5024 = vmatpush3.xpose.msra.mxu0 %v7319_v9  ;;  %5059 = vmatpush3.xpose.msra.mxu1 %v7322_v37  ;;  %v7339_v37 = vld [vmem:[%s6827_s9 + $0x420] sm:$0xff] }
 0x225   : > { %5025 = vmatprep.subr.mxu0 %v6559_v42  ;;  %5060 = vmatprep.subr.mxu1 %v6559_v42  ;;  %9578 = vst [vmem:[#allocation64_spill] sm:$0xff] %v7339_v37  ;;  %v7342_v9 = vld [vmem:[%s6827_s9 + $0x520] sm:$0xff] }
 0x226   : > { %9579 = vst [vmem:[#allocation65_spill] sm:$0xff] %v7342_v9 }
 0x228   : > { %5026 = vmatpush3.xpose.msra.mxu0 %v7329_v35  ;;  %5061 = vmatpush3.xpose.msra.mxu1 %v7332_v38  ;;  %v7349_v38 = vld [vmem:[%s6827_s9 + $0x418] sm:$0xff] }
 0x229   : > { %5027 = vmatprep.subr.mxu0 %v6559_v42  ;;  %5062 = vmatprep.subr.mxu1 %v6559_v42  ;;  %9580 = vst [vmem:[#allocation66_spill] sm:$0xff] %v7349_v38  ;;  %v7352_v35 = vld [vmem:[%s6827_s9 + $0x518] sm:$0xff] }
 0x22a   : > { %9581 = vst [vmem:[#allocation67_spill] sm:$0xff] %v7352_v35 }
 0x22c   : > { %5028 = vmatpush3.xpose.msra.mxu0 %v7339_v37  ;;  %5063 = vmatpush3.xpose.msra.mxu1 %v7342_v9  ;;  %v7359_v9 = vld [vmem:[%s6827_s9 + $0x410] sm:$0xff] }
 0x22d   : > { %5029 = vmatprep.subr.mxu0 %v6559_v42  ;;  %5064 = vmatprep.subr.mxu1 %v6559_v42  ;;  %9582 = vst [vmem:[#allocation68_spill] sm:$0xff] %v7359_v9  ;;  %v7362_v37 = vld [vmem:[%s6827_s9 + $0x510] sm:$0xff] }
 0x22e   : > { %9583 = vst [vmem:[#allocation69_spill] sm:$0xff] %v7362_v37 }
 0x230   : > { %5030 = vmatpush3.xpose.msra.mxu0 %v7349_v38  ;;  %5065 = vmatpush3.xpose.msra.mxu1 %v7352_v35  ;;  %v7369_v35 = vld [vmem:[%s6827_s9 + $0x408] sm:$0xff] }
 0x231   : > { %5031 = vmatprep.subr.mxu0 %v6559_v42  ;;  %5066 = vmatprep.subr.mxu1 %v6559_v42  ;;  %9584 = vst [vmem:[#allocation70_spill] sm:$0xff] %v7369_v35  ;;  %v7372_v38 = vld [vmem:[%s6827_s9 + $0x508] sm:$0xff] }
 0x232   : > { %9585 = vst [vmem:[#allocation71_spill] sm:$0xff] %v7372_v38 }
 0x234   : > { %5032 = vmatpush3.xpose.msra.mxu0 %v7359_v9  ;;  %5067 = vmatpush3.xpose.msra.mxu1 %v7362_v37  ;;  %v7379_v37 = vld [vmem:[%s6827_s9 + $0x400] sm:$0xff] }
 0x235   : > { %5033 = vmatprep.subr.mxu0 %v6559_v42  ;;  %5068 = vmatprep.subr.mxu1 %v6559_v42  ;;  %9586 = vst [vmem:[#allocation72_spill] sm:$0xff] %v7379_v37  ;;  %v7382_v9 = vld [vmem:[%s6827_s9 + $0x500] sm:$0xff] }
 0x236   : > { %9587 = vst [vmem:[#allocation73_spill] sm:$0xff] %v7382_v9 }
 0x238   : > { %5034 = vmatpush3.xpose.msra.mxu0 %v7369_v35  ;;  %5069 = vmatpush3.xpose.msra.mxu1 %v7372_v38  ;;  %v7388_v35 = vld [vmem:[%s6827_s9 + $0x678] sm:$0xff] }
 0x239   : > { %5035 = vmatprep.subr.mxu0 %v6559_v42  ;;  %5070 = vmatprep.subr.mxu1 %v6559_v42  ;;  %9588 = vst [vmem:[#allocation74_spill] sm:$0xff] %v7388_v35  ;;  %v7392_v38 = vld [vmem:[%s6827_s9 + $0x778] sm:$0xff] }
 0x23a   : > { %9589 = vst [vmem:[#allocation75_spill] sm:$0xff] %v7392_v38 }
 0x23c   : > { %5036 = vmatpush3.xpose.msra.mxu0 %v7379_v37  ;;  %5071 = vmatpush3.xpose.msra.mxu1 %v7382_v9  ;;  %v7398_v9 = vld [vmem:[%s6827_s9 + $0x670] sm:$0xff] }
 0x23d   : > { %5075 = vmatprep.subr.mxu0 %v6559_v42  ;;  %5110 = vmatprep.subr.mxu1 %v6559_v42  ;;  %9590 = vst [vmem:[#allocation76_spill] sm:$0xff] %v7398_v9  ;;  %v7402_v37 = vld [vmem:[%s6827_s9 + $0x770] sm:$0xff] }
 0x23e   : > { %9591 = vst [vmem:[#allocation77_spill] sm:$0xff] %v7402_v37 }
 0x23f   : > { %5038 = vmatmul.mubr.f32.vlgmr.msra.gmra.mxu0 %v553_v10  ;;  %5073 = vmatmul.mubr.f32.vlgmr.msra.gmra.mxu1 %v554_v39  ;;  %v7412_v39 = vld [vmem:[%s6827_s9 + $0x668] sm:$0xff] }
 0x240   : > { %5076 = vmatpush3.xpose.msra.mxu0 %v7388_v35  ;;  %5111 = vmatpush3.xpose.msra.mxu1 %v7392_v38  ;;  %9592 = vst [vmem:[#allocation78_spill] sm:$0xff] %v7412_v39  ;;  %v7416_v10 = vld [vmem:[%s6827_s9 + $0x768] sm:$0xff]  ;;  %v556_v38 = vld [vmem:[#allocation2 + $0x7] sm:$0x1] }
 0x241   : > { %5077 = vmatprep.subr.mxu0 %v6559_v42  ;;  %5112 = vmatprep.subr.mxu1 %v6559_v42  ;;  %9593 = vst [vmem:[#allocation79_spill] sm:$0xff] %v7416_v10  ;;  %v7532_v35 = vld [vmem:[%s6827_s9 + $0x608] sm:$0xff] }
 0x242   : > { %5107 = vmatprep.mubr.msk.f32.mxu0 %vm6560_vm2, %v6559_v42  ;;  %5142 = vmatprep.mubr.msk.f32.mxu1 %vm6560_vm2, %v6559_v42  ;;  %9616 = vst [vmem:[#allocation102_spill] sm:$0xff] %v7532_v35 }
 0x244   : > { %5078 = vmatpush3.xpose.msra.mxu0 %v7398_v9  ;;  %5113 = vmatpush3.xpose.msra.mxu1 %v7402_v37  ;;  %v7422_v9 = vld [vmem:[%s6827_s9 + $0x660] sm:$0xff] }
 0x245   : > { %5079 = vmatprep.subr.mxu0 %v6559_v42  ;;  %5114 = vmatprep.subr.mxu1 %v6559_v42  ;;  %9594 = vst [vmem:[#allocation80_spill] sm:$0xff] %v7422_v9  ;;  %v7426_v37 = vld [vmem:[%s6827_s9 + $0x760] sm:$0xff] }
 0x246   : > { %9595 = vst [vmem:[#allocation81_spill] sm:$0xff] %v7426_v37 }
 0x248   : > { %5080 = vmatpush3.xpose.msra.mxu0 %v7412_v39  ;;  %5115 = vmatpush3.xpose.msra.mxu1 %v7416_v10  ;;  %v7432_v39 = vld [vmem:[%s6827_s9 + $0x658] sm:$0xff] }
 0x249   : > { %5081 = vmatprep.subr.mxu0 %v6559_v42  ;;  %5116 = vmatprep.subr.mxu1 %v6559_v42  ;;  %9596 = vst [vmem:[#allocation82_spill] sm:$0xff] %v7432_v39  ;;  %v7436_v10 = vld [vmem:[%s6827_s9 + $0x758] sm:$0xff] }
 0x24a   : > { %9597 = vst [vmem:[#allocation83_spill] sm:$0xff] %v7436_v10 }
 0x24c   : > { %5082 = vmatpush3.xpose.msra.mxu0 %v7422_v9  ;;  %5117 = vmatpush3.xpose.msra.mxu1 %v7426_v37  ;;  %v7442_v9 = vld [vmem:[%s6827_s9 + $0x650] sm:$0xff] }
 0x24d   : > { %5083 = vmatprep.subr.mxu0 %v6559_v42  ;;  %5118 = vmatprep.subr.mxu1 %v6559_v42  ;;  %9598 = vst [vmem:[#allocation84_spill] sm:$0xff] %v7442_v9  ;;  %v7446_v37 = vld [vmem:[%s6827_s9 + $0x750] sm:$0xff] }
 0x24e   : > { %9599 = vst [vmem:[#allocation85_spill] sm:$0xff] %v7446_v37 }
 0x250   : > { %5084 = vmatpush3.xpose.msra.mxu0 %v7432_v39  ;;  %5119 = vmatpush3.xpose.msra.mxu1 %v7436_v10  ;;  %v7452_v39 = vld [vmem:[%s6827_s9 + $0x648] sm:$0xff] }
 0x251   : > { %5085 = vmatprep.subr.mxu0 %v6559_v42  ;;  %5120 = vmatprep.subr.mxu1 %v6559_v42  ;;  %9600 = vst [vmem:[#allocation86_spill] sm:$0xff] %v7452_v39  ;;  %v7456_v10 = vld [vmem:[%s6827_s9 + $0x748] sm:$0xff] }
 0x252   : > { %9601 = vst [vmem:[#allocation87_spill] sm:$0xff] %v7456_v10 }
 0x254   : > { %5086 = vmatpush3.xpose.msra.mxu0 %v7442_v9  ;;  %5121 = vmatpush3.xpose.msra.mxu1 %v7446_v37  ;;  %v7462_v9 = vld [vmem:[%s6827_s9 + $0x640] sm:$0xff] }
 0x255   : > { %5087 = vmatprep.subr.mxu0 %v6559_v42  ;;  %5122 = vmatprep.subr.mxu1 %v6559_v42  ;;  %9602 = vst [vmem:[#allocation88_spill] sm:$0xff] %v7462_v9  ;;  %v7466_v37 = vld [vmem:[%s6827_s9 + $0x740] sm:$0xff] }
 0x256   : > { %9603 = vst [vmem:[#allocation89_spill] sm:$0xff] %v7466_v37 }
 0x258   : > { %5088 = vmatpush3.xpose.msra.mxu0 %v7452_v39  ;;  %5123 = vmatpush3.xpose.msra.mxu1 %v7456_v10  ;;  %v7472_v39 = vld [vmem:[%s6827_s9 + $0x638] sm:$0xff] }
 0x259   : > { %5089 = vmatprep.subr.mxu0 %v6559_v42  ;;  %5124 = vmatprep.subr.mxu1 %v6559_v42  ;;  %9604 = vst [vmem:[#allocation90_spill] sm:$0xff] %v7472_v39  ;;  %v7476_v10 = vld [vmem:[%s6827_s9 + $0x738] sm:$0xff] }
 0x25a   : > { %9605 = vst [vmem:[#allocation91_spill] sm:$0xff] %v7476_v10 }
 0x25c   : > { %5090 = vmatpush3.xpose.msra.mxu0 %v7462_v9  ;;  %5125 = vmatpush3.xpose.msra.mxu1 %v7466_v37  ;;  %v7482_v9 = vld [vmem:[%s6827_s9 + $0x630] sm:$0xff] }
 0x25d   : > { %5091 = vmatprep.subr.mxu0 %v6559_v42  ;;  %5126 = vmatprep.subr.mxu1 %v6559_v42  ;;  %9606 = vst [vmem:[#allocation92_spill] sm:$0xff] %v7482_v9  ;;  %v7486_v37 = vld [vmem:[%s6827_s9 + $0x730] sm:$0xff] }
 0x25e   : > { %9607 = vst [vmem:[#allocation93_spill] sm:$0xff] %v7486_v37 }
 0x260   : > { %5092 = vmatpush3.xpose.msra.mxu0 %v7472_v39  ;;  %5127 = vmatpush3.xpose.msra.mxu1 %v7476_v10  ;;  %v7492_v39 = vld [vmem:[%s6827_s9 + $0x628] sm:$0xff] }
 0x261   : > { %5093 = vmatprep.subr.mxu0 %v6559_v42  ;;  %5128 = vmatprep.subr.mxu1 %v6559_v42  ;;  %9608 = vst [vmem:[#allocation94_spill] sm:$0xff] %v7492_v39  ;;  %v7496_v10 = vld [vmem:[%s6827_s9 + $0x728] sm:$0xff] }
 0x262   : > { %9609 = vst [vmem:[#allocation95_spill] sm:$0xff] %v7496_v10 }
 0x264   : > { %5094 = vmatpush3.xpose.msra.mxu0 %v7482_v9  ;;  %5129 = vmatpush3.xpose.msra.mxu1 %v7486_v37  ;;  %v7502_v9 = vld [vmem:[%s6827_s9 + $0x620] sm:$0xff] }
 0x265   : > { %5095 = vmatprep.subr.mxu0 %v6559_v42  ;;  %5130 = vmatprep.subr.mxu1 %v6559_v42  ;;  %9610 = vst [vmem:[#allocation96_spill] sm:$0xff] %v7502_v9  ;;  %v7506_v37 = vld [vmem:[%s6827_s9 + $0x720] sm:$0xff] }
 0x266   : > { %9611 = vst [vmem:[#allocation97_spill] sm:$0xff] %v7506_v37 }
 0x268   : > { %5096 = vmatpush3.xpose.msra.mxu0 %v7492_v39  ;;  %5131 = vmatpush3.xpose.msra.mxu1 %v7496_v10  ;;  %v7512_v39 = vld [vmem:[%s6827_s9 + $0x618] sm:$0xff] }
 0x269   : > { %5097 = vmatprep.subr.mxu0 %v6559_v42  ;;  %5132 = vmatprep.subr.mxu1 %v6559_v42  ;;  %9612 = vst [vmem:[#allocation98_spill] sm:$0xff] %v7512_v39  ;;  %v7516_v10 = vld [vmem:[%s6827_s9 + $0x718] sm:$0xff] }
 0x26a   : > { %9613 = vst [vmem:[#allocation99_spill] sm:$0xff] %v7516_v10 }
 0x26c   : > { %5098 = vmatpush3.xpose.msra.mxu0 %v7502_v9  ;;  %5133 = vmatpush3.xpose.msra.mxu1 %v7506_v37  ;;  %v7522_v9 = vld [vmem:[%s6827_s9 + $0x610] sm:$0xff] }
 0x26d   : > { %5099 = vmatprep.subr.mxu0 %v6559_v42  ;;  %5134 = vmatprep.subr.mxu1 %v6559_v42  ;;  %9614 = vst [vmem:[#allocation100_spill] sm:$0xff] %v7522_v9  ;;  %v7526_v37 = vld [vmem:[%s6827_s9 + $0x710] sm:$0xff] }
 0x26e   : > { %9615 = vst [vmem:[#allocation101_spill] sm:$0xff] %v7526_v37 }
 0x270   : > { %5100 = vmatpush3.xpose.msra.mxu0 %v7512_v39  ;;  %5135 = vmatpush3.xpose.msra.mxu1 %v7516_v10  ;;  %v7536_v39 = vld [vmem:[%s6827_s9 + $0x708] sm:$0xff]  ;;  %v7542_v10 = vld [vmem:[%s6827_s9 + $0x600] sm:$0xff] }
 0x271   : > { %5101 = vmatprep.subr.mxu0 %v6559_v42  ;;  %5136 = vmatprep.subr.mxu1 %v6559_v42  ;;  %9617 = vst [vmem:[#allocation103_spill] sm:$0xff] %v7536_v39  ;;  %9618 = vst [vmem:[#allocation104_spill] sm:$0xff] %v7542_v10 }
 0x274   : > { %5102 = vmatpush3.xpose.msra.mxu0 %v7522_v9  ;;  %5137 = vmatpush3.xpose.msra.mxu1 %v7526_v37  ;;  %v7546_v9 = vld [vmem:[%s6827_s9 + $0x700] sm:$0xff]  ;;  %v555_v37 = vld [vmem:[#allocation2 + $0x6] sm:$0x1] }
 0x275   : > { %5103 = vmatprep.subr.mxu0 %v6559_v42  ;;  %5138 = vmatprep.subr.mxu1 %v6559_v42  ;;  %9619 = vst [vmem:[#allocation105_spill] sm:$0xff] %v7546_v9 }
 0x278   : > { %5104 = vmatpush3.xpose.msra.mxu0 %v7532_v35  ;;  %5139 = vmatpush3.xpose.msra.mxu1 %v7536_v39 }
 0x279   : > { %5105 = vmatprep.subr.mxu0 %v6559_v42  ;;  %5140 = vmatprep.subr.mxu1 %v6559_v42 }
 0x27c   : > { %5106 = vmatpush3.xpose.msra.mxu0 %v7542_v10  ;;  %5141 = vmatpush3.xpose.msra.mxu1 %v7546_v9 }
 0x27d   : > { %5180 = vmatprep.subr.mxu1 %v6559_v42  ;;  %5145 = vmatprep.subr.mxu0 %v6559_v42 }
 0x27f   : > { %v7552_v39 = vpop.f32.mrf.mxu0  ;;  %5108 = vmatmul.mubr.f32.vlgmr.msra.gmra.mxu0 %v555_v37  ;;  %5143 = vmatmul.mubr.f32.vlgmr.msra.gmra.mxu1 %v556_v38  ;;  %v7554_v35 = vpop.f32.mrf.mxu1  ;;  %v7688_v37 = vld [vmem:[#allocation3 + $0x4] sm:$0x1] }
 0x280   : > { %v1254_v33 = vsel %vm1253_vm3, %v7552_v39, -inf  ;;  %5181 = vmatpush3.msra.mxu1 %v6898_v41  ;;  %5146 = vmatpush3.msra.mxu0 %v6895_v40  ;;  %v1257_v36 = vsel %vm1253_vm3, %v7554_v35, -inf  ;;  %v6561_v40 = vmov 0   ;;  %9630 = vst [vmem:[#allocation116_spill] sm:$0xff] %v7688_v37 }
 0x281   : > { %v4899_v9 = vpop.f32.mrf.mxu0  ;;  %1255 = vmax.xlane.f32.xlu0 %v1254_v33  ;;  %v4934_v10 = vpop.f32.mrf.mxu1  ;;  %5182 = vmatprep.subr.mxu1 %v6559_v42 }
 0x282   : > { %5183 = vmatpush3.msra.mxu1 %v6910_v44  ;;  %5147 = vmatprep.subr.mxu0 %v6559_v42 }
 0x283   : > { %5184 = vmatprep.subr.mxu1 %v6559_v42  ;;  %5148 = vmatpush3.msra.mxu0 %v6907_v43 }
 0x284   : > { %5185 = vmatpush3.msra.mxu1 %v6924_v46  ;;  %5149 = vmatprep.subr.mxu0 %v6559_v42 }
 0x285   : > { %1258 = vmax.xlane.f32.xlu0 %v1257_v36  ;;  %5186 = vmatprep.subr.mxu1 %v6559_v42  ;;  %v7686_v36 = vld [vmem:[#allocation3 + $0x5] sm:$0x1] }
 0x286   : > { %5187 = vmatpush3.msra.mxu1 %v6934_v48  ;;  %5150 = vmatpush3.msra.mxu0 %v6921_v45  ;;  %9629 = vst [vmem:[#allocation115_spill] sm:$0xff] %v7686_v36 }
 0x287   : > { %5188 = vmatprep.subr.mxu1 %v6559_v42  ;;  %5151 = vmatprep.subr.mxu0 %v6559_v42 }
 0x288   : > { %5189 = vmatpush3.msra.mxu1 %v6944_v50  ;;  %5152 = vmatpush3.msra.mxu0 %v6931_v47 }
 0x289   : > { %5190 = vmatprep.subr.mxu1 %v6559_v42  ;;  %5153 = vmatprep.subr.mxu0 %v6559_v42 }
 0x28a   : > { %5191 = vmatpush3.msra.mxu1 %v6954_v52  ;;  %5154 = vmatpush3.msra.mxu0 %v6941_v49 }
 0x28b   : > { %5192 = vmatprep.subr.mxu1 %v6559_v42  ;;  %5155 = vmatprep.subr.mxu0 %v6559_v42 }
 0x28c   : > { %5193 = vmatpush3.msra.mxu1 %v6964_v54  ;;  %5156 = vmatpush3.msra.mxu0 %v6951_v51  ;;  %v7644_v54 = vld [vmem:[#allocation3] sm:$0x1] }
 0x28d   : > { %5194 = vmatprep.subr.mxu1 %v6559_v42  ;;  %5157 = vmatprep.subr.mxu0 %v6559_v42  ;;  %9620 = vst [vmem:[#allocation106_spill] sm:$0xff] %v7644_v54 }
 0x28e   : > { %5195 = vmatpush3.msra.mxu1 %v6974_v56  ;;  %5158 = vmatpush3.msra.mxu0 %v6961_v53 }
 0x28f   : > { %5196 = vmatprep.subr.mxu1 %v6559_v42  ;;  %5159 = vmatprep.subr.mxu0 %v6559_v42 }
 0x290   : > { %5197 = vmatpush3.msra.mxu1 %v6984_v58  ;;  %5160 = vmatpush3.msra.mxu0 %v6971_v55 }
 0x291   : > { %6212 = vset.pattern.permute.xlu1 %v6561_v40  ;;  %6211 = vset.pattern.permute.xlu0 %v6561_v40 }
 0x292   : > { %5198 = vmatprep.subr.mxu1 %v6559_v42  ;;  %5161 = vmatprep.subr.mxu0 %v6559_v42 }
 0x293   : > { %5199 = vmatpush3.msra.mxu1 %v6994_v60  ;;  %5162 = vmatpush3.msra.mxu0 %v6981_v57  ;;  %v7649_v57 = vld [vmem:[#allocation3 + $0x1] sm:$0x1] }
 0x294   : > { %5200 = vmatprep.subr.mxu1 %v6559_v42  ;;  %5163 = vmatprep.subr.mxu0 %v6559_v42  ;;  %9622 = vst [vmem:[#allocation108_spill] sm:$0xff] %v7649_v57 }
 0x295   : > { %5201 = vmatpush3.msra.mxu1 %v7004_v62  ;;  %5164 = vmatpush3.msra.mxu0 %v6991_v59 }
 0x296   : > { %5202 = vmatprep.subr.mxu1 %v6559_v42  ;;  %5165 = vmatprep.subr.mxu0 %v6559_v42 }
 0x297   : > { %5203 = vmatpush3.msra.mxu1 %v7014_v0  ;;  %5166 = vmatpush3.msra.mxu0 %v7001_v61 }
 0x298   : > { %5204 = vmatprep.subr.mxu1 %v6559_v42  ;;  %5167 = vmatprep.subr.mxu0 %v6559_v42 }
 0x299   : > { %5205 = vmatpush3.msra.mxu1 %v7024_v2  ;;  %5168 = vmatpush3.msra.mxu0 %v7011_v63  ;;  %v7668_v2 = vld [vmem:[#allocation3 + $0x2] sm:$0x1] }
 0x29a   : > { %5206 = vmatprep.subr.mxu1 %v6559_v42  ;;  %5169 = vmatprep.subr.mxu0 %v6559_v42  ;;  %9624 = vst [vmem:[#allocation110_spill] sm:$0xff] %v7668_v2 }
 0x29b   : > { %5207 = vmatpush3.msra.mxu1 %v7034_v4  ;;  %5170 = vmatpush3.msra.mxu0 %v7021_v1 }
 0x29c   : > { %5208 = vmatprep.subr.mxu1 %v6559_v42  ;;  %5171 = vmatprep.subr.mxu0 %v6559_v42 }
 0x29d   : > { %5209 = vmatpush3.msra.mxu1 %v7044_v6  ;;  %5172 = vmatpush3.msra.mxu0 %v7031_v3 }
 0x29e   : > { %5210 = vmatprep.subr.mxu1 %v6559_v42  ;;  %5212 = vmatprep.mubr.msk.f32.mxu1 %vm6560_vm2, %v6559_v42 }
 0x29f   : > { %5211 = vmatpush3.msra.mxu1 %v7054_v8  ;;  %5173 = vmatprep.subr.mxu0 %v6559_v42  ;;  %v1315_v8 = vlaneseq }
 0x2a0   : > { %5174 = vmatpush3.msra.mxu0 %v7041_v5  ;;  %5177 = vmatprep.mubr.msk.f32.mxu0 %vm6560_vm2, %v6559_v42  ;;  %v7673_v5 = vld [vmem:[#allocation3 + $0x3] sm:$0x1] }
 0x2a1   : > { %5175 = vmatprep.subr.mxu0 %v6559_v42  ;;  %5250 = vmatprep.subr.mxu1 %v6559_v42  ;;  %9626 = vst [vmem:[#allocation112_spill] sm:$0xff] %v7673_v5  ;;  %v7684_v33 = vshrl.u32 %v1315_v8, 7  ;;  %v9657_v8 = vld [vmem:[#allocation50_spill] sm:$0xff] }
 0x2a2   : > { %5176 = vmatpush3.msra.mxu0 %v7051_v7 }
 0x2a3   : > { %5215 = vmatprep.subr.mxu0 %v6559_v42  ;;  %9628 = vst [vmem:[#allocation114_spill] sm:$0xff] %v7684_v33 }
 0x2bf   : > { %v7628_v41 = vpop.f32.mrf.mxu0  ;;  %v7630_v43 = vpop.f32.mrf.mxu1 }
 0x2c0   : > { %v1260_v44 = vsel %vm1253_vm3, %v7628_v41, -inf  ;;  %v1263_v47 = vsel %vm1253_vm3, %v7630_v43, -inf }
 0x2c1   : > { %v4969_v45 = vpop.f32.mrf.mxu0  ;;  %1261 = vmax.xlane.f32.xlu1 %v1260_v44  ;;  %v5004_v46 = vpop.f32.mrf.mxu1  ;;  %v7697_v44 = vsub.s32 0, %v7684_v33  ;;  %v8142_v33 = vld [vmem:[%s6827_s9 + $0x3f8] sm:$0xff] }
 0x2c5   : > { %1264 = vmax.xlane.f32.xlu1 %v1263_v47 }
 0x2ff   : > { %v7636_v48 = vpop.f32.mrf.mxu0  ;;  %v7638_v49 = vpop.f32.mrf.mxu1 }
 0x300   : > { %v1269_v50 = vsel %vm1253_vm3, %v7638_v49, -inf  ;;  %v1266_v51 = vsel %vm1253_vm3, %v7636_v48, -inf }
 0x301   : > { %1270 = vmax.xlane.f32.xlu1 %v1269_v50  ;;  %1267 = vmax.xlane.f32.xlu0 %v1266_v51  ;;  %v5039_v52 = vpop.f32.mrf.mxu0  ;;  %v5074_v53 = vpop.f32.mrf.mxu1 }
 0x30a   : > { %v1256_v55 = vpop.xlane.xlu0 %1255 }
 0x30b   : > { %v7647_v56 = vmax.f32 %v7644_v54, %v1256_v55  ;;  %v8230_v54 = vld [vmem:[%s6827_s9 + $0x3b8] sm:$0xff] }
 0x30d   : > { %9621 = vst [vmem:[#allocation107_spill] sm:$0xff] %v7647_v56  ;;  %2127 = vst.msk [vmem:[#allocation3] sm:$0x1] %vm1454_vm4, %v7647_v56 }
 0x30e   : > { %v1259_v58 = vpop.xlane.xlu0 %1258 }
 0x30f   : > { %v7654_v59 = vmax.f32 %v7649_v57, %v1259_v58  ;;  %v8247_v57 = vld [vmem:[%s6827_s9 + $0x2a0] sm:$0xff] }
 0x311   : > { %9623 = vst [vmem:[#allocation109_spill] sm:$0xff] %v7654_v59  ;;  %2128 = vst.msk [vmem:[#allocation3 + $0x1] sm:$0x1] %vm1454_vm4, %v7654_v59 }
 0x312   : > { %1321 = vperm.xlu1 %6212, %v7654_v59   ;;  %v8250_v59 = vld [vmem:[%s6827_s9 + $0x3a8] sm:$0xff] }
 0x317   : > { %1312 = vperm.xlu0 %6211, %v7647_v56   ;;  %v8237_v56 = vld [vmem:[%s6827_s9 + $0x2a8] sm:$0xff] }
 0x33f   : > { %v7660_v60 = vpop.f32.mrf.mxu0  ;;  %v7662_v61 = vpop.f32.mrf.mxu1 }
 0x340   : > { %v1272_v62 = vsel %vm1253_vm3, %v7660_v60, -inf  ;;  %v1275_v63 = vsel %vm1253_vm3, %v7662_v61, -inf }
 0x341   : > { %1273 = vmax.xlane.f32.xlu1 %v1272_v62  ;;  %v5109_v0 = vpop.f32.mrf.mxu0  ;;  %v5144_v1 = vpop.f32.mrf.mxu1  ;;  %1276 = vmax.xlane.f32.xlu0 %v1275_v63  ;;  %v9649_v62 = vld [vmem:[#allocation42_spill] sm:$0xff]  ;;  %v9651_v63 = vld [vmem:[#allocation44_spill] sm:$0xff] }
 0x342   : > { %v9653_v0 = vld [vmem:[#allocation46_spill] sm:$0xff]  ;;  %v9654_v1 = vld [vmem:[#allocation45_spill] sm:$0xff] }
 0x34a   : > { %v1262_v3 = vpop.xlane.xlu1 %1261 }
 0x34b   : > { %v7671_v4 = vmax.f32 %v7668_v2, %v1262_v3  ;;  %v9655_v3 = vld [vmem:[#allocation48_spill] sm:$0xff]  ;;  %v8220_v2 = vld [vmem:[%s6827_s9 + $0x3c0] sm:$0xff] }
 0x34c   : > { %9722 = vst [vmem:[#allocation48_spill] sm:$0xff] %v8247_v57 }
 0x34d   : > { %9625 = vst [vmem:[#allocation111_spill] sm:$0xff] %v7671_v4  ;;  %2129 = vst.msk [vmem:[#allocation3 + $0x2] sm:$0x1] %vm1454_vm4, %v7671_v4 }
 0x34e   : > { %v1265_v6 = vpop.xlane.xlu1 %1264 }
 0x34f   : > { %v7678_v7 = vmax.f32 %v7673_v5, %v1265_v6  ;;  %v9656_v6 = vld [vmem:[#allocation47_spill] sm:$0xff]  ;;  %v8210_v5 = vld [vmem:[%s6827_s9 + $0x3c8] sm:$0xff] }
 0x351   : > { %9627 = vst [vmem:[#allocation113_spill] sm:$0xff] %v7678_v7  ;;  %2130 = vst.msk [vmem:[#allocation3 + $0x3] sm:$0x1] %vm1454_vm4, %v7678_v7 }
 0x352   : > { %1330 = vperm.xlu1 %6212, %v7671_v4   ;;  %v8227_v4 = vld [vmem:[%s6827_s9 + $0x2b0] sm:$0xff] }
 0x356   : > { %1339 = vperm.xlu1 %6212, %v7678_v7   ;;  %v8217_v7 = vld [vmem:[%s6827_s9 + $0x2b8] sm:$0xff] }
 0x38a   : > { %v1271_v9 = vpop.xlane.xlu1 %1270  ;;  %v1268_v38 = vpop.xlane.xlu0 %1267 }
 0x38b   : > { %v7691_v10 = vmax.f32 %v7686_v36, %v1271_v9  ;;  %v7694_v40 = vmax.f32 %v7688_v37, %v1268_v38  ;;  %v9658_v9 = vld [vmem:[#allocation49_spill] sm:$0xff]  ;;  %v9659_v38 = vld [vmem:[#allocation52_spill] sm:$0xff]  ;;  %v8190_v36 = vld [vmem:[%s6827_s9 + $0x3d8] sm:$0xff] }
 0x38c   : > { %v8200_v37 = vld [vmem:[%s6827_s9 + $0x3d0] sm:$0xff] }
 0x38d   : > { %9631 = vst [vmem:[#allocation117_spill] sm:$0xff] %v7691_v10  ;;  %9632 = vst [vmem:[#allocation118_spill] sm:$0xff] %v7694_v40  ;;  %1357 = vperm.xlu0 %6211, %v7691_v10   ;;  %1348 = vperm.xlu1 %6212, %v7694_v40  }
 0x38e   : > { %2132 = vst.msk [vmem:[#allocation3 + $0x5] sm:$0x1] %vm1454_vm4, %v7691_v10  ;;  %2131 = vst.msk [vmem:[#allocation3 + $0x4] sm:$0x1] %vm1454_vm4, %v7694_v40  ;;  %v1322_v45 = vpop.permute.xlu1 %1321  ;;  %v8197_v10 = vld [vmem:[%s6827_s9 + $0x2c8] sm:$0xff]  ;;  %v8207_v40 = vld [vmem:[%s6827_s9 + $0x2c0] sm:$0xff] }
 0x38f   : > { %v1327_v46 = vrot.slane %v1322_v45, %v7697_v44  ;;  %v9660_v45 = vld [vmem:[#allocation51_spill] sm:$0xff] }
 0x391   : > { %v1383_v47 = vsub.f32 %v7554_v35, %v1327_v46  ;;  %v9661_v46 = vld [vmem:[#allocation54_spill] sm:$0xff] }
 0x392   : > { %v1313_v50 = vpop.permute.xlu0 %1312 }
 0x393   : > { %v1392_v51 = vmul.f32 1.442695, %v1383_v47  ;;  %v1318_v52 = vrot.slane %v1313_v50, %v7697_v44  ;;  %v9662_v47 = vld [vmem:[#allocation53_spill] sm:$0xff]  ;;  %v9663_v50 = vld [vmem:[#allocation56_spill] sm:$0xff] }
 0x395   : > { %6213 = vpow2.f32 %v1392_v51  ;;  %v1382_v53 = vsub.f32 %v7552_v39, %v1318_v52  ;;  %v9664_v51 = vld [vmem:[#allocation55_spill] sm:$0xff]  ;;  %v9665_v52 = vld [vmem:[#allocation58_spill] sm:$0xff] }
 0x397   : > { %v1390_v55 = vmul.f32 1.442695, %v1382_v53  ;;  %v9666_v53 = vld [vmem:[#allocation57_spill] sm:$0xff] }
 0x399   : > { %6215 = vpow2.f32 %v1390_v55  ;;  %v9667_v55 = vld [vmem:[#allocation60_spill] sm:$0xff] }
 0x3a2   : > { %v7709_v58 = vpop.eup %6213 }
 0x3a3   : > { %9633 = vst [vmem:[#allocation119_spill] sm:$0xff] %v7709_v58  ;;  %5213 = vmatmul.mubr.f32.vlgmr.msra.gmra.mxu1 %v7709_v58  ;;  %v8287_v58 = vld [vmem:[%s6827_s9 + $0x280] sm:$0xff] }
 0x3a4   : > { %5251 = vmatpush3.msra.mxu1 %v7064_v12  ;;  %5282 = vmatprep.mubr.msk.f32.mxu1 %vm6560_vm2, %v6559_v42  ;;  %v9636_v12 = vld [vmem:[#allocation33_spill] sm:$0xff]  ;;  %9729 = vst [vmem:[#allocation53_spill] sm:$0xff] %v8287_v58 }
 0x3a5   : > { %5252 = vmatprep.subr.mxu1 %v6559_v42 }
 0x3a6   : > { %v7716_v35 = vpop.eup %6215  ;;  %5253 = vmatpush3.msra.mxu1 %v7074_v14  ;;  %v9638_v14 = vld [vmem:[#allocation34_spill] sm:$0xff] }
 0x3a7   : > { %9634 = vst [vmem:[#allocation120_spill] sm:$0xff] %v7716_v35  ;;  %5178 = vmatmul.mubr.f32.vlgmr.msra.gmra.mxu0 %v7716_v35  ;;  %5254 = vmatprep.subr.mxu1 %v6559_v42  ;;  %v8280_v35 = vld [vmem:[%s6827_s9 + $0x390] sm:$0xff] }
 0x3a8   : > { %5216 = vmatpush3.msra.mxu0 %v7061_v11  ;;  %5255 = vmatpush3.msra.mxu1 %v7088_v16  ;;  %v9635_v11 = vld [vmem:[#allocation35_spill] sm:$0xff]  ;;  %v9640_v16 = vld [vmem:[#allocation36_spill] sm:$0xff]  ;;  %9728 = vst [vmem:[#allocation54_spill] sm:$0xff] %v8280_v35 }
 0x3a9   : > { %5217 = vmatprep.subr.mxu0 %v6559_v42  ;;  %5256 = vmatprep.subr.mxu1 %v6559_v42 }
 0x3aa   : > { %5218 = vmatpush3.msra.mxu0 %v7071_v13  ;;  %5257 = vmatpush3.msra.mxu1 %v7098_v18  ;;  %v9637_v13 = vld [vmem:[#allocation37_spill] sm:$0xff]  ;;  %v9642_v18 = vld [vmem:[#allocation38_spill] sm:$0xff] }
 0x3ab   : > { %5219 = vmatprep.subr.mxu0 %v6559_v42  ;;  %5258 = vmatprep.subr.mxu1 %v6559_v42 }
 0x3ac   : > { %5220 = vmatpush3.msra.mxu0 %v7085_v15  ;;  %5259 = vmatpush3.msra.mxu1 %v7108_v20  ;;  %v9639_v15 = vld [vmem:[#allocation39_spill] sm:$0xff]  ;;  %v7783_v20 = vld [vmem:[#allocation3 + $0x6] sm:$0x1] }
 0x3ad   : > { %5221 = vmatprep.subr.mxu0 %v6559_v42  ;;  %5260 = vmatprep.subr.mxu1 %v6559_v42  ;;  %9644 = vst [vmem:[#allocation35_spill] sm:$0xff] %v7783_v20 }
 0x3ae   : > { %5222 = vmatpush3.msra.mxu0 %v7095_v17  ;;  %5261 = vmatpush3.msra.mxu1 %v7118_v22  ;;  %v9641_v17 = vld [vmem:[#allocation41_spill] sm:$0xff] }
 0x3af   : > { %5223 = vmatprep.subr.mxu0 %v6559_v42  ;;  %5262 = vmatprep.subr.mxu1 %v6559_v42 }
 0x3b0   : > { %5224 = vmatpush3.msra.mxu0 %v7105_v19  ;;  %5263 = vmatpush3.msra.mxu1 %v7128_v24  ;;  %v9643_v19 = vld [vmem:[#allocation40_spill] sm:$0xff] }
 0x3b1   : > { %5225 = vmatprep.subr.mxu0 %v6559_v42  ;;  %5264 = vmatprep.subr.mxu1 %v6559_v42 }
 0x3b2   : > { %5226 = vmatpush3.msra.mxu0 %v7115_v21  ;;  %5265 = vmatpush3.msra.mxu1 %v7138_v26  ;;  %v7785_v21 = vld [vmem:[#allocation3 + $0x7] sm:$0x1] }
 0x3b3   : > { %5227 = vmatprep.subr.mxu0 %v6559_v42  ;;  %5266 = vmatprep.subr.mxu1 %v6559_v42  ;;  %9645 = vst [vmem:[#allocation33_spill] sm:$0xff] %v7785_v21 }
 0x3b4   : > { %5228 = vmatpush3.msra.mxu0 %v7125_v23  ;;  %5267 = vmatpush3.msra.mxu1 %v7148_v28 }
 0x3b5   : > { %5229 = vmatprep.subr.mxu0 %v6559_v42  ;;  %5268 = vmatprep.subr.mxu1 %v6559_v42 }
 0x3b6   : > { %5230 = vmatpush3.msra.mxu0 %v7135_v25  ;;  %5269 = vmatpush3.msra.mxu1 %v7158_v30 }
 0x3b7   : > { %5231 = vmatprep.subr.mxu0 %v6559_v42  ;;  %5270 = vmatprep.subr.mxu1 %v6559_v42 }
 0x3b8   : > { %5232 = vmatpush3.msra.mxu0 %v7145_v27  ;;  %5271 = vmatpush3.msra.mxu1 %v7168_v32 }
 0x3b9   : > { %5233 = vmatprep.subr.mxu0 %v6559_v42  ;;  %5272 = vmatprep.subr.mxu1 %v6559_v42 }
 0x3ba   : > { %5234 = vmatpush3.msra.mxu0 %v7155_v29  ;;  %5273 = vmatpush3.msra.mxu1 %v7178_v34 }
 0x3bb   : > { %5235 = vmatprep.subr.mxu0 %v6559_v42  ;;  %5274 = vmatprep.subr.mxu1 %v6559_v42 }
 0x3bc   : > { %5236 = vmatpush3.msra.mxu0 %v7165_v31  ;;  %5275 = vmatpush3.msra.mxu1 %v9635_v11  ;;  %v9668_v11 = vld [vmem:[#allocation59_spill] sm:$0xff] }
 0x3bd   : > { %5237 = vmatprep.subr.mxu0 %v6559_v42  ;;  %5276 = vmatprep.subr.mxu1 %v6559_v42 }
 0x3be   : > { %5238 = vmatpush3.msra.mxu0 %v9636_v12  ;;  %5247 = vmatprep.mubr.msk.f32.mxu0 %vm6560_vm2, %v6559_v42  ;;  %v9669_v12 = vld [vmem:[#allocation62_spill] sm:$0xff] }
 0x3bf   : > { %5239 = vmatprep.subr.mxu0 %v6559_v42  ;;  %5277 = vmatpush3.msra.mxu1 %v9637_v13  ;;  %v9670_v13 = vld [vmem:[#allocation61_spill] sm:$0xff] }
 0x3c0   : > { %5240 = vmatpush3.msra.mxu0 %v9638_v14  ;;  %5278 = vmatprep.subr.mxu1 %v6559_v42  ;;  %v9671_v14 = vld [vmem:[#allocation64_spill] sm:$0xff] }
 0x3c1   : > { %5241 = vmatprep.subr.mxu0 %v6559_v42  ;;  %5279 = vmatpush3.msra.mxu1 %v9639_v15  ;;  %v9672_v15 = vld [vmem:[#allocation63_spill] sm:$0xff] }
 0x3c2   : > { %5242 = vmatpush3.msra.mxu0 %v9640_v16  ;;  %5280 = vmatprep.subr.mxu1 %v6559_v42  ;;  %v9673_v16 = vld [vmem:[#allocation66_spill] sm:$0xff] }
 0x3c3   : > { %5243 = vmatprep.subr.mxu0 %v6559_v42  ;;  %5281 = vmatpush3.msra.mxu1 %v9641_v17  ;;  %v9674_v17 = vld [vmem:[#allocation65_spill] sm:$0xff] }
 0x3c4   : > { %5244 = vmatpush3.msra.mxu0 %v9642_v18  ;;  %5320 = vmatprep.subr.mxu1 %v6559_v42  ;;  %v9675_v18 = vld [vmem:[#allocation68_spill] sm:$0xff] }
 0x3c5   : > { %5245 = vmatprep.subr.mxu0 %v6559_v42 }
 0x3c6   : > { %5246 = vmatpush3.msra.mxu0 %v9643_v19  ;;  %v9676_v19 = vld [vmem:[#allocation67_spill] sm:$0xff] }
 0x3c7   : > { %5285 = vmatprep.subr.mxu0 %v6559_v42 }
 0x3ca   : > { %v1274_v22 = vpop.xlane.xlu1 %1273  ;;  %v1277_v23 = vpop.xlane.xlu0 %1276 }
 0x3cb   : > { %v7788_v24 = vmax.f32 %v7783_v20, %v1274_v22  ;;  %v7791_v25 = vmax.f32 %v7785_v21, %v1277_v23  ;;  %v9677_v22 = vld [vmem:[#allocation70_spill] sm:$0xff]  ;;  %v9678_v23 = vld [vmem:[#allocation69_spill] sm:$0xff]  ;;  %v8170_v20 = vld [vmem:[%s6827_s9 + $0x3e8] sm:$0xff] }
 0x3cc   : > { %v8156_v21 = vld [vmem:[%s6827_s9 + $0x3f0] sm:$0xff] }
 0x3cd   : > { %9646 = vst [vmem:[#allocation37_spill] sm:$0xff] %v7788_v24  ;;  %9647 = vst [vmem:[#allocation34_spill] sm:$0xff] %v7791_v25  ;;  %1366 = vperm.xlu1 %6212, %v7788_v24  }
 0x3ce   : > { %2133 = vst.msk [vmem:[#allocation3 + $0x6] sm:$0x1] %vm1454_vm4, %v7788_v24  ;;  %2134 = vst.msk [vmem:[#allocation3 + $0x7] sm:$0x1] %vm1454_vm4, %v7791_v25  ;;  %v1331_v26 = vpop.permute.xlu1 %1330 }
 0x3cf   : > { %v1336_v27 = vrot.slane %v1331_v26, %v7697_v44  ;;  %v9679_v26 = vld [vmem:[#allocation72_spill] sm:$0xff] }
 0x3d1   : > { %v1384_v28 = vsub.f32 %v7628_v41, %v1336_v27  ;;  %1375 = vperm.xlu1 %6212, %v7791_v25   ;;  %v9680_v27 = vld [vmem:[#allocation71_spill] sm:$0xff] }
 0x3d2   : > { %v1340_v29 = vpop.permute.xlu1 %1339 }
 0x3d3   : > { %v1394_v30 = vmul.f32 1.442695, %v1384_v28  ;;  %v1345_v31 = vrot.slane %v1340_v29, %v7697_v44  ;;  %v9681_v28 = vld [vmem:[#allocation73_spill] sm:$0xff] }
 0x3d5   : > { %6217 = vpow2.f32 %v1394_v30  ;;  %v1385_v32 = vsub.f32 %v7630_v43, %v1345_v31  ;;  %v9652_v43 = vld [vmem:[#allocation43_spill] sm:$0xff] }
 0x3d7   : > { %v1396_v34 = vmul.f32 1.442695, %v1385_v32 }
 0x3d9   : > { %6219 = vpow2.f32 %v1396_v34 }
 0x3e2   : > { %v7803_v39 = vpop.eup %6217 }
 0x3e3   : > { %9648 = vst [vmem:[#allocation39_spill] sm:$0xff] %v7803_v39  ;;  %5248 = vmatmul.mubr.f32.vlgmr.msra.gmra.mxu0 %v7803_v39  ;;  %v8277_v39 = vld [vmem:[%s6827_s9 + $0x288] sm:$0xff] }
 0x3e4   : > { %5286 = vmatpush3.msra.mxu0 %v9649_v62  ;;  %5317 = vmatprep.mubr.msk.f32.mxu0 %vm6560_vm2, %v6559_v42  ;;  %9727 = vst [vmem:[#allocation51_spill] sm:$0xff] %v8277_v39 }
 0x3e5   : > { %5287 = vmatprep.subr.mxu0 %v6559_v42 }
 0x3e6   : > { %v7810_v41 = vpop.eup %6219  ;;  %5288 = vmatpush3.msra.mxu0 %v9651_v63 }
 0x3e7   : > { %9650 = vst [vmem:[#allocation36_spill] sm:$0xff] %v7810_v41  ;;  %5283 = vmatmul.mubr.f32.vlgmr.msra.gmra.mxu1 %v7810_v41  ;;  %5289 = vmatprep.subr.mxu0 %v6559_v42  ;;  %v8270_v41 = vld [vmem:[%s6827_s9 + $0x398] sm:$0xff] }
 0x3e8   : > { %5321 = vmatpush3.msra.mxu1 %v9652_v43  ;;  %5290 = vmatpush3.msra.mxu0 %v9653_v0  ;;  %9726 = vst [vmem:[#allocation52_spill] sm:$0xff] %v8270_v41 }
 0x3e9   : > { %5322 = vmatprep.subr.mxu1 %v6559_v42  ;;  %5291 = vmatprep.subr.mxu0 %v6559_v42 }
 0x3ea   : > { %5323 = vmatpush3.msra.mxu1 %v9654_v1  ;;  %5292 = vmatpush3.msra.mxu0 %v9655_v3  ;;  %v9684_v3 = vld [vmem:[#allocation75_spill] sm:$0xff] }
 0x3eb   : > { %5324 = vmatprep.subr.mxu1 %v6559_v42  ;;  %5293 = vmatprep.subr.mxu0 %v6559_v42 }
 0x3ec   : > { %5325 = vmatpush3.msra.mxu1 %v9656_v6  ;;  %5294 = vmatpush3.msra.mxu0 %v9657_v8  ;;  %v9685_v6 = vld [vmem:[#allocation74_spill] sm:$0xff]  ;;  %v9688_v8 = vld [vmem:[#allocation79_spill] sm:$0xff] }
 0x3ed   : > { %5326 = vmatprep.subr.mxu1 %v6559_v42  ;;  %5295 = vmatprep.subr.mxu0 %v6559_v42 }
 0x3ee   : > { %5327 = vmatpush3.msra.mxu1 %v9658_v9  ;;  %5296 = vmatpush3.msra.mxu0 %v9659_v38  ;;  %v9689_v9 = vld [vmem:[#allocation78_spill] sm:$0xff]  ;;  %v9690_v38 = vld [vmem:[#allocation81_spill] sm:$0xff] }
 0x3ef   : > { %5328 = vmatprep.subr.mxu1 %v6559_v42  ;;  %5297 = vmatprep.subr.mxu0 %v6559_v42 }
 0x3f0   : > { %5329 = vmatpush3.msra.mxu1 %v9660_v45  ;;  %5298 = vmatpush3.msra.mxu0 %v9661_v46  ;;  %v9691_v45 = vld [vmem:[#allocation80_spill] sm:$0xff]  ;;  %v9692_v46 = vld [vmem:[#allocation83_spill] sm:$0xff] }
 0x3f1   : > { %5330 = vmatprep.subr.mxu1 %v6559_v42  ;;  %5299 = vmatprep.subr.mxu0 %v6559_v42 }
 0x3f2   : > { %5331 = vmatpush3.msra.mxu1 %v9662_v47  ;;  %5300 = vmatpush3.msra.mxu0 %v9663_v50  ;;  %v9693_v47 = vld [vmem:[#allocation82_spill] sm:$0xff]  ;;  %v9694_v50 = vld [vmem:[#allocation85_spill] sm:$0xff] }
 0x3f3   : > { %5332 = vmatprep.subr.mxu1 %v6559_v42  ;;  %5301 = vmatprep.subr.mxu0 %v6559_v42 }
 0x3f4   : > { %5333 = vmatpush3.msra.mxu1 %v9664_v51  ;;  %5302 = vmatpush3.msra.mxu0 %v9665_v52  ;;  %v9695_v51 = vld [vmem:[#allocation84_spill] sm:$0xff]  ;;  %v9696_v52 = vld [vmem:[#allocation87_spill] sm:$0xff] }
 0x3f5   : > { %5334 = vmatprep.subr.mxu1 %v6559_v42  ;;  %5303 = vmatprep.subr.mxu0 %v6559_v42 }
 0x3f6   : > { %5335 = vmatpush3.msra.mxu1 %v9666_v53  ;;  %5304 = vmatpush3.msra.mxu0 %v9667_v55  ;;  %v9697_v53 = vld [vmem:[#allocation86_spill] sm:$0xff]  ;;  %v9698_v55 = vld [vmem:[#allocation89_spill] sm:$0xff] }
 0x3f7   : > { %5336 = vmatprep.subr.mxu1 %v6559_v42  ;;  %5305 = vmatprep.subr.mxu0 %v6559_v42 }
 0x3f8   : > { %5337 = vmatpush3.msra.mxu1 %v9668_v11  ;;  %5306 = vmatpush3.msra.mxu0 %v9669_v12  ;;  %v9699_v11 = vld [vmem:[#allocation88_spill] sm:$0xff]  ;;  %v9700_v12 = vld [vmem:[#allocation91_spill] sm:$0xff] }
 0x3f9   : > { %5338 = vmatprep.subr.mxu1 %v6559_v42  ;;  %5307 = vmatprep.subr.mxu0 %v6559_v42 }
 0x3fa   : > { %5339 = vmatpush3.msra.mxu1 %v9670_v13  ;;  %5308 = vmatpush3.msra.mxu0 %v9671_v14  ;;  %v9701_v13 = vld [vmem:[#allocation90_spill] sm:$0xff]  ;;  %v9702_v14 = vld [vmem:[#allocation93_spill] sm:$0xff] }
 0x3fb   : > { %5340 = vmatprep.subr.mxu1 %v6559_v42  ;;  %5309 = vmatprep.subr.mxu0 %v6559_v42 }
 0x3fc   : > { %5341 = vmatpush3.msra.mxu1 %v9672_v15  ;;  %5310 = vmatpush3.msra.mxu0 %v9673_v16  ;;  %v9703_v15 = vld [vmem:[#allocation92_spill] sm:$0xff]  ;;  %v9704_v16 = vld [vmem:[#allocation95_spill] sm:$0xff] }
 0x3fd   : > { %5342 = vmatprep.subr.mxu1 %v6559_v42  ;;  %5311 = vmatprep.subr.mxu0 %v6559_v42 }
 0x3fe   : > { %5343 = vmatpush3.msra.mxu1 %v9674_v17  ;;  %5312 = vmatpush3.msra.mxu0 %v9675_v18  ;;  %v9705_v17 = vld [vmem:[#allocation94_spill] sm:$0xff]  ;;  %v9706_v18 = vld [vmem:[#allocation97_spill] sm:$0xff] }
 0x3ff   : > { %5344 = vmatprep.subr.mxu1 %v6559_v42  ;;  %5313 = vmatprep.subr.mxu0 %v6559_v42 }
 0x400   : > { %5345 = vmatpush3.msra.mxu1 %v9676_v19  ;;  %5314 = vmatpush3.msra.mxu0 %v9677_v22  ;;  %v9707_v19 = vld [vmem:[#allocation96_spill] sm:$0xff]  ;;  %v9708_v22 = vld [vmem:[#allocation99_spill] sm:$0xff] }
 0x401   : > { %5346 = vmatprep.subr.mxu1 %v6559_v42  ;;  %5315 = vmatprep.subr.mxu0 %v6559_v42 }
 0x402   : > { %5347 = vmatpush3.msra.mxu1 %v9678_v23  ;;  %5316 = vmatpush3.msra.mxu0 %v9679_v26  ;;  %v9709_v23 = vld [vmem:[#allocation98_spill] sm:$0xff]  ;;  %v9710_v26 = vld [vmem:[#allocation101_spill] sm:$0xff] }
 0x403   : > { %5348 = vmatprep.subr.mxu1 %v6559_v42  ;;  %5352 = vmatprep.mubr.msk.f32.mxu1 %vm6560_vm2, %v6559_v42 }
 0x404   : > { %5349 = vmatpush3.msra.mxu1 %v9680_v27  ;;  %5355 = vmatprep.subr.mxu0 %v6559_v42  ;;  %v9711_v27 = vld [vmem:[#allocation100_spill] sm:$0xff] }
 0x405   : > { %5350 = vmatprep.subr.mxu1 %v6559_v42 }
 0x406   : > { %5351 = vmatpush3.msra.mxu1 %v9681_v28  ;;  %v9712_v28 = vld [vmem:[#allocation102_spill] sm:$0xff] }
 0x407   : > { %5390 = vmatprep.subr.mxu1 %v6559_v42 }
 0x408   : > { %v1358_v29 = vpop.permute.xlu0 %1357  ;;  %v1349_v30 = vpop.permute.xlu1 %1348 }
 0x409   : > { %v1363_v31 = vrot.slane %v1358_v29, %v7697_v44  ;;  %v1354_v32 = vrot.slane %v1349_v30, %v7697_v44  ;;  %v9713_v29 = vld [vmem:[#allocation103_spill] sm:$0xff]  ;;  %v9714_v30 = vld [vmem:[#allocation104_spill] sm:$0xff] }
 0x40b   : > { %v1387_v34 = vsub.f32 %v7638_v49, %v1363_v31  ;;  %v1386_v62 = vsub.f32 %v7636_v48, %v1354_v32  ;;  %v9686_v48 = vld [vmem:[#allocation77_spill] sm:$0xff]  ;;  %v9687_v49 = vld [vmem:[#allocation76_spill] sm:$0xff] }
 0x40c   : > { %v9715_v31 = vld [vmem:[#allocation105_spill] sm:$0xff] }
 0x40d   : > { %v1400_v63 = vmul.f32 1.442695, %v1387_v34  ;;  %v1398_v43 = vmul.f32 1.442695, %v1386_v62 }
 0x40f   : > { %6221 = vpow2.f32 %v1400_v63 }
 0x410   : > { %6223 = vpow2.f32 %v1398_v43 }
 0x41c   : > { %v7881_v0 = vpop.eup %6221 }
 0x41d   : > { %9682 = vst [vmem:[#allocation41_spill] sm:$0xff] %v7881_v0  ;;  %v7883_v1 = vpop.eup %6223  ;;  %5353 = vmatmul.mubr.f32.vlgmr.msra.gmra.mxu1 %v7881_v0  ;;  %v8260_v0 = vld [vmem:[%s6827_s9 + $0x3a0] sm:$0xff] }
 0x41e   : > { %9683 = vst [vmem:[#allocation38_spill] sm:$0xff] %v7883_v1  ;;  %5318 = vmatmul.mubr.f32.vlgmr.msra.gmra.mxu0 %v7883_v1  ;;  %5391 = vmatpush3.msra.mxu1 %v9684_v3  ;;  %9724 = vst [vmem:[#allocation50_spill] sm:$0xff] %v8260_v0  ;;  %v8267_v1 = vld [vmem:[%s6827_s9 + $0x290] sm:$0xff] }
 0x41f   : > { %5356 = vmatpush3.msra.mxu0 %v9685_v6  ;;  %5392 = vmatprep.subr.mxu1 %v6559_v42  ;;  %9725 = vst [vmem:[#allocation49_spill] sm:$0xff] %v8267_v1 }
 0x420   : > { %5357 = vmatprep.subr.mxu0 %v6559_v42  ;;  %5393 = vmatpush3.msra.mxu1 %v9686_v48 }
 0x421   : > { %5358 = vmatpush3.msra.mxu0 %v9687_v49  ;;  %5394 = vmatprep.subr.mxu1 %v6559_v42  ;;  %v7960_v49 = vld [vmem:[%s6827_s9 + $0xf8] sm:$0xff] }
 0x422   : > { %5359 = vmatprep.subr.mxu0 %v6559_v42  ;;  %5395 = vmatpush3.msra.mxu1 %v9688_v8 }
 0x423   : > { %5360 = vmatpush3.msra.mxu0 %v9689_v9  ;;  %5396 = vmatprep.subr.mxu1 %v6559_v42 }
 0x424   : > { %5361 = vmatprep.subr.mxu0 %v6559_v42  ;;  %5397 = vmatpush3.msra.mxu1 %v9690_v38 }
 0x425   : > { %5362 = vmatpush3.msra.mxu0 %v9691_v45  ;;  %5398 = vmatprep.subr.mxu1 %v6559_v42  ;;  %v7985_v45 = vld [vmem:[%s6827_s9 + $0xe8] sm:$0xff] }
 0x426   : > { %5363 = vmatprep.subr.mxu0 %v6559_v42  ;;  %5399 = vmatpush3.msra.mxu1 %v9692_v46  ;;  %v7988_v46 = vld [vmem:[%s6827_s9 + $0x1f0] sm:$0xff] }
 0x427   : > { %5364 = vmatpush3.msra.mxu0 %v9693_v47  ;;  %5400 = vmatprep.subr.mxu1 %v6559_v42 }
 0x428   : > { %5365 = vmatprep.subr.mxu0 %v6559_v42  ;;  %5401 = vmatpush3.msra.mxu1 %v9694_v50 }
 0x429   : > { %5366 = vmatpush3.msra.mxu0 %v9695_v51  ;;  %5402 = vmatprep.subr.mxu1 %v6559_v42  ;;  %v7999_v51 = vld [vmem:[%s6827_s9 + $0xe0] sm:$0xff] }
 0x42a   : > { %5367 = vmatprep.subr.mxu0 %v6559_v42  ;;  %5403 = vmatpush3.msra.mxu1 %v9696_v52  ;;  %v8002_v52 = vld [vmem:[%s6827_s9 + $0x1e8] sm:$0xff] }
 0x42b   : > { %5368 = vmatpush3.msra.mxu0 %v9697_v53  ;;  %5404 = vmatprep.subr.mxu1 %v6559_v42 }
 0x42c   : > { %5369 = vmatprep.subr.mxu0 %v6559_v42  ;;  %5405 = vmatpush3.msra.mxu1 %v9698_v55  ;;  %v8009_v55 = vld [vmem:[%s6827_s9 + $0xd8] sm:$0xff] }
 0x42d   : > { %5370 = vmatpush3.msra.mxu0 %v9699_v11  ;;  %5406 = vmatprep.subr.mxu1 %v6559_v42  ;;  %v8012_v11 = vld [vmem:[%s6827_s9 + $0x1e0] sm:$0xff] }
 0x42e   : > { %5371 = vmatprep.subr.mxu0 %v6559_v42  ;;  %5407 = vmatpush3.msra.mxu1 %v9700_v12  ;;  %v8019_v12 = vld [vmem:[%s6827_s9 + $0xd0] sm:$0xff] }
 0x42f   : > { %5372 = vmatpush3.msra.mxu0 %v9701_v13  ;;  %5408 = vmatprep.subr.mxu1 %v6559_v42  ;;  %v8022_v13 = vld [vmem:[%s6827_s9 + $0x1d8] sm:$0xff] }
 0x430   : > { %5373 = vmatprep.subr.mxu0 %v6559_v42  ;;  %5409 = vmatpush3.msra.mxu1 %v9702_v14  ;;  %v8029_v14 = vld [vmem:[%s6827_s9 + $0xc8] sm:$0xff] }
 0x431   : > { %5374 = vmatpush3.msra.mxu0 %v9703_v15  ;;  %5410 = vmatprep.subr.mxu1 %v6559_v42  ;;  %v8032_v15 = vld [vmem:[%s6827_s9 + $0x1d0] sm:$0xff] }
 0x432   : > { %5375 = vmatprep.subr.mxu0 %v6559_v42  ;;  %5411 = vmatpush3.msra.mxu1 %v9704_v16  ;;  %v8039_v16 = vld [vmem:[%s6827_s9 + $0xc0] sm:$0xff] }
 0x433   : > { %5376 = vmatpush3.msra.mxu0 %v9705_v17  ;;  %5412 = vmatprep.subr.mxu1 %v6559_v42  ;;  %v8042_v17 = vld [vmem:[%s6827_s9 + $0x1c8] sm:$0xff] }
 0x434   : > { %5377 = vmatprep.subr.mxu0 %v6559_v42  ;;  %5413 = vmatpush3.msra.mxu1 %v9706_v18  ;;  %v8049_v18 = vld [vmem:[%s6827_s9 + $0xb8] sm:$0xff] }
 0x435   : > { %5378 = vmatpush3.msra.mxu0 %v9707_v19  ;;  %5414 = vmatprep.subr.mxu1 %v6559_v42  ;;  %v8052_v19 = vld [vmem:[%s6827_s9 + $0x1c0] sm:$0xff] }
 0x436   : > { %5379 = vmatprep.subr.mxu0 %v6559_v42  ;;  %5415 = vmatpush3.msra.mxu1 %v9708_v22  ;;  %v8059_v22 = vld [vmem:[%s6827_s9 + $0xb0] sm:$0xff] }
 0x437   : > { %5380 = vmatpush3.msra.mxu0 %v9709_v23  ;;  %5416 = vmatprep.subr.mxu1 %v6559_v42  ;;  %v8062_v23 = vld [vmem:[%s6827_s9 + $0x1b8] sm:$0xff] }
 0x438   : > { %5381 = vmatprep.subr.mxu0 %v6559_v42  ;;  %5417 = vmatpush3.msra.mxu1 %v9710_v26  ;;  %v8069_v26 = vld [vmem:[%s6827_s9 + $0xa8] sm:$0xff] }
 0x439   : > { %5382 = vmatpush3.msra.mxu0 %v9711_v27  ;;  %5387 = vmatprep.mubr.msk.f32.mxu0 %vm6560_vm2, %v6559_v42  ;;  %v8072_v27 = vld [vmem:[%s6827_s9 + $0x1b0] sm:$0xff] }
 0x43a   : > { %5383 = vmatprep.subr.mxu0 %v6559_v42  ;;  %5418 = vmatprep.subr.mxu1 %v6559_v42 }
 0x43b   : > { %5384 = vmatpush3.msra.mxu0 %v9712_v28  ;;  %5419 = vmatpush3.msra.mxu1 %v9713_v29  ;;  %v8079_v28 = vld [vmem:[%s6827_s9 + $0xa0] sm:$0xff]  ;;  %v8082_v29 = vld [vmem:[%s6827_s9 + $0x1a8] sm:$0xff] }
 0x43c   : > { %5385 = vmatprep.subr.mxu0 %v6559_v42  ;;  %5420 = vmatprep.subr.mxu1 %v6559_v42 }
 0x43d   : > { %5386 = vmatpush3.msra.mxu0 %v9714_v30  ;;  %5421 = vmatpush3.msra.mxu1 %v9715_v31  ;;  %v8089_v30 = vld [vmem:[%s6827_s9 + $0x98] sm:$0xff]  ;;  %v8092_v31 = vld [vmem:[%s6827_s9 + $0x1a0] sm:$0xff] }
 0x43e   : > { %5425 = vmatprep.subr.mxu0 %v6559_v42  ;;  %5422 = vmatprep.mubr.msk.f32.mxu1 %vm6560_vm2, %v6559_v42 }
 0x43f   : > { %5460 = vmatprep.subr.mxu1 %v6559_v42 }
 0x448   : > { %v1367_v32 = vpop.permute.xlu1 %1366 }
 0x449   : > { %v1372_v34 = vrot.slane %v1367_v32, %v7697_v44  ;;  %v8099_v32 = vld [vmem:[%s6827_s9 + $0x90] sm:$0xff] }
 0x44b   : > { %v1388_v62 = vsub.f32 %v7660_v60, %v1372_v34  ;;  %v7970_v60 = vld [vmem:[%s6827_s9 + $0xf0] sm:$0xff]  ;;  %v8102_v34 = vld [vmem:[%s6827_s9 + $0x198] sm:$0xff] }
 0x44c   : > { %v1376_v63 = vpop.permute.xlu1 %1375 }
 0x44d   : > { %v1402_v43 = vmul.f32 1.442695, %v1388_v62  ;;  %v1381_v3 = vrot.slane %v1376_v63, %v7697_v44  ;;  %v8109_v62 = vld [vmem:[%s6827_s9 + $0x88] sm:$0xff]  ;;  %v8112_v63 = vld [vmem:[%s6827_s9 + $0x190] sm:$0xff] }
 0x44f   : > { %6225 = vpow2.f32 %v1402_v43  ;;  %v1389_v6 = vsub.f32 %v7662_v61, %v1381_v3  ;;  %v7973_v61 = vld [vmem:[%s6827_s9 + $0x1f8] sm:$0xff]  ;;  %v8119_v43 = vld [vmem:[%s6827_s9 + $0x80] sm:$0xff]  ;;  %v8122_v3 = vld [vmem:[%s6827_s9 + $0x188] sm:$0xff] }
 0x451   : > { %v1404_v48 = vmul.f32 1.442695, %v1389_v6  ;;  %v8129_v6 = vld [vmem:[%s6827_s9 + $0x180] sm:$0xff] }
 0x453   : > { %6227 = vpow2.f32 %v1404_v48  ;;  %v8132_v48 = vld [vmem:[%s6827_s9 + $0x2f8] sm:$0xff] }
 0x45c   : > { %v7962_v8 = vpop.eup %6225 }
 0x45d   : > { %9716 = vst [vmem:[#allocation40_spill] sm:$0xff] %v7962_v8  ;;  %5388 = vmatmul.mubr.f32.vlgmr.msra.gmra.mxu0 %v7962_v8  ;;  %v8257_v8 = vld [vmem:[%s6827_s9 + $0x298] sm:$0xff] }
 0x45e   : > { %5426 = vmatpush3.xpose.msra.mxu0 %v7960_v49  ;;  %5457 = vmatprep.mubr.msk.f32.mxu0 %vm6560_vm2, %v6559_v42  ;;  %9723 = vst [vmem:[#allocation47_spill] sm:$0xff] %v8257_v8 }
 0x45f   : > { %5427 = vmatprep.subr.mxu0 %v6559_v42 }
 0x460   : > { %v7975_v9 = vpop.eup %6227 }
 0x461   : > { %9717 = vst [vmem:[#allocation42_spill] sm:$0xff] %v7975_v9  ;;  %5423 = vmatmul.mubr.f32.vlgmr.msra.gmra.mxu1 %v7975_v9  ;;  %v8240_v9 = vld [vmem:[%s6827_s9 + $0x3b0] sm:$0xff] }
 0x462   : > { %5428 = vmatpush3.xpose.msra.mxu0 %v7970_v60  ;;  %5461 = vmatpush3.xpose.msra.mxu1 %v7973_v61 }
 0x463   : > { %v7980_v38 = vpop.f32.mrf.mxu1  ;;  %5429 = vmatprep.subr.mxu0 %v6559_v42  ;;  %5462 = vmatprep.subr.mxu1 %v6559_v42 }
 0x464   : > { %9718 = vst [vmem:[#allocation44_spill] sm:$0xff] %v7980_v38  ;;  %5492 = vmatprep.mubr.msk.f32.mxu1 %vm6560_vm2, %v6559_v42  ;;  %v8153_v38 = vld [vmem:[%s6827_s9 + $0x2e8] sm:$0xff] }
 0x465   : > { %v5214_v47 = vpop.f32.mrf.mxu1 }
 0x466   : > { %5430 = vmatpush3.xpose.msra.mxu0 %v7985_v45  ;;  %5463 = vmatpush3.xpose.msra.mxu1 %v7988_v46  ;;  %v6277_v47 = vld [vmem:[#allocation2] sm:$0x1] }
 0x467   : > { %v7994_v50 = vpop.f32.mrf.mxu0  ;;  %5431 = vmatprep.subr.mxu0 %v6559_v42  ;;  %5464 = vmatprep.subr.mxu1 %v6559_v42 }
 0x468   : > { %9719 = vst [vmem:[#allocation43_spill] sm:$0xff] %v7994_v50  ;;  %v6278_v50 = vld [vmem:[#allocation2 + $0x1] sm:$0x1] }
 0x469   : > { %v5179_v53 = vpop.f32.mrf.mxu0 }
 0x46a   : > { %5432 = vmatpush3.xpose.msra.mxu0 %v7999_v51  ;;  %5465 = vmatpush3.xpose.msra.mxu1 %v8002_v52  ;;  %v8139_v53 = vld [vmem:[%s6827_s9 + $0x2f0] sm:$0xff] }
 0x46b   : > { %5433 = vmatprep.subr.mxu0 %v6559_v42  ;;  %5466 = vmatprep.subr.mxu1 %v6559_v42 }
 0x46e   : > { %5434 = vmatpush3.xpose.msra.mxu0 %v8009_v55  ;;  %5467 = vmatpush3.xpose.msra.mxu1 %v8012_v11 }
 0x46f   : > { %5435 = vmatprep.subr.mxu0 %v6559_v42  ;;  %5468 = vmatprep.subr.mxu1 %v6559_v42 }
 0x472   : > { %5436 = vmatpush3.xpose.msra.mxu0 %v8019_v12  ;;  %5469 = vmatpush3.xpose.msra.mxu1 %v8022_v13 }
 0x473   : > { %5437 = vmatprep.subr.mxu0 %v6559_v42  ;;  %5470 = vmatprep.subr.mxu1 %v6559_v42 }
 0x476   : > { %5438 = vmatpush3.xpose.msra.mxu0 %v8029_v14  ;;  %5471 = vmatpush3.xpose.msra.mxu1 %v8032_v15 }
 0x477   : > { %5439 = vmatprep.subr.mxu0 %v6559_v42  ;;  %5472 = vmatprep.subr.mxu1 %v6559_v42 }
 0x47a   : > { %5440 = vmatpush3.xpose.msra.mxu0 %v8039_v16  ;;  %5473 = vmatpush3.xpose.msra.mxu1 %v8042_v17 }
 0x47b   : > { %5441 = vmatprep.subr.mxu0 %v6559_v42  ;;  %5474 = vmatprep.subr.mxu1 %v6559_v42 }
 0x47e   : > { %5442 = vmatpush3.xpose.msra.mxu0 %v8049_v18  ;;  %5475 = vmatpush3.xpose.msra.mxu1 %v8052_v19 }
 0x47f   : > { %5443 = vmatprep.subr.mxu0 %v6559_v42  ;;  %5476 = vmatprep.subr.mxu1 %v6559_v42 }
 0x482   : > { %5444 = vmatpush3.xpose.msra.mxu0 %v8059_v22  ;;  %5477 = vmatpush3.xpose.msra.mxu1 %v8062_v23 }
 0x483   : > { %5445 = vmatprep.subr.mxu0 %v6559_v42  ;;  %5478 = vmatprep.subr.mxu1 %v6559_v42 }
 0x486   : > { %5446 = vmatpush3.xpose.msra.mxu0 %v8069_v26  ;;  %5479 = vmatpush3.xpose.msra.mxu1 %v8072_v27 }
 0x487   : > { %5447 = vmatprep.subr.mxu0 %v6559_v42  ;;  %5480 = vmatprep.subr.mxu1 %v6559_v42 }
 0x48a   : > { %5448 = vmatpush3.xpose.msra.mxu0 %v8079_v28  ;;  %5481 = vmatpush3.xpose.msra.mxu1 %v8082_v29 }
 0x48b   : > { %5449 = vmatprep.subr.mxu0 %v6559_v42  ;;  %5482 = vmatprep.subr.mxu1 %v6559_v42 }
 0x48e   : > { %5450 = vmatpush3.xpose.msra.mxu0 %v8089_v30  ;;  %5483 = vmatpush3.xpose.msra.mxu1 %v8092_v31 }
 0x48f   : > { %5451 = vmatprep.subr.mxu0 %v6559_v42  ;;  %5484 = vmatprep.subr.mxu1 %v6559_v42 }
 0x492   : > { %5452 = vmatpush3.xpose.msra.mxu0 %v8099_v32  ;;  %5485 = vmatpush3.xpose.msra.mxu1 %v8102_v34 }
 0x493   : > { %5453 = vmatprep.subr.mxu0 %v6559_v42  ;;  %5486 = vmatprep.subr.mxu1 %v6559_v42 }
 0x496   : > { %5454 = vmatpush3.xpose.msra.mxu0 %v8109_v62  ;;  %5487 = vmatpush3.xpose.msra.mxu1 %v8112_v63 }
 0x497   : > { %5455 = vmatprep.subr.mxu0 %v6559_v42  ;;  %5488 = vmatprep.subr.mxu1 %v6559_v42 }
 0x49a   : > { %5456 = vmatpush3.xpose.msra.mxu0 %v8119_v43  ;;  %5489 = vmatpush3.xpose.msra.mxu1 %v8122_v3 }
 0x49b   : > { %5490 = vmatprep.subr.mxu1 %v6559_v42  ;;  %5495 = vmatprep.subr.mxu0 %v6559_v42 }
 0x49d   : > { %5458 = vmatmul.mubr.f32.vlgmr.msra.gmra.mxu0 %v6277_v47 }
 0x49e   : > { %5491 = vmatpush3.xpose.msra.mxu1 %v8129_v6  ;;  %5496 = vmatpush3.xpose.msra.mxu0 %v8132_v48 }
 0x49f   : > { %5497 = vmatprep.subr.mxu0 %v6559_v42  ;;  %5530 = vmatprep.subr.mxu1 %v6559_v42 }
 0x4a0   : > { %5527 = vmatprep.mubr.msk.f32.mxu0 %vm6560_vm2, %v6559_v42 }
 0x4a1   : > { %5493 = vmatmul.mubr.f32.vlgmr.msra.gmra.mxu1 %v6278_v50 }
 0x4a2   : > { %5498 = vmatpush3.xpose.msra.mxu0 %v8139_v53  ;;  %5531 = vmatpush3.xpose.msra.mxu1 %v8142_v33 }
 0x4a3   : > { %v8148_v47 = vpop.f32.mrf.mxu0  ;;  %5499 = vmatprep.subr.mxu0 %v6559_v42  ;;  %5532 = vmatprep.subr.mxu1 %v6559_v42 }
 0x4a4   : > { %9720 = vst [vmem:[#allocation46_spill] sm:$0xff] %v8148_v47  ;;  %5562 = vmatprep.mubr.msk.f32.mxu1 %vm6560_vm2, %v6559_v42  ;;  %v8167_v47 = vld [vmem:[%s6827_s9 + $0x2e0] sm:$0xff] }
 0x4a5   : > { %v5249_v50 = vpop.f32.mrf.mxu0 }
 0x4a6   : > { %5500 = vmatpush3.xpose.msra.mxu0 %v8153_v38  ;;  %5533 = vmatpush3.xpose.msra.mxu1 %v8156_v21  ;;  %v8177_v50 = vld [vmem:[%s6827_s9 + $0x2d8] sm:$0xff] }
 0x4a7   : > { %v8162_v25 = vpop.f32.mrf.mxu1  ;;  %5501 = vmatprep.subr.mxu0 %v6559_v42  ;;  %5534 = vmatprep.subr.mxu1 %v6559_v42 }
 0x4a8   : > { %9721 = vst [vmem:[#allocation45_spill] sm:$0xff] %v8162_v25  ;;  %v8180_v25 = vld [vmem:[%s6827_s9 + $0x3e0] sm:$0xff] }
 0x4a9   : > { %v5284_v24 = vpop.f32.mrf.mxu1 }
 0x4aa   : > { %5502 = vmatpush3.xpose.msra.mxu0 %v8167_v47  ;;  %5535 = vmatpush3.xpose.msra.mxu1 %v8170_v20  ;;  %v8187_v24 = vld [vmem:[%s6827_s9 + $0x2d0] sm:$0xff] }
 0x4ab   : > { %5503 = vmatprep.subr.mxu0 %v6559_v42  ;;  %5536 = vmatprep.subr.mxu1 %v6559_v42 }
 0x4ae   : > { %5504 = vmatpush3.xpose.msra.mxu0 %v8177_v50  ;;  %5537 = vmatpush3.xpose.msra.mxu1 %v8180_v25 }
 0x4af   : > { %5505 = vmatprep.subr.mxu0 %v6559_v42  ;;  %5538 = vmatprep.subr.mxu1 %v6559_v42 }
 0x4b2   : > { %5506 = vmatpush3.xpose.msra.mxu0 %v8187_v24  ;;  %5539 = vmatpush3.xpose.msra.mxu1 %v8190_v36 }
 0x4b3   : > { %5507 = vmatprep.subr.mxu0 %v6559_v42  ;;  %5540 = vmatprep.subr.mxu1 %v6559_v42 }
 0x4b6   : > { %5508 = vmatpush3.xpose.msra.mxu0 %v8197_v10  ;;  %5541 = vmatpush3.xpose.msra.mxu1 %v8200_v37 }
 0x4b7   : > { %5509 = vmatprep.subr.mxu0 %v6559_v42  ;;  %5542 = vmatprep.subr.mxu1 %v6559_v42 }
 0x4ba   : > { %5510 = vmatpush3.xpose.msra.mxu0 %v8207_v40  ;;  %5543 = vmatpush3.xpose.msra.mxu1 %v8210_v5 }
 0x4bb   : > { %5511 = vmatprep.subr.mxu0 %v6559_v42  ;;  %5544 = vmatprep.subr.mxu1 %v6559_v42 }
 0x4be   : > { %5512 = vmatpush3.xpose.msra.mxu0 %v8217_v7  ;;  %5545 = vmatpush3.xpose.msra.mxu1 %v8220_v2 }
 0x4bf   : > { %5513 = vmatprep.subr.mxu0 %v6559_v42  ;;  %5546 = vmatprep.subr.mxu1 %v6559_v42 }
 0x4c2   : > { %5514 = vmatpush3.xpose.msra.mxu0 %v8227_v4  ;;  %5547 = vmatpush3.xpose.msra.mxu1 %v8230_v54 }
 0x4c3   : > { %5515 = vmatprep.subr.mxu0 %v6559_v42  ;;  %5548 = vmatprep.subr.mxu1 %v6559_v42 }
 0x4c6   : > { %5516 = vmatpush3.xpose.msra.mxu0 %v8237_v56  ;;  %5549 = vmatpush3.xpose.msra.mxu1 %v8240_v9 }
 0x4c7   : > { %5517 = vmatprep.subr.mxu0 %v6559_v42  ;;  %5550 = vmatprep.subr.mxu1 %v6559_v42 }
 0x4ca   : > { %5518 = vmatpush3.xpose.msra.mxu0 %v8247_v57  ;;  %5551 = vmatpush3.xpose.msra.mxu1 %v8250_v59 }
 0x4cb   : > { %5519 = vmatprep.subr.mxu0 %v6559_v42  ;;  %5552 = vmatprep.subr.mxu1 %v6559_v42 }
 0x4ce   : > { %5520 = vmatpush3.xpose.msra.mxu0 %v8257_v8  ;;  %5553 = vmatpush3.xpose.msra.mxu1 %v8260_v0  ;;  %v8300_v8 = vld [vmem:[%s6827_s9 + $0x4f8] sm:$0xff] }
 0x4cf   : > { %5521 = vmatprep.subr.mxu0 %v6559_v42  ;;  %5554 = vmatprep.subr.mxu1 %v6559_v42  ;;  %9731 = vst [vmem:[#allocation55_spill] sm:$0xff] %v8300_v8  ;;  %v8314_v0 = vld [vmem:[%s6827_s9 + $0x5f8] sm:$0xff] }
 0x4d0   : > { %9735 = vst [vmem:[#allocation59_spill] sm:$0xff] %v8314_v0 }
 0x4d2   : > { %5522 = vmatpush3.xpose.msra.mxu0 %v8267_v1  ;;  %5555 = vmatpush3.xpose.msra.mxu1 %v8270_v41  ;;  %v8290_v1 = vld [vmem:[%s6827_s9 + $0x388] sm:$0xff] }
 0x4d3   : > { %5523 = vmatprep.subr.mxu0 %v6559_v42  ;;  %5556 = vmatprep.subr.mxu1 %v6559_v42  ;;  %9730 = vst [vmem:[#allocation56_spill] sm:$0xff] %v8290_v1 }
 0x4d6   : > { %5524 = vmatpush3.xpose.msra.mxu0 %v8277_v39  ;;  %5557 = vmatpush3.xpose.msra.mxu1 %v8280_v35  ;;  %v8297_v39 = vld [vmem:[%s6827_s9 + $0x380] sm:$0xff]  ;;  %v6279_v35 = vld [vmem:[#allocation2 + $0x2] sm:$0x1] }
 0x4d7   : > { %5525 = vmatprep.subr.mxu0 %v6559_v42  ;;  %5558 = vmatprep.subr.mxu1 %v6559_v42 }
 0x4da   : > { %5526 = vmatpush3.xpose.msra.mxu0 %v8287_v58  ;;  %5559 = vmatpush3.xpose.msra.mxu1 %v8290_v1  ;;  %v8311_v1 = vld [vmem:[%s6827_s9 + $0x4f0] sm:$0xff] }
 0x4db   : > { %5560 = vmatprep.subr.mxu1 %v6559_v42  ;;  %5565 = vmatprep.subr.mxu0 %v6559_v42  ;;  %9734 = vst [vmem:[#allocation60_spill] sm:$0xff] %v8311_v1 }
 0x4dd   : > { %5528 = vmatmul.mubr.f32.vlgmr.msra.gmra.mxu0 %v6279_v35  ;;  %v8302_v41 = vpop.f32.mrf.mxu1 }
 0x4de   : > { %9732 = vst [vmem:[#allocation58_spill] sm:$0xff] %v8302_v41  ;;  %v8304_v57 = vpop.f32.mrf.mxu0  ;;  %5561 = vmatpush3.xpose.msra.mxu1 %v8297_v39  ;;  %5566 = vmatpush3.xpose.msra.mxu0 %v8300_v8  ;;  %v6280_v41 = vld [vmem:[#allocation2 + $0x3] sm:$0x1]  ;;  %v8358_v8 = vld [vmem:[%s6827_s9 + $0x5d8] sm:$0xff] }
 0x4df   : > { %9733 = vst [vmem:[#allocation57_spill] sm:$0xff] %v8304_v57  ;;  %v5354_v58 = vpop.f32.mrf.mxu1  ;;  %5567 = vmatprep.subr.mxu0 %v6559_v42  ;;  %5600 = vmatprep.subr.mxu1 %v6559_v42  ;;  %v8326_v57 = vld [vmem:[%s6827_s9 + $0x5f0] sm:$0xff]  ;;  %9743 = vst [vmem:[#allocation67_spill] sm:$0xff] %v8358_v8 }
 0x4e0   : > { %v5319_v35 = vpop.f32.mrf.mxu0  ;;  %5597 = vmatprep.mubr.msk.f32.mxu0 %vm6560_vm2, %v6559_v42  ;;  %v8323_v58 = vld [vmem:[%s6827_s9 + $0x4e8] sm:$0xff]  ;;  %9737 = vst [vmem:[#allocation61_spill] sm:$0xff] %v8326_v57 }
 0x4e1   : > { %5563 = vmatmul.mubr.f32.vlgmr.msra.gmra.mxu1 %v6280_v41  ;;  %9736 = vst [vmem:[#allocation62_spill] sm:$0xff] %v8323_v58  ;;  %v8335_v41 = vld [vmem:[%s6827_s9 + $0x4e0] sm:$0xff]  ;;  %v8338_v35 = vld [vmem:[%s6827_s9 + $0x5e8] sm:$0xff] }
 0x4e2   : > { %5568 = vmatpush3.xpose.msra.mxu0 %v8311_v1  ;;  %5601 = vmatpush3.xpose.msra.mxu1 %v8314_v0  ;;  %9738 = vst [vmem:[#allocation64_spill] sm:$0xff] %v8335_v41  ;;  %9739 = vst [vmem:[#allocation63_spill] sm:$0xff] %v8338_v35  ;;  %v8348_v1 = vld [vmem:[%s6827_s9 + $0x5e0] sm:$0xff]  ;;  %v8480_v0 = vld [vmem:[%s6827_s9 + $0x7f8] sm:$0xff] }
 0x4e3   : > { %5569 = vmatprep.subr.mxu0 %v6559_v42  ;;  %5602 = vmatprep.subr.mxu1 %v6559_v42  ;;  %9741 = vst [vmem:[#allocation65_spill] sm:$0xff] %v8348_v1  ;;  %9768 = vst [vmem:[#allocation92_spill] sm:$0xff] %v8480_v0 }
 0x4e4   : > { %5632 = vmatprep.mubr.msk.f32.mxu1 %vm6560_vm2, %v6559_v42 }
 0x4e6   : > { %5570 = vmatpush3.xpose.msra.mxu0 %v8323_v58  ;;  %5603 = vmatpush3.xpose.msra.mxu1 %v8326_v57  ;;  %v8345_v58 = vld [vmem:[%s6827_s9 + $0x4d8] sm:$0xff] }
 0x4e7   : > { %5571 = vmatprep.subr.mxu0 %v6559_v42  ;;  %5604 = vmatprep.subr.mxu1 %v6559_v42  ;;  %9740 = vst [vmem:[#allocation66_spill] sm:$0xff] %v8345_v58 }
 0x4ea   : > { %5572 = vmatpush3.xpose.msra.mxu0 %v8335_v41  ;;  %5605 = vmatpush3.xpose.msra.mxu1 %v8338_v35  ;;  %v8355_v41 = vld [vmem:[%s6827_s9 + $0x4d0] sm:$0xff] }
 0x4eb   : > { %5573 = vmatprep.subr.mxu0 %v6559_v42  ;;  %5606 = vmatprep.subr.mxu1 %v6559_v42  ;;  %9742 = vst [vmem:[#allocation68_spill] sm:$0xff] %v8355_v41  ;;  %v6281_v35 = vld [vmem:[#allocation2 + $0x4] sm:$0x1] }
 0x4ee   : > { %5574 = vmatpush3.xpose.msra.mxu0 %v8345_v58  ;;  %5607 = vmatpush3.xpose.msra.mxu1 %v8348_v1  ;;  %v8365_v58 = vld [vmem:[%s6827_s9 + $0x4c8] sm:$0xff]  ;;  %v8368_v1 = vld [vmem:[%s6827_s9 + $0x5d0] sm:$0xff] }
 0x4ef   : > { %5575 = vmatprep.subr.mxu0 %v6559_v42  ;;  %5608 = vmatprep.subr.mxu1 %v6559_v42  ;;  %9744 = vst [vmem:[#allocation70_spill] sm:$0xff] %v8365_v58  ;;  %9745 = vst [vmem:[#allocation69_spill] sm:$0xff] %v8368_v1 }
 0x4f2   : > { %5576 = vmatpush3.xpose.msra.mxu0 %v8355_v41  ;;  %5609 = vmatpush3.xpose.msra.mxu1 %v8358_v8  ;;  %v8375_v41 = vld [vmem:[%s6827_s9 + $0x4c0] sm:$0xff]  ;;  %v8378_v8 = vld [vmem:[%s6827_s9 + $0x5c8] sm:$0xff] }
 0x4f3   : > { %5577 = vmatprep.subr.mxu0 %v6559_v42  ;;  %5610 = vmatprep.subr.mxu1 %v6559_v42  ;;  %9746 = vst [vmem:[#allocation72_spill] sm:$0xff] %v8375_v41  ;;  %9747 = vst [vmem:[#allocation71_spill] sm:$0xff] %v8378_v8 }
 0x4f6   : > { %5578 = vmatpush3.xpose.msra.mxu0 %v8365_v58  ;;  %5611 = vmatpush3.xpose.msra.mxu1 %v8368_v1  ;;  %v8385_v58 = vld [vmem:[%s6827_s9 + $0x4b8] sm:$0xff]  ;;  %v8388_v1 = vld [vmem:[%s6827_s9 + $0x5c0] sm:$0xff] }
 0x4f7   : > { %5579 = vmatprep.subr.mxu0 %v6559_v42  ;;  %5612 = vmatprep.subr.mxu1 %v6559_v42  ;;  %9748 = vst [vmem:[#allocation73_spill] sm:$0xff] %v8385_v58  ;;  %9749 = vst [vmem:[#allocation75_spill] sm:$0xff] %v8388_v1 }
 0x4fa   : > { %5580 = vmatpush3.xpose.msra.mxu0 %v8375_v41  ;;  %5613 = vmatpush3.xpose.msra.mxu1 %v8378_v8  ;;  %v8395_v41 = vld [vmem:[%s6827_s9 + $0x4b0] sm:$0xff]  ;;  %v8398_v8 = vld [vmem:[%s6827_s9 + $0x5b8] sm:$0xff] }
 0x4fb   : > { %5581 = vmatprep.subr.mxu0 %v6559_v42  ;;  %5614 = vmatprep.subr.mxu1 %v6559_v42  ;;  %9750 = vst [vmem:[#allocation74_spill] sm:$0xff] %v8395_v41  ;;  %9751 = vst [vmem:[#allocation77_spill] sm:$0xff] %v8398_v8 }
 0x4fe   : > { %5582 = vmatpush3.xpose.msra.mxu0 %v8385_v58  ;;  %5615 = vmatpush3.xpose.msra.mxu1 %v8388_v1  ;;  %v8405_v58 = vld [vmem:[%s6827_s9 + $0x4a8] sm:$0xff]  ;;  %v8408_v1 = vld [vmem:[%s6827_s9 + $0x5b0] sm:$0xff] }
 0x4ff   : > { %5583 = vmatprep.subr.mxu0 %v6559_v42  ;;  %5616 = vmatprep.subr.mxu1 %v6559_v42  ;;  %9752 = vst [vmem:[#allocation76_spill] sm:$0xff] %v8405_v58  ;;  %9753 = vst [vmem:[#allocation79_spill] sm:$0xff] %v8408_v1 }
 0x502   : > { %5584 = vmatpush3.xpose.msra.mxu0 %v8395_v41  ;;  %5617 = vmatpush3.xpose.msra.mxu1 %v8398_v8  ;;  %v8415_v41 = vld [vmem:[%s6827_s9 + $0x4a0] sm:$0xff]  ;;  %v8418_v8 = vld [vmem:[%s6827_s9 + $0x5a8] sm:$0xff] }
 0x503   : > { %5585 = vmatprep.subr.mxu0 %v6559_v42  ;;  %5618 = vmatprep.subr.mxu1 %v6559_v42  ;;  %9754 = vst [vmem:[#allocation78_spill] sm:$0xff] %v8415_v41  ;;  %9755 = vst [vmem:[#allocation81_spill] sm:$0xff] %v8418_v8 }
 0x506   : > { %5586 = vmatpush3.xpose.msra.mxu0 %v8405_v58  ;;  %5619 = vmatpush3.xpose.msra.mxu1 %v8408_v1  ;;  %v8425_v58 = vld [vmem:[%s6827_s9 + $0x498] sm:$0xff]  ;;  %v8428_v1 = vld [vmem:[%s6827_s9 + $0x5a0] sm:$0xff] }
 0x507   : > { %5587 = vmatprep.subr.mxu0 %v6559_v42  ;;  %5620 = vmatprep.subr.mxu1 %v6559_v42  ;;  %9756 = vst [vmem:[#allocation80_spill] sm:$0xff] %v8425_v58  ;;  %9757 = vst [vmem:[#allocation83_spill] sm:$0xff] %v8428_v1 }
 0x50a   : > { %5588 = vmatpush3.xpose.msra.mxu0 %v8415_v41  ;;  %5621 = vmatpush3.xpose.msra.mxu1 %v8418_v8  ;;  %v8435_v8 = vld [vmem:[%s6827_s9 + $0x490] sm:$0xff]  ;;  %v8438_v41 = vld [vmem:[%s6827_s9 + $0x598] sm:$0xff] }
 0x50b   : > { %5589 = vmatprep.subr.mxu0 %v6559_v42  ;;  %5622 = vmatprep.subr.mxu1 %v6559_v42  ;;  %9758 = vst [vmem:[#allocation82_spill] sm:$0xff] %v8435_v8  ;;  %9759 = vst [vmem:[#allocation85_spill] sm:$0xff] %v8438_v41 }
 0x50e   : > { %5590 = vmatpush3.xpose.msra.mxu0 %v8425_v58  ;;  %5623 = vmatpush3.xpose.msra.mxu1 %v8428_v1  ;;  %v8445_v1 = vld [vmem:[%s6827_s9 + $0x488] sm:$0xff]  ;;  %v8448_v58 = vld [vmem:[%s6827_s9 + $0x590] sm:$0xff] }
 0x50f   : > { %5591 = vmatprep.subr.mxu0 %v6559_v42  ;;  %5624 = vmatprep.subr.mxu1 %v6559_v42  ;;  %9760 = vst [vmem:[#allocation84_spill] sm:$0xff] %v8445_v1  ;;  %9761 = vst [vmem:[#allocation87_spill] sm:$0xff] %v8448_v58 }
 0x512   : > { %5592 = vmatpush3.xpose.msra.mxu0 %v8435_v8  ;;  %5625 = vmatpush3.xpose.msra.mxu1 %v8438_v41  ;;  %v8455_v8 = vld [vmem:[%s6827_s9 + $0x480] sm:$0xff]  ;;  %v8458_v41 = vld [vmem:[%s6827_s9 + $0x588] sm:$0xff] }
 0x513   : > { %5593 = vmatprep.subr.mxu0 %v6559_v42  ;;  %5626 = vmatprep.subr.mxu1 %v6559_v42  ;;  %9762 = vst [vmem:[#allocation86_spill] sm:$0xff] %v8455_v8  ;;  %9763 = vst [vmem:[#allocation89_spill] sm:$0xff] %v8458_v41 }
 0x516   : > { %5594 = vmatpush3.xpose.msra.mxu0 %v8445_v1  ;;  %5627 = vmatpush3.xpose.msra.mxu1 %v8448_v58  ;;  %v8465_v1 = vld [vmem:[%s6827_s9 + $0x580] sm:$0xff]  ;;  %v8468_v58 = vld [vmem:[%s6827_s9 + $0x6f8] sm:$0xff] }
 0x517   : > { %5595 = vmatprep.subr.mxu0 %v6559_v42  ;;  %5628 = vmatprep.subr.mxu1 %v6559_v42  ;;  %9764 = vst [vmem:[#allocation88_spill] sm:$0xff] %v8465_v1  ;;  %9765 = vst [vmem:[#allocation91_spill] sm:$0xff] %v8468_v58 }
 0x51a   : > { %5596 = vmatpush3.xpose.msra.mxu0 %v8455_v8  ;;  %5629 = vmatpush3.xpose.msra.mxu1 %v8458_v41  ;;  %v8477_v41 = vld [vmem:[%s6827_s9 + $0x6f0] sm:$0xff] }
 0x51b   : > { %5630 = vmatprep.subr.mxu1 %v6559_v42  ;;  %5635 = vmatprep.subr.mxu0 %v6559_v42  ;;  %9767 = vst [vmem:[#allocation93_spill] sm:$0xff] %v8477_v41 }
 0x51d   : > { %5598 = vmatmul.mubr.f32.vlgmr.msra.gmra.mxu0 %v6281_v35  ;;  %v8470_v57 = vpop.f32.mrf.mxu0  ;;  %v6282_v35 = vld [vmem:[#allocation2 + $0x5] sm:$0x1] }
 0x51e   : > { %9766 = vst [vmem:[#allocation90_spill] sm:$0xff] %v8470_v57  ;;  %5631 = vmatpush3.xpose.msra.mxu1 %v8465_v1  ;;  %5636 = vmatpush3.xpose.msra.mxu0 %v8468_v58  ;;  %v8491_v58 = vld [vmem:[%s6827_s9 + $0x6e8] sm:$0xff]  ;;  %v8494_v1 = vld [vmem:[%s6827_s9 + $0x7f0] sm:$0xff] }
 0x51f   : > { %v5389_v8 = vpop.f32.mrf.mxu0  ;;  %5637 = vmatprep.subr.mxu0 %v6559_v42  ;;  %5670 = vmatprep.subr.mxu1 %v6559_v42  ;;  %9770 = vst [vmem:[#allocation94_spill] sm:$0xff] %v8491_v58  ;;  %9771 = vst [vmem:[#allocation97_spill] sm:$0xff] %v8494_v1 }
 0x520   : > { %5667 = vmatprep.mubr.msk.f32.mxu0 %vm6560_vm2, %v6559_v42 }
 0x521   : > { %5633 = vmatmul.mubr.f32.vlgmr.msra.gmra.mxu1 %v6282_v35  ;;  %v8484_v57 = vpop.f32.mrf.mxu1  ;;  %v8503_v35 = vld [vmem:[%s6827_s9 + $0x6e0] sm:$0xff] }
 0x522   : > { %9769 = vst [vmem:[#allocation95_spill] sm:$0xff] %v8484_v57  ;;  %5638 = vmatpush3.xpose.msra.mxu0 %v8477_v41  ;;  %5671 = vmatpush3.xpose.msra.mxu1 %v8480_v0  ;;  %9772 = vst [vmem:[#allocation96_spill] sm:$0xff] %v8503_v35  ;;  %v8513_v57 = vld [vmem:[%s6827_s9 + $0x6d8] sm:$0xff]  ;;  %v6284_v41 = vld [vmem:[#allocation2 + $0x7] sm:$0x1] }
 0x523   : > { %v5424_v8 = vpop.f32.mrf.mxu1  ;;  %5639 = vmatprep.subr.mxu0 %v6559_v42  ;;  %5672 = vmatprep.subr.mxu1 %v6559_v42  ;;  %9774 = vst [vmem:[#allocation98_spill] sm:$0xff] %v8513_v57 }
 0x524   : > { %5702 = vmatprep.mubr.msk.f32.mxu1 %vm6560_vm2, %v6559_v42  ;;  %v8506_v8 = vld [vmem:[%s6827_s9 + $0x7e8] sm:$0xff] }
 0x525   : > { %9773 = vst [vmem:[#allocation99_spill] sm:$0xff] %v8506_v8 }
 0x526   : > { %5640 = vmatpush3.xpose.msra.mxu0 %v8491_v58  ;;  %5673 = vmatpush3.xpose.msra.mxu1 %v8494_v1  ;;  %v8516_v1 = vld [vmem:[%s6827_s9 + $0x7e0] sm:$0xff] }
 0x527   : > { %5641 = vmatprep.subr.mxu0 %v6559_v42  ;;  %5674 = vmatprep.subr.mxu1 %v6559_v42  ;;  %9775 = vst [vmem:[#allocation101_spill] sm:$0xff] %v8516_v1  ;;  %v8623_v58 = vld [vmem:[%s6827_s9 + $0x680] sm:$0xff] }
 0x528   : > { %9796 = vst [vmem:[#allocation136_spill] sm:$0xff] %v8623_v58 }
 0x52a   : > { %5642 = vmatpush3.xpose.msra.mxu0 %v8503_v35  ;;  %5675 = vmatpush3.xpose.msra.mxu1 %v8506_v8  ;;  %v8523_v8 = vld [vmem:[%s6827_s9 + $0x6d0] sm:$0xff]  ;;  %v8526_v35 = vld [vmem:[%s6827_s9 + $0x7d8] sm:$0xff] }
 0x52b   : > { %5643 = vmatprep.subr.mxu0 %v6559_v42  ;;  %5676 = vmatprep.subr.mxu1 %v6559_v42  ;;  %9776 = vst [vmem:[#allocation100_spill] sm:$0xff] %v8523_v8  ;;  %9777 = vst [vmem:[#allocation102_spill] sm:$0xff] %v8526_v35 }
 0x52e   : > { %5644 = vmatpush3.xpose.msra.mxu0 %v8513_v57  ;;  %5677 = vmatpush3.xpose.msra.mxu1 %v8516_v1  ;;  %v8533_v1 = vld [vmem:[%s6827_s9 + $0x6c8] sm:$0xff]  ;;  %v8536_v57 = vld [vmem:[%s6827_s9 + $0x7d0] sm:$0xff] }
 0x52f   : > { %5645 = vmatprep.subr.mxu0 %v6559_v42  ;;  %5678 = vmatprep.subr.mxu1 %v6559_v42  ;;  %9778 = vst [vmem:[#allocation103_spill] sm:$0xff] %v8533_v1  ;;  %9779 = vst [vmem:[#allocation104_spill] sm:$0xff] %v8536_v57 }
 0x532   : > { %5646 = vmatpush3.xpose.msra.mxu0 %v8523_v8  ;;  %5679 = vmatpush3.xpose.msra.mxu1 %v8526_v35  ;;  %v8543_v35 = vld [vmem:[%s6827_s9 + $0x6c0] sm:$0xff]  ;;  %v8546_v8 = vld [vmem:[%s6827_s9 + $0x7c8] sm:$0xff] }
 0x533   : > { %5647 = vmatprep.subr.mxu0 %v6559_v42  ;;  %5680 = vmatprep.subr.mxu1 %v6559_v42  ;;  %9780 = vst [vmem:[#allocation105_spill] sm:$0xff] %v8543_v35  ;;  %9781 = vst [vmem:[#allocation121_spill] sm:$0xff] %v8546_v8 }
 0x536   : > { %5648 = vmatpush3.xpose.msra.mxu0 %v8533_v1  ;;  %5681 = vmatpush3.xpose.msra.mxu1 %v8536_v57  ;;  %v8553_v57 = vld [vmem:[%s6827_s9 + $0x6b8] sm:$0xff]  ;;  %v8556_v1 = vld [vmem:[%s6827_s9 + $0x7c0] sm:$0xff] }
 0x537   : > { %5649 = vmatprep.subr.mxu0 %v6559_v42  ;;  %5682 = vmatprep.subr.mxu1 %v6559_v42  ;;  %9782 = vst [vmem:[#allocation122_spill] sm:$0xff] %v8553_v57  ;;  %9783 = vst [vmem:[#allocation123_spill] sm:$0xff] %v8556_v1 }
 0x53a   : > { %5650 = vmatpush3.xpose.msra.mxu0 %v8543_v35  ;;  %5683 = vmatpush3.xpose.msra.mxu1 %v8546_v8  ;;  %v8563_v8 = vld [vmem:[%s6827_s9 + $0x6b0] sm:$0xff]  ;;  %v8566_v35 = vld [vmem:[%s6827_s9 + $0x7b8] sm:$0xff] }
 0x53b   : > { %5651 = vmatprep.subr.mxu0 %v6559_v42  ;;  %5684 = vmatprep.subr.mxu1 %v6559_v42  ;;  %9784 = vst [vmem:[#allocation124_spill] sm:$0xff] %v8563_v8  ;;  %9785 = vst [vmem:[#allocation125_spill] sm:$0xff] %v8566_v35 }
 0x53e   : > { %5652 = vmatpush3.xpose.msra.mxu0 %v8553_v57  ;;  %5685 = vmatpush3.xpose.msra.mxu1 %v8556_v1  ;;  %v8573_v1 = vld [vmem:[%s6827_s9 + $0x6a8] sm:$0xff]  ;;  %v8576_v57 = vld [vmem:[%s6827_s9 + $0x7b0] sm:$0xff] }
 0x53f   : > { %5653 = vmatprep.subr.mxu0 %v6559_v42  ;;  %5686 = vmatprep.subr.mxu1 %v6559_v42  ;;  %9786 = vst [vmem:[#allocation126_spill] sm:$0xff] %v8573_v1  ;;  %9787 = vst [vmem:[#allocation127_spill] sm:$0xff] %v8576_v57 }
 0x542   : > { %5654 = vmatpush3.xpose.msra.mxu0 %v8563_v8  ;;  %5687 = vmatpush3.xpose.msra.mxu1 %v8566_v35  ;;  %v8583_v35 = vld [vmem:[%s6827_s9 + $0x6a0] sm:$0xff]  ;;  %v8586_v8 = vld [vmem:[%s6827_s9 + $0x7a8] sm:$0xff] }
 0x543   : > { %5655 = vmatprep.subr.mxu0 %v6559_v42  ;;  %5688 = vmatprep.subr.mxu1 %v6559_v42  ;;  %9788 = vst [vmem:[#allocation128_spill] sm:$0xff] %v8583_v35  ;;  %9789 = vst [vmem:[#allocation129_spill] sm:$0xff] %v8586_v8 }
 0x546   : > { %5656 = vmatpush3.xpose.msra.mxu0 %v8573_v1  ;;  %5689 = vmatpush3.xpose.msra.mxu1 %v8576_v57  ;;  %v8593_v57 = vld [vmem:[%s6827_s9 + $0x698] sm:$0xff]  ;;  %v8596_v1 = vld [vmem:[%s6827_s9 + $0x7a0] sm:$0xff] }
 0x547   : > { %5657 = vmatprep.subr.mxu0 %v6559_v42  ;;  %5690 = vmatprep.subr.mxu1 %v6559_v42  ;;  %9790 = vst [vmem:[#allocation130_spill] sm:$0xff] %v8593_v57  ;;  %9791 = vst [vmem:[#allocation131_spill] sm:$0xff] %v8596_v1 }
 0x54a   : > { %5658 = vmatpush3.xpose.msra.mxu0 %v8583_v35  ;;  %5691 = vmatpush3.xpose.msra.mxu1 %v8586_v8  ;;  %v8603_v8 = vld [vmem:[%s6827_s9 + $0x690] sm:$0xff]  ;;  %v8606_v35 = vld [vmem:[%s6827_s9 + $0x798] sm:$0xff] }
 0x54b   : > { %5659 = vmatprep.subr.mxu0 %v6559_v42  ;;  %5692 = vmatprep.subr.mxu1 %v6559_v42  ;;  %9792 = vst [vmem:[#allocation132_spill] sm:$0xff] %v8603_v8  ;;  %9793 = vst [vmem:[#allocation133_spill] sm:$0xff] %v8606_v35 }
 0x54e   : > { %5660 = vmatpush3.xpose.msra.mxu0 %v8593_v57  ;;  %5693 = vmatpush3.xpose.msra.mxu1 %v8596_v1  ;;  %v8613_v57 = vld [vmem:[%s6827_s9 + $0x688] sm:$0xff]  ;;  %v8616_v1 = vld [vmem:[%s6827_s9 + $0x790] sm:$0xff] }
 0x54f   : > { %5661 = vmatprep.subr.mxu0 %v6559_v42  ;;  %5694 = vmatprep.subr.mxu1 %v6559_v42  ;;  %9794 = vst [vmem:[#allocation134_spill] sm:$0xff] %v8613_v57  ;;  %9795 = vst [vmem:[#allocation135_spill] sm:$0xff] %v8616_v1 }
 0x552   : > { %5662 = vmatpush3.xpose.msra.mxu0 %v8603_v8  ;;  %5695 = vmatpush3.xpose.msra.mxu1 %v8606_v35  ;;  %v8626_v8 = vld [vmem:[%s6827_s9 + $0x788] sm:$0xff]  ;;  %v8632_v35 = vld [vmem:[%s6827_s9 + $0x780] sm:$0xff] }
 0x553   : > { %5663 = vmatprep.subr.mxu0 %v6559_v42  ;;  %5696 = vmatprep.subr.mxu1 %v6559_v42  ;;  %9797 = vst [vmem:[#allocation137_spill] sm:$0xff] %v8626_v8 }
 0x556   : > { %5664 = vmatpush3.xpose.msra.mxu0 %v8613_v57  ;;  %5697 = vmatpush3.xpose.msra.mxu1 %v8616_v1  ;;  %v6283_v1 = vld [vmem:[#allocation2 + $0x6] sm:$0x1] }
 0x557   : > { %5665 = vmatprep.subr.mxu0 %v6559_v42  ;;  %5698 = vmatprep.subr.mxu1 %v6559_v42 }
 0x55a   : > { %5666 = vmatpush3.xpose.msra.mxu0 %v8623_v58  ;;  %5699 = vmatpush3.xpose.msra.mxu1 %v8626_v8 }
 0x55b   : > { %5700 = vmatprep.subr.mxu1 %v6559_v42  ;;  %5705 = vmatprep.subr.mxu0 %v6559_v42 }
 0x55d   : > { %v8635_v57 = vpop.f32.mrf.mxu0  ;;  %5668 = vmatmul.mubr.f32.vlgmr.msra.gmra.mxu0 %v6283_v1 }
 0x55e   : > { %5701 = vmatpush3.xpose.msra.mxu1 %v8632_v35  ;;  %v2831_v0 = vsel %vm1253_vm3, %v8635_v57, -inf  ;;  %5706 = vmatpush3.msra.mxu0 %v7960_v49 }
 0x55f   : > { %2832 = vmax.xlane.f32.xlu1 %v2831_v0  ;;  %v5459_v58 = vpop.f32.mrf.mxu0  ;;  %5740 = vmatprep.subr.mxu1 %v6559_v42 }
 0x560   : > { %5707 = vmatprep.subr.mxu0 %v6559_v42  ;;  %5737 = vmatprep.mubr.msk.f32.mxu0 %vm6560_vm2, %v6559_v42 }
 0x561   : > { %v8645_v8 = vpop.f32.mrf.mxu1  ;;  %5703 = vmatmul.mubr.f32.vlgmr.msra.gmra.mxu1 %v6284_v41  ;;  %5708 = vmatpush3.msra.mxu0 %v7970_v60 }
 0x562   : > { %v2834_v1 = vsel %vm1253_vm3, %v8645_v8, -inf  ;;  %5741 = vmatpush3.msra.mxu1 %v7973_v61  ;;  %5709 = vmatprep.subr.mxu0 %v6559_v42 }
 0x563   : > { %2835 = vmax.xlane.f32.xlu0 %v2834_v1  ;;  %v5494_v0 = vpop.f32.mrf.mxu1  ;;  %5742 = vmatprep.subr.mxu1 %v6559_v42  ;;  %v8777_v1 = vld [vmem:[#allocation3 + $0x4] sm:$0x1] }
 0x564   : > { %5743 = vmatpush3.msra.mxu1 %v7988_v46  ;;  %5710 = vmatpush3.msra.mxu0 %v7985_v45 }
 0x565   : > { %5744 = vmatprep.subr.mxu1 %v6559_v42  ;;  %5711 = vmatprep.subr.mxu0 %v6559_v42 }
 0x566   : > { %5745 = vmatpush3.msra.mxu1 %v8002_v52  ;;  %5712 = vmatpush3.msra.mxu0 %v7999_v51 }
 0x567   : > { %5746 = vmatprep.subr.mxu1 %v6559_v42  ;;  %5713 = vmatprep.subr.mxu0 %v6559_v42 }
 0x568   : > { %5747 = vmatpush3.msra.mxu1 %v8012_v11  ;;  %5714 = vmatpush3.msra.mxu0 %v8009_v55 }
 0x569   : > { %5748 = vmatprep.subr.mxu1 %v6559_v42  ;;  %5715 = vmatprep.subr.mxu0 %v6559_v42 }
 0x56a   : > { %5749 = vmatpush3.msra.mxu1 %v8022_v13  ;;  %5716 = vmatpush3.msra.mxu0 %v8019_v12 }
 0x56b   : > { %5750 = vmatprep.subr.mxu1 %v6559_v42  ;;  %5717 = vmatprep.subr.mxu0 %v6559_v42 }
 0x56c   : > { %5751 = vmatpush3.msra.mxu1 %v8032_v15  ;;  %5718 = vmatpush3.msra.mxu0 %v8029_v14  ;;  %v8729_v15 = vld [vmem:[#allocation3] sm:$0x1] }
 0x56d   : > { %5752 = vmatprep.subr.mxu1 %v6559_v42  ;;  %5719 = vmatprep.subr.mxu0 %v6559_v42 }
 0x56e   : > { %5753 = vmatpush3.msra.mxu1 %v8042_v17  ;;  %5720 = vmatpush3.msra.mxu0 %v8039_v16 }
 0x56f   : > { %5754 = vmatprep.subr.mxu1 %v6559_v42  ;;  %5721 = vmatprep.subr.mxu0 %v6559_v42 }
 0x570   : > { %5755 = vmatpush3.msra.mxu1 %v8052_v19  ;;  %5722 = vmatpush3.msra.mxu0 %v8049_v18  ;;  %v8738_v19 = vld [vmem:[#allocation3 + $0x1] sm:$0x1] }
 0x571   : > { %5756 = vmatprep.subr.mxu1 %v6559_v42  ;;  %5723 = vmatprep.subr.mxu0 %v6559_v42 }
 0x572   : > { %5757 = vmatpush3.msra.mxu1 %v8062_v23  ;;  %5724 = vmatpush3.msra.mxu0 %v8059_v22 }
 0x573   : > { %5758 = vmatprep.subr.mxu1 %v6559_v42  ;;  %5725 = vmatprep.subr.mxu0 %v6559_v42 }
 0x574   : > { %5759 = vmatpush3.msra.mxu1 %v8072_v27  ;;  %5726 = vmatpush3.msra.mxu0 %v8069_v26 }
 0x575   : > { %5760 = vmatprep.subr.mxu1 %v6559_v42  ;;  %5727 = vmatprep.subr.mxu0 %v6559_v42 }
 0x576   : > { %5761 = vmatpush3.msra.mxu1 %v8082_v29  ;;  %5728 = vmatpush3.msra.mxu0 %v8079_v28 }
 0x577   : > { %5762 = vmatprep.subr.mxu1 %v6559_v42  ;;  %5729 = vmatprep.subr.mxu0 %v6559_v42 }
 0x578   : > { %5763 = vmatpush3.msra.mxu1 %v8092_v31  ;;  %5730 = vmatpush3.msra.mxu0 %v8089_v30 }
 0x579   : > { %5764 = vmatprep.subr.mxu1 %v6559_v42  ;;  %5731 = vmatprep.subr.mxu0 %v6559_v42 }
 0x57a   : > { %5765 = vmatpush3.msra.mxu1 %v8102_v34  ;;  %5732 = vmatpush3.msra.mxu0 %v8099_v32  ;;  %v8757_v34 = vld [vmem:[#allocation3 + $0x2] sm:$0x1] }
 0x57b   : > { %5766 = vmatprep.subr.mxu1 %v6559_v42  ;;  %5733 = vmatprep.subr.mxu0 %v6559_v42 }
 0x57c   : > { %5767 = vmatpush3.msra.mxu1 %v8112_v63  ;;  %5734 = vmatpush3.msra.mxu0 %v8109_v62 }
 0x57d   : > { %5768 = vmatprep.subr.mxu1 %v6559_v42  ;;  %5735 = vmatprep.subr.mxu0 %v6559_v42 }
 0x57e   : > { %5769 = vmatpush3.msra.mxu1 %v8122_v3  ;;  %5736 = vmatpush3.msra.mxu0 %v8119_v43  ;;  %v8766_v3 = vld [vmem:[#allocation3 + $0x3] sm:$0x1] }
 0x57f   : > { %5770 = vmatprep.subr.mxu1 %v6559_v42  ;;  %5772 = vmatprep.mubr.msk.f32.mxu1 %vm6560_vm2, %v6559_v42 }
 0x580   : > { %5771 = vmatpush3.msra.mxu1 %v8129_v6  ;;  %5775 = vmatprep.subr.mxu0 %v6559_v42 }
 0x581   : > { %5810 = vmatprep.subr.mxu1 %v6559_v42 }
 0x59d   : > { %v8713_v49 = vpop.f32.mrf.mxu0 }
 0x59e   : > { %v2837_v60 = vsel %vm1253_vm3, %v8713_v49, -inf }
 0x59f   : > { %2838 = vmax.xlane.f32.xlu1 %v2837_v60  ;;  %v5529_v61 = vpop.f32.mrf.mxu0 }
 0x5a1   : > { %v8717_v45 = vpop.f32.mrf.mxu1 }
 0x5a2   : > { %v2840_v46 = vsel %vm1253_vm3, %v8717_v45, -inf }
 0x5a3   : > { %v5564_v51 = vpop.f32.mrf.mxu1  ;;  %2841 = vmax.xlane.f32.xlu1 %v2840_v46  ;;  %v8787_v46 = vld [vmem:[#allocation3 + $0x5] sm:$0x1] }
 0x5dd   : > { %v8721_v52 = vpop.f32.mrf.mxu0 }
 0x5de   : > { %v2843_v55 = vsel %vm1253_vm3, %v8721_v52, -inf }
 0x5df   : > { %2844 = vmax.xlane.f32.xlu0 %v2843_v55  ;;  %v5599_v11 = vpop.f32.mrf.mxu0 }
 0x5e1   : > { %v8725_v12 = vpop.f32.mrf.mxu1 }
 0x5e2   : > { %v2846_v13 = vsel %vm1253_vm3, %v8725_v12, -inf }
 0x5e3   : > { %v5634_v14 = vpop.f32.mrf.mxu1  ;;  %2847 = vmax.xlane.f32.xlu1 %v2846_v13 }
 0x5e8   : > { %v2833_v16 = vpop.xlane.xlu1 %2832 }
 0x5e9   : > { %v8732_v17 = vmax.f32 %v8729_v15, %v2833_v16 }
 0x5eb   : > { %v2863_v18 = vsub.f32 %v8729_v15, %v8732_v17  ;;  %3703 = vst.msk [vmem:[#allocation3] sm:$0x1] %vm1454_vm4, %v8732_v17 }
 0x5ec   : > { %v2836_v22 = vpop.xlane.xlu0 %2835 }
 0x5ed   : > { %v8741_v23 = vmax.f32 %v8738_v19, %v2836_v22 }
 0x5ef   : > { %v2864_v26 = vsub.f32 %v8738_v19, %v8741_v23  ;;  %3704 = vst.msk [vmem:[#allocation3 + $0x1] sm:$0x1] %vm1454_vm4, %v8741_v23 }
 0x5f4   : > { %2898 = vperm.xlu1 %6212, %v8741_v23  }
 0x5f5   : > { %2889 = vperm.xlu0 %6211, %v8732_v17  }
 0x61d   : > { %v8749_v27 = vpop.f32.mrf.mxu0 }
 0x61e   : > { %v2849_v28 = vsel %vm1253_vm3, %v8749_v27, -inf }
 0x61f   : > { %2850 = vmax.xlane.f32.xlu1 %v2849_v28  ;;  %v5669_v29 = vpop.f32.mrf.mxu0 }
 0x621   : > { %v8753_v30 = vpop.f32.mrf.mxu1 }
 0x622   : > { %v2852_v31 = vsel %vm1253_vm3, %v8753_v30, -inf }
 0x623   : > { %v5704_v32 = vpop.f32.mrf.mxu1  ;;  %2853 = vmax.xlane.f32.xlu0 %v2852_v31 }
 0x628   : > { %v2839_v62 = vpop.xlane.xlu1 %2838 }
 0x629   : > { %v8760_v63 = vmax.f32 %v8757_v34, %v2839_v62 }
 0x62b   : > { %v2865_v43 = vsub.f32 %v8757_v34, %v8760_v63  ;;  %3705 = vst.msk [vmem:[#allocation3 + $0x2] sm:$0x1] %vm1454_vm4, %v8760_v63 }
 0x62c   : > { %v2842_v6 = vpop.xlane.xlu1 %2841 }
 0x62d   : > { %v8769_v58 = vmax.f32 %v8766_v3, %v2842_v6 }
 0x62f   : > { %v2866_v41 = vsub.f32 %v8766_v3, %v8769_v58  ;;  %3706 = vst.msk [vmem:[#allocation3 + $0x3] sm:$0x1] %vm1454_vm4, %v8769_v58 }
 0x630   : > { %2916 = vperm.xlu1 %6212, %v8769_v58   ;;  %v9863_v58 = vld [vmem:[#allocation91_spill] sm:$0xff] }
 0x631   : > { %v2877_v15 = vmul.f32 1.442695, %v2866_v41 }
 0x639   : > { %2907 = vperm.xlu0 %6211, %v8760_v63  }
 0x668   : > { %v2845_v0 = vpop.xlane.xlu0 %2844 }
 0x669   : > { %v8780_v60 = vmax.f32 %v8777_v1, %v2845_v0 }
 0x66b   : > { %v2867_v61 = vsub.f32 %v8777_v1, %v8780_v60  ;;  %3707 = vst.msk [vmem:[#allocation3 + $0x4] sm:$0x1] %vm1454_vm4, %v8780_v60  ;;  %2925 = vperm.xlu1 %6212, %v8780_v60   ;;  %v9864_v60 = vld [vmem:[#allocation93_spill] sm:$0xff] }
 0x66c   : > { %v2848_v51 = vpop.xlane.xlu1 %2847 }
 0x66d   : > { %v8790_v55 = vmax.f32 %v8787_v46, %v2848_v51  ;;  %v9807_v51 = vld [vmem:[#allocation59_spill] sm:$0xff] }
 0x66f   : > { %v2868_v11 = vsub.f32 %v8787_v46, %v8790_v55  ;;  %3708 = vst.msk [vmem:[#allocation3 + $0x5] sm:$0x1] %vm1454_vm4, %v8790_v55  ;;  %2934 = vperm.xlu0 %6211, %v8790_v55   ;;  %v9866_v55 = vld [vmem:[#allocation94_spill] sm:$0xff] }
 0x670   : > { %v2899_v13 = vpop.permute.xlu1 %2898  ;;  %v2890_v14 = vpop.permute.xlu0 %2889 }
 0x671   : > { %v2904_v16 = vrot.slane %v2899_v13, %v7697_v44  ;;  %v2895_v22 = vrot.slane %v2890_v14, %v7697_v44  ;;  %v9809_v13 = vld [vmem:[#allocation63_spill] sm:$0xff]  ;;  %v9810_v14 = vld [vmem:[#allocation65_spill] sm:$0xff]  ;;  %v2881_v63 = vmul.f32 1.442695, %v2868_v11 }
 0x673   : > { %v2960_v28 = vsub.f32 %v8645_v8, %v2904_v16  ;;  %v2959_v29 = vsub.f32 %v8635_v57, %v2895_v22  ;;  %v9799_v57 = vld [vmem:[#allocation48_spill] sm:$0xff]  ;;  %v9811_v16 = vld [vmem:[#allocation55_spill] sm:$0xff] }
 0x674   : > { %v9812_v22 = vld [vmem:[#allocation67_spill] sm:$0xff] }
 0x675   : > { %v2969_v31 = vmul.f32 1.442695, %v2960_v28  ;;  %v2967_v32 = vmul.f32 1.442695, %v2959_v29  ;;  %v9813_v28 = vld [vmem:[#allocation60_spill] sm:$0xff]  ;;  %v9814_v29 = vld [vmem:[#allocation119_spill] sm:$0xff] }
 0x677   : > { %6229 = vpow2.f32 %v2969_v31  ;;  %v1425_v31 = vsel %vm1253_vm3, %v9814_v29, 0.0  ;;  %v9834_v29 = vld [vmem:[#allocation73_spill] sm:$0xff] }
 0x678   : > { %6231 = vpow2.f32 %v2967_v32  ;;  %v9815_v32 = vld [vmem:[#allocation69_spill] sm:$0xff] }
 0x684   : > { %v8801_v62 = vpop.eup %6229 }
 0x685   : > { %v8803_v6 = vpop.eup %6231  ;;  %5773 = vmatmul.mubr.f32.vlgmr.msra.gmra.mxu1 %v8801_v62 }
 0x686   : > { %5738 = vmatmul.mubr.f32.vlgmr.msra.gmra.mxu0 %v8803_v6  ;;  %5811 = vmatpush3.msra.mxu1 %v8142_v33  ;;  %v9806_v33 = vld [vmem:[#allocation53_spill] sm:$0xff] }
 0x687   : > { %5812 = vmatprep.subr.mxu1 %v6559_v42  ;;  %5776 = vmatpush3.msra.mxu0 %v8132_v48 }
 0x688   : > { %5813 = vmatpush3.msra.mxu1 %v8156_v21  ;;  %5777 = vmatprep.subr.mxu0 %v6559_v42 }
 0x689   : > { %5814 = vmatprep.subr.mxu1 %v6559_v42  ;;  %5778 = vmatpush3.msra.mxu0 %v8139_v53 }
 0x68a   : > { %5815 = vmatpush3.msra.mxu1 %v8170_v20  ;;  %5779 = vmatprep.subr.mxu0 %v6559_v42  ;;  %v8885_v20 = vld [vmem:[#allocation3 + $0x7] sm:$0x1] }
 0x68b   : > { %5816 = vmatprep.subr.mxu1 %v6559_v42  ;;  %5780 = vmatpush3.msra.mxu0 %v8153_v38 }
 0x68c   : > { %5817 = vmatpush3.msra.mxu1 %v8180_v25  ;;  %5781 = vmatprep.subr.mxu0 %v6559_v42 }
 0x68d   : > { %5818 = vmatprep.subr.mxu1 %v6559_v42  ;;  %5782 = vmatpush3.msra.mxu0 %v8167_v47 }
 0x68e   : > { %5819 = vmatpush3.msra.mxu1 %v8190_v36  ;;  %5783 = vmatprep.subr.mxu0 %v6559_v42  ;;  %v8875_v36 = vld [vmem:[#allocation3 + $0x6] sm:$0x1] }
 0x68f   : > { %5820 = vmatprep.subr.mxu1 %v6559_v42  ;;  %5784 = vmatpush3.msra.mxu0 %v8177_v50 }
 0x690   : > { %5821 = vmatpush3.msra.mxu1 %v8200_v37  ;;  %5785 = vmatprep.subr.mxu0 %v6559_v42 }
 0x691   : > { %5822 = vmatprep.subr.mxu1 %v6559_v42  ;;  %5786 = vmatpush3.msra.mxu0 %v8187_v24 }
 0x692   : > { %5823 = vmatpush3.msra.mxu1 %v8210_v5  ;;  %5787 = vmatprep.subr.mxu0 %v6559_v42  ;;  %v9804_v5 = vld [vmem:[#allocation49_spill] sm:$0xff] }
 0x693   : > { %5824 = vmatprep.subr.mxu1 %v6559_v42  ;;  %5788 = vmatpush3.msra.mxu0 %v8197_v10 }
 0x694   : > { %5825 = vmatpush3.msra.mxu1 %v8220_v2  ;;  %5789 = vmatprep.subr.mxu0 %v6559_v42  ;;  %v9800_v2 = vld [vmem:[#allocation52_spill] sm:$0xff] }
 0x695   : > { %5826 = vmatprep.subr.mxu1 %v6559_v42  ;;  %5790 = vmatpush3.msra.mxu0 %v8207_v40 }
 0x696   : > { %5827 = vmatpush3.msra.mxu1 %v8230_v54  ;;  %5791 = vmatprep.subr.mxu0 %v6559_v42  ;;  %v9798_v54 = vld [vmem:[#allocation50_spill] sm:$0xff] }
 0x697   : > { %5828 = vmatprep.subr.mxu1 %v6559_v42  ;;  %5792 = vmatpush3.msra.mxu0 %v8217_v7  ;;  %v9805_v7 = vld [vmem:[#allocation51_spill] sm:$0xff] }
 0x698   : > { %5829 = vmatpush3.msra.mxu1 %v8240_v9  ;;  %5793 = vmatprep.subr.mxu0 %v6559_v42 }
 0x699   : > { %5830 = vmatprep.subr.mxu1 %v6559_v42  ;;  %5794 = vmatpush3.msra.mxu0 %v8227_v4  ;;  %v9803_v4 = vld [vmem:[#allocation56_spill] sm:$0xff] }
 0x69a   : > { %5831 = vmatpush3.msra.mxu1 %v8250_v59  ;;  %5795 = vmatprep.subr.mxu0 %v6559_v42  ;;  %v9801_v59 = vld [vmem:[#allocation54_spill] sm:$0xff] }
 0x69b   : > { %5832 = vmatprep.subr.mxu1 %v6559_v42  ;;  %5796 = vmatpush3.msra.mxu0 %v8237_v56  ;;  %v9802_v56 = vld [vmem:[#allocation47_spill] sm:$0xff] }
 0x69c   : > { %5833 = vmatpush3.msra.mxu1 %v9798_v54  ;;  %5797 = vmatprep.subr.mxu0 %v6559_v42  ;;  %v9816_v54 = vld [vmem:[#allocation120_spill] sm:$0xff] }
 0x69d   : > { %5834 = vmatprep.subr.mxu1 %v6559_v42  ;;  %5798 = vmatpush3.msra.mxu0 %v9799_v57  ;;  %v1422_v57 = vsel %vm1253_vm3, %v9816_v54, 0.0  ;;  %v9837_v54 = vld [vmem:[#allocation106_spill] sm:$0xff] }
 0x69e   : > { %5835 = vmatpush3.msra.mxu1 %v9800_v2  ;;  %5842 = vmatprep.mubr.msk.f32.mxu1 %vm6560_vm2, %v6559_v42  ;;  %v9817_v2 = vld [vmem:[#allocation62_spill] sm:$0xff] }
 0x69f   : > { %5836 = vmatprep.subr.mxu1 %v6559_v42  ;;  %5799 = vmatprep.subr.mxu0 %v6559_v42 }
 0x6a0   : > { %5837 = vmatpush3.msra.mxu1 %v9801_v59  ;;  %5800 = vmatpush3.msra.mxu0 %v9802_v56  ;;  %v9818_v59 = vld [vmem:[#allocation64_spill] sm:$0xff]  ;;  %v9819_v56 = vld [vmem:[#allocation39_spill] sm:$0xff] }
 0x6a1   : > { %5838 = vmatprep.subr.mxu1 %v6559_v42  ;;  %5801 = vmatprep.subr.mxu0 %v6559_v42 }
 0x6a2   : > { %5839 = vmatpush3.msra.mxu1 %v9803_v4  ;;  %5802 = vmatpush3.msra.mxu0 %v9804_v5  ;;  %v1428_v4 = vsel %vm1253_vm3, %v9819_v56, 0.0  ;;  %v9820_v5 = vld [vmem:[#allocation71_spill] sm:$0xff] }
 0x6a3   : > { %5840 = vmatprep.subr.mxu1 %v6559_v42  ;;  %5803 = vmatprep.subr.mxu0 %v6559_v42 }
 0x6a4   : > { %5841 = vmatpush3.msra.mxu1 %v8297_v39  ;;  %5804 = vmatpush3.msra.mxu0 %v9805_v7  ;;  %v9821_v7 = vld [vmem:[#allocation36_spill] sm:$0xff] }
 0x6a5   : > { %5805 = vmatprep.subr.mxu0 %v6559_v42  ;;  %5807 = vmatprep.mubr.msk.f32.mxu0 %vm6560_vm2, %v6559_v42 }
 0x6a6   : > { %5806 = vmatpush3.msra.mxu0 %v9806_v33  ;;  %5880 = vmatprep.subr.mxu1 %v6559_v42  ;;  %v1431_v33 = vsel %vm1253_vm3, %v9821_v7, 0.0 }
 0x6a7   : > { %5845 = vmatprep.subr.mxu0 %v6559_v42 }
 0x6a8   : > { %v2851_v37 = vpop.xlane.xlu1 %2850 }
 0x6a9   : > { %v8878_v10 = vmax.f32 %v8875_v36, %v2851_v37  ;;  %v9822_v37 = vld [vmem:[#allocation66_spill] sm:$0xff] }
 0x6ab   : > { %v2869_v40 = vsub.f32 %v8875_v36, %v8878_v10  ;;  %3709 = vst.msk [vmem:[#allocation3 + $0x6] sm:$0x1] %vm1454_vm4, %v8878_v10  ;;  %2943 = vperm.xlu1 %6212, %v8878_v10   ;;  %v1407_v10 = vld [vmem:[#allocation4 + $0x1] sm:$0x1] }
 0x6ac   : > { %v2854_v21 = vpop.xlane.xlu0 %2853  ;;  %v2917_v25 = vpop.permute.xlu1 %2916 }
 0x6ad   : > { %v8888_v39 = vmax.f32 %v8885_v20, %v2854_v21  ;;  %v2922_v9 = vrot.slane %v2917_v25, %v7697_v44  ;;  %v9823_v21 = vld [vmem:[#allocation68_spill] sm:$0xff]  ;;  %v9824_v25 = vld [vmem:[#allocation38_spill] sm:$0xff] }
 0x6af   : > { %v2870_v38 = vsub.f32 %v8885_v20, %v8888_v39  ;;  %3710 = vst.msk [vmem:[#allocation3 + $0x7] sm:$0x1] %vm1454_vm4, %v8888_v39  ;;  %v2962_v48 = vsub.f32 %v8717_v45, %v2922_v9  ;;  %2952 = vperm.xlu0 %6211, %v8888_v39   ;;  %v9808_v45 = vld [vmem:[#allocation61_spill] sm:$0xff]  ;;  %v1434_v9 = vsel %vm1253_vm3, %v9824_v25, 0.0 }
 0x6b0   : > { %v9843_v25 = vld [vmem:[#allocation113_spill] sm:$0xff] }
 0x6b1   : > { %v2973_v53 = vmul.f32 1.442695, %v2962_v48  ;;  %v9825_v48 = vld [vmem:[#allocation75_spill] sm:$0xff] }
 0x6b3   : > { %6233 = vpow2.f32 %v2973_v53  ;;  %v9826_v53 = vld [vmem:[#allocation41_spill] sm:$0xff] }
 0x6b4   : > { %v2908_v47 = vpop.permute.xlu0 %2907 }
 0x6b5   : > { %v2913_v50 = vrot.slane %v2908_v47, %v7697_v44  ;;  %v1437_v47 = vsel %vm1253_vm3, %v9826_v53, 0.0  ;;  %v9845_v53 = vld [vmem:[#allocation81_spill] sm:$0xff] }
 0x6b7   : > { %v2961_v24 = vsub.f32 %v8713_v49, %v2913_v50  ;;  %v9827_v50 = vld [vmem:[#allocation70_spill] sm:$0xff] }
 0x6b9   : > { %v2971_v8 = vmul.f32 1.442695, %v2961_v24  ;;  %v9828_v24 = vld [vmem:[#allocation72_spill] sm:$0xff] }
 0x6bb   : > { %6235 = vpow2.f32 %v2971_v8  ;;  %v9829_v8 = vld [vmem:[#allocation40_spill] sm:$0xff] }
 0x6c0   : > { %v8899_v0 = vpop.eup %6233 }
 0x6c1   : > { %5843 = vmatmul.mubr.f32.vlgmr.msra.gmra.mxu1 %v8899_v0 }
 0x6c2   : > { %5881 = vmatpush3.msra.mxu1 %v9807_v51  ;;  %5912 = vmatprep.mubr.msk.f32.mxu1 %vm6560_vm2, %v6559_v42  ;;  %v1440_v51 = vsel %vm1253_vm3, %v9829_v8, 0.0  ;;  %v9848_v8 = vld [vmem:[#allocation80_spill] sm:$0xff] }
 0x6c3   : > { %5882 = vmatprep.subr.mxu1 %v6559_v42 }
 0x6c4   : > { %5883 = vmatpush3.msra.mxu1 %v9808_v45  ;;  %v9830_v45 = vld [vmem:[#allocation77_spill] sm:$0xff] }
 0x6c5   : > { %5884 = vmatprep.subr.mxu1 %v6559_v42 }
 0x6c6   : > { %5885 = vmatpush3.msra.mxu1 %v9809_v13  ;;  %v9831_v13 = vld [vmem:[#allocation109_spill] sm:$0xff] }
 0x6c7   : > { %5886 = vmatprep.subr.mxu1 %v6559_v42 }
 0x6c8   : > { %v8909_v49 = vpop.eup %6235  ;;  %5887 = vmatpush3.msra.mxu1 %v9810_v14  ;;  %v9832_v14 = vld [vmem:[#allocation108_spill] sm:$0xff] }
 0x6c9   : > { %5808 = vmatmul.mubr.f32.vlgmr.msra.gmra.mxu0 %v8909_v49  ;;  %5888 = vmatprep.subr.mxu1 %v6559_v42 }
 0x6ca   : > { %5846 = vmatpush3.msra.mxu0 %v9811_v16  ;;  %5889 = vmatpush3.msra.mxu1 %v9812_v22  ;;  %v1287_v16 = vsub.f32 %v9832_v14, %v9831_v13  ;;  %v9833_v22 = vld [vmem:[#allocation42_spill] sm:$0xff]  ;;  %v9851_v13 = vld [vmem:[#allocation115_spill] sm:$0xff] }
 0x6cb   : > { %5847 = vmatprep.subr.mxu0 %v6559_v42  ;;  %5890 = vmatprep.subr.mxu1 %v6559_v42 }
 0x6cc   : > { %5848 = vmatpush3.msra.mxu0 %v9813_v28  ;;  %5891 = vmatpush3.msra.mxu1 %v9815_v32  ;;  %v1443_v28 = vsel %vm1253_vm3, %v9833_v22, 0.0  ;;  %v9836_v32 = vld [vmem:[#allocation107_spill] sm:$0xff]  ;;  %v1296_v56 = vmul.f32 1.442695, %v1287_v16  ;;  %v9852_v16 = vld [vmem:[#allocation82_spill] sm:$0xff] }
 0x6cd   : > { %5849 = vmatprep.subr.mxu0 %v6559_v42  ;;  %5892 = vmatprep.subr.mxu1 %v6559_v42 }
 0x6ce   : > { %1426 = vadd.xlane.f32.xlu0 %v1425_v31  ;;  %5850 = vmatpush3.msra.mxu0 %v9817_v2  ;;  %v9835_v31 = vld [vmem:[#allocation74_spill] sm:$0xff]  ;;  %v3002_v2 = vsel %vm1253_vm3, %v8801_v62, 0.0  ;;  %6237 = vpow2.f32 %v1296_v56 }
 0x6cf   : > { %1423 = vadd.xlane.f32.xlu1 %v1422_v57  ;;  %5851 = vmatprep.subr.mxu0 %v6559_v42  ;;  %v1286_v57 = vsub.f32 %v9837_v54, %v9836_v32  ;;  %v9855_v32 = vld [vmem:[#allocation35_spill] sm:$0xff] }
 0x6d0   : > { %5852 = vmatpush3.msra.mxu0 %v9818_v59  ;;  %5893 = vmatpush3.msra.mxu1 %v9820_v5  ;;  %v9838_v59 = vld [vmem:[#allocation79_spill] sm:$0xff]  ;;  %v9840_v5 = vld [vmem:[#allocation110_spill] sm:$0xff] }
 0x6d1   : > { %5853 = vmatprep.subr.mxu0 %v6559_v42  ;;  %5894 = vmatprep.subr.mxu1 %v6559_v42  ;;  %v1294_v62 = vmul.f32 1.442695, %v1286_v57 }
 0x6d2   : > { %1429 = vadd.xlane.f32.xlu0 %v1428_v4  ;;  %5854 = vmatpush3.msra.mxu0 %v9822_v37  ;;  %v9839_v4 = vld [vmem:[#allocation111_spill] sm:$0xff]  ;;  %v9841_v37 = vld [vmem:[#allocation76_spill] sm:$0xff] }
 0x6d3   : > { %1432 = vadd.xlane.f32.xlu1 %v1431_v33  ;;  %5855 = vmatprep.subr.mxu0 %v6559_v42  ;;  %v1288_v7 = vsub.f32 %v9840_v5, %v9839_v4  ;;  %v2999_v33 = vsel %vm1253_vm3, %v8803_v6, 0.0  ;;  %v9846_v6 = vld [vmem:[#allocation118_spill] sm:$0xff]  ;;  %6239 = vpow2.f32 %v1294_v62  ;;  %v9858_v5 = vld [vmem:[#allocation33_spill] sm:$0xff] }
 0x6d4   : > { %5856 = vmatpush3.msra.mxu0 %v9823_v21  ;;  %5895 = vmatpush3.msra.mxu1 %v9825_v48  ;;  %v9842_v21 = vld [vmem:[#allocation78_spill] sm:$0xff] }
 0x6d5   : > { %5857 = vmatprep.subr.mxu0 %v6559_v42  ;;  %5896 = vmatprep.subr.mxu1 %v6559_v42  ;;  %v9857_v4 = vld [vmem:[#allocation34_spill] sm:$0xff] }
 0x6d6   : > { %1435 = vadd.xlane.f32.xlu0 %v1434_v9  ;;  %5858 = vmatpush3.msra.mxu0 %v9827_v50  ;;  %v9844_v9 = vld [vmem:[#allocation112_spill] sm:$0xff] }
 0x6d7   : > { %1438 = vadd.xlane.f32.xlu1 %v1437_v47  ;;  %5859 = vmatprep.subr.mxu0 %v6559_v42  ;;  %v1289_v48 = vsub.f32 %v9844_v9, %v9843_v25  ;;  %v1298_v47 = vmul.f32 1.442695, %v1288_v7  ;;  %v9847_v50 = vld [vmem:[#allocation116_spill] sm:$0xff]  ;;  %v1293_v7 = vsub.f32 %v9858_v5, %v9857_v4  ;;  %v9861_v9 = vld [vmem:[#allocation89_spill] sm:$0xff]  ;;  %v9878_v5 = vld [vmem:[#allocation122_spill] sm:$0xff] }
 0x6d8   : > { %5860 = vmatpush3.msra.mxu0 %v9828_v24  ;;  %5897 = vmatpush3.msra.mxu1 %v9830_v45  ;;  %v1290_v24 = vsub.f32 %v9847_v50, %v9846_v6  ;;  %v9850_v45 = vld [vmem:[#allocation117_spill] sm:$0xff]  ;;  %v9862_v6 = vld [vmem:[#allocation88_spill] sm:$0xff]  ;;  %v2873_v50 = vmul.f32 1.442695, %v2864_v26 }
 0x6d9   : > { %5861 = vmatprep.subr.mxu0 %v6559_v42  ;;  %5898 = vmatprep.subr.mxu1 %v6559_v42  ;;  %v1291_v14 = vsub.f32 %v9851_v13, %v9850_v45  ;;  %v1300_v22 = vmul.f32 1.442695, %v1289_v48  ;;  %6241 = vpow2.f32 %v1298_v47  ;;  %v1308_v47 = vmul.f32 1.442695, %v1293_v7  ;;  %v9867_v13 = vld [vmem:[#allocation97_spill] sm:$0xff]  ;;  %v9879_v7 = vld [vmem:[#allocation124_spill] sm:$0xff] }
 0x6da   : > { %1441 = vadd.xlane.f32.xlu0 %v1440_v51  ;;  %5862 = vmatpush3.msra.mxu0 %v9834_v29  ;;  %v9849_v51 = vld [vmem:[#allocation83_spill] sm:$0xff]  ;;  %v1302_v29 = vmul.f32 1.442695, %v1290_v24  ;;  %v9877_v4 = vld [vmem:[#allocation121_spill] sm:$0xff] }
 0x6db   : > { %1444 = vadd.xlane.f32.xlu1 %v1443_v28  ;;  %5863 = vmatprep.subr.mxu0 %v6559_v42  ;;  %v9853_v28 = vld [vmem:[#allocation85_spill] sm:$0xff]  ;;  %v1304_v56 = vmul.f32 1.442695, %v1291_v14  ;;  %6243 = vpow2.f32 %v1300_v22  ;;  %v9016_v24 = vpop.eup %6237  ;;  %v9868_v14 = vld [vmem:[#allocation96_spill] sm:$0xff]  ;;  %v9869_v22 = vld [vmem:[#allocation99_spill] sm:$0xff] }
 0x6dc   : > { %5864 = vmatpush3.msra.mxu0 %v9835_v31  ;;  %5899 = vmatpush3.msra.mxu1 %v9838_v59  ;;  %v9854_v31 = vld [vmem:[#allocation37_spill] sm:$0xff]  ;;  %6245 = vpow2.f32 %v1302_v29  ;;  %v9870_v29 = vld [vmem:[#allocation98_spill] sm:$0xff]  ;;  %v1415_v20 = vmul.f32 %v9016_v24, %v1407_v10 }
 0x6dd   : > { %5865 = vmatprep.subr.mxu0 %v6559_v42  ;;  %5900 = vmatprep.subr.mxu1 %v6559_v42  ;;  %v1292_v54 = vsub.f32 %v9855_v32, %v9854_v31  ;;  %6247 = vpow2.f32 %v1304_v56  ;;  %v9871_v31 = vld [vmem:[#allocation101_spill] sm:$0xff]  ;;  %v9872_v32 = vld [vmem:[#allocation100_spill] sm:$0xff] }
 0x6de   : > { %3003 = vadd.xlane.f32.xlu0 %v3002_v2  ;;  %5866 = vmatpush3.msra.mxu0 %v9841_v37  ;;  %v9856_v2 = vld [vmem:[#allocation84_spill] sm:$0xff]  ;;  %v9860_v37 = vld [vmem:[#allocation87_spill] sm:$0xff] }
 0x6df   : > { %3000 = vadd.xlane.f32.xlu1 %v2999_v33  ;;  %5867 = vmatprep.subr.mxu0 %v6559_v42  ;;  %v9859_v33 = vld [vmem:[#allocation86_spill] sm:$0xff]  ;;  %v1306_v62 = vmul.f32 1.442695, %v1292_v54  ;;  %v9876_v56 = vld [vmem:[#allocation104_spill] sm:$0xff] }
 0x6e0   : > { %5868 = vmatpush3.msra.mxu0 %v9842_v21  ;;  %5901 = vmatpush3.msra.mxu1 %v9845_v53  ;;  %v9022_v45 = vpop.eup %6239 }
 0x6e1   : > { %5869 = vmatprep.subr.mxu0 %v6559_v42  ;;  %5902 = vmatprep.subr.mxu1 %v6559_v42 }
 0x6e2   : > { %5870 = vmatpush3.msra.mxu0 %v9848_v8  ;;  %5903 = vmatpush3.msra.mxu1 %v9849_v51  ;;  %v2871_v51 = vmul.f32 1.442695, %v2863_v18  ;;  %v2879_v18 = vmul.f32 1.442695, %v2867_v61  ;;  %v9865_v61 = vld [vmem:[#allocation92_spill] sm:$0xff] }
 0x6e3   : > { %5871 = vmatprep.subr.mxu0 %v6559_v42  ;;  %5904 = vmatprep.subr.mxu1 %v6559_v42 }
 0x6e4   : > { %5872 = vmatpush3.msra.mxu0 %v9852_v16  ;;  %5905 = vmatpush3.msra.mxu1 %v9853_v28 }
 0x6e5   : > { %5873 = vmatprep.subr.mxu0 %v6559_v42  ;;  %5906 = vmatprep.subr.mxu1 %v6559_v42 }
 0x6e6   : > { %v2926_v57 = vpop.permute.xlu1 %2925  ;;  %5874 = vmatpush3.msra.mxu0 %v9856_v2  ;;  %5877 = vmatprep.mubr.msk.f32.mxu0 %vm6560_vm2, %v6559_v42  ;;  %v9027_v19 = vpop.eup %6241  ;;  %v9874_v2 = vld [vmem:[#allocation103_spill] sm:$0xff] }
 0x6e7   : > { %v2931_v59 = vrot.slane %v2926_v57, %v7697_v44  ;;  %5875 = vmatprep.subr.mxu0 %v6559_v42  ;;  %5907 = vmatpush3.msra.mxu1 %v9860_v37  ;;  %v9873_v57 = vld [vmem:[#allocation102_spill] sm:$0xff]  ;;  %v9881_v37 = vld [vmem:[#allocation125_spill] sm:$0xff] }
 0x6e8   : > { %5876 = vmatpush3.msra.mxu0 %v9859_v33  ;;  %5908 = vmatprep.subr.mxu1 %v6559_v42  ;;  %v9034_v17 = vpop.eup %6243  ;;  %v9880_v33 = vld [vmem:[#allocation123_spill] sm:$0xff] }
 0x6e9   : > { %v2963_v21 = vsub.f32 %v8721_v52, %v2931_v59  ;;  %5915 = vmatprep.subr.mxu0 %v6559_v42  ;;  %5909 = vmatpush3.msra.mxu1 %v9861_v9  ;;  %v9039_v23 = vpop.eup %6245  ;;  %v9875_v59 = vld [vmem:[#allocation105_spill] sm:$0xff]  ;;  %v9885_v9 = vld [vmem:[#allocation130_spill] sm:$0xff] }
 0x6ea   : > { %v2935_v25 = vpop.permute.xlu0 %2934  ;;  %5910 = vmatprep.subr.mxu1 %v6559_v42  ;;  %v9043_v26 = vpop.eup %6247 }
 0x6eb   : > { %v2975_v48 = vmul.f32 1.442695, %v2963_v21  ;;  %v2940_v53 = vrot.slane %v2935_v25, %v7697_v44  ;;  %5911 = vmatpush3.msra.mxu1 %v9862_v6  ;;  %v9882_v21 = vld [vmem:[#allocation126_spill] sm:$0xff]  ;;  %v9884_v25 = vld [vmem:[#allocation127_spill] sm:$0xff] }
 0x6ec   : > { %5950 = vmatprep.subr.mxu1 %v6559_v42  ;;  %v9889_v6 = vld [vmem:[#allocation134_spill] sm:$0xff] }
 0x6ed   : > { %6249 = vpow2.f32 %v2975_v48  ;;  %v2964_v52 = vsub.f32 %v8725_v12, %v2940_v53  ;;  %v2875_v12 = vmul.f32 1.442695, %v2865_v43  ;;  %v9886_v48 = vld [vmem:[#allocation129_spill] sm:$0xff]  ;;  %v9887_v53 = vld [vmem:[#allocation132_spill] sm:$0xff] }
 0x6ee   : > { %6251 = vpow2.f32 %v1306_v62  ;;  %v9883_v62 = vld [vmem:[#allocation128_spill] sm:$0xff] }
 0x6ef   : > { %v2977_v8 = vmul.f32 1.442695, %v2964_v52  ;;  %6253 = vpow2.f32 %v1308_v47  ;;  %v9888_v47 = vld [vmem:[#allocation131_spill] sm:$0xff]  ;;  %v9890_v52 = vld [vmem:[#allocation133_spill] sm:$0xff] }
 0x6f0   : > { %1482 = vperm.xlu1 %6212, %v9016_v24  }
 0x6f1   : > { %6255 = vpow2.f32 %v2977_v8  ;;  %v9892_v8 = vld [vmem:[#allocation135_spill] sm:$0xff] }
 0x6f2   : > { %6257 = vpow2.f32 %v2873_v50  ;;  %v9891_v50 = vld [vmem:[#allocation136_spill] sm:$0xff] }
 0x6f3   : > { %6259 = vpow2.f32 %v2871_v51  ;;  %v9893_v51 = vld [vmem:[#allocation137_spill] sm:$0xff] }
 0x6f4   : > { %1473 = vperm.xlu0 %6211, %v9022_v45   ;;  %1491 = vperm.xlu1 %6212, %v9027_v19   ;;  %6261 = vpow2.f32 %v2875_v12 }
 0x6f5   : > { %6263 = vpow2.f32 %v2877_v15 }
 0x6f6   : > { %6265 = vpow2.f32 %v2879_v18 }
 0x6f7   : > { %6267 = vpow2.f32 %v2881_v63 }
 0x6f8   : > { %1500 = vperm.xlu0 %6211, %v9034_v17   ;;  %1509 = vperm.xlu1 %6212, %v9039_v23  }
 0x6fa   : > { %v9045_v34 = vpop.eup %6249 }
 0x6fb   : > { %v9050_v43 = vpop.eup %6251  ;;  %5878 = vmatmul.mubr.f32.vlgmr.msra.gmra.mxu0 %v9045_v34 }
 0x6fc   : > { %1518 = vperm.xlu0 %6211, %v9043_v26   ;;  %1527 = vperm.xlu1 %6212, %v9050_v43   ;;  %v9055_v3 = vpop.eup %6253 }
 0x6fd   : > { %5916 = vmatpush3.msra.mxu0 %v9863_v58  ;;  %5947 = vmatprep.mubr.msk.f32.mxu0 %vm6560_vm2, %v6559_v42  ;;  %v3005_v58 = vsel %vm1253_vm3, %v8909_v49, 0.0 }
 0x6fe   : > { %v9060_v41 = vpop.eup %6255  ;;  %5917 = vmatprep.subr.mxu0 %v6559_v42 }
 0x6ff   : > { %v9063_v1 = vpop.eup %6257  ;;  %5913 = vmatmul.mubr.f32.vlgmr.msra.gmra.mxu1 %v9060_v41  ;;  %5918 = vmatpush3.msra.mxu0 %v9864_v60 }
 0x700   : > { %1536 = vperm.xlu0 %6211, %v9055_v3   ;;  %3058 = vperm.xlu1 %6212, %v9063_v1   ;;  %v9071_v46 = vpop.eup %6259 }
 0x701   : > { %5919 = vmatprep.subr.mxu0 %v6559_v42  ;;  %5951 = vmatpush3.msra.mxu1 %v9865_v61  ;;  %v9075_v11 = vpop.eup %6261 }
 0x702   : > { %5920 = vmatpush3.msra.mxu0 %v9866_v55  ;;  %5952 = vmatprep.subr.mxu1 %v6559_v42  ;;  %v9083_v16 = vpop.eup %6263  ;;  %v3008_v55 = vsel %vm1253_vm3, %v8899_v0, 0.0 }
 0x703   : > { %5921 = vmatprep.subr.mxu0 %v6559_v42  ;;  %5953 = vmatpush3.msra.mxu1 %v9867_v13  ;;  %v9087_v28 = vpop.eup %6265 }
 0x704   : > { %3049 = vperm.xlu0 %6211, %v9071_v46   ;;  %3067 = vperm.xlu1 %6212, %v9075_v11   ;;  %v9097_v54 = vpop.eup %6267 }
 0x705   : > { %5922 = vmatpush3.msra.mxu0 %v9868_v14  ;;  %5954 = vmatprep.subr.mxu1 %v6559_v42 }
 0x706   : > { %5923 = vmatprep.subr.mxu0 %v6559_v42  ;;  %5955 = vmatpush3.msra.mxu1 %v9869_v22  ;;  %v2885_v22 = vmul.f32 1.442695, %v2870_v38 }
 0x707   : > { %5924 = vmatpush3.msra.mxu0 %v9870_v29  ;;  %5956 = vmatprep.subr.mxu1 %v6559_v42 }
 0x708   : > { %3076 = vperm.xlu0 %6211, %v9083_v16   ;;  %3085 = vperm.xlu1 %6212, %v9087_v28  }
 0x709   : > { %5925 = vmatprep.subr.mxu0 %v6559_v42  ;;  %5957 = vmatpush3.msra.mxu1 %v9871_v31 }
 0x70a   : > { %5926 = vmatpush3.msra.mxu0 %v9872_v32  ;;  %5958 = vmatprep.subr.mxu1 %v6559_v42 }
 0x70b   : > { %5927 = vmatprep.subr.mxu0 %v6559_v42  ;;  %5959 = vmatpush3.msra.mxu1 %v9873_v57 }
 0x70c   : > { %3094 = vperm.xlu0 %6211, %v9097_v54   ;;  %5928 = vmatpush3.msra.mxu0 %v9874_v2  ;;  %v1408_v2 = vld [vmem:[#allocation4 + $0x2] sm:$0x1] }
 0x70d   : > { %5929 = vmatprep.subr.mxu0 %v6559_v42  ;;  %5960 = vmatprep.subr.mxu1 %v6559_v42 }
 0x70e   : > { %5930 = vmatpush3.msra.mxu0 %v9875_v59  ;;  %5961 = vmatpush3.msra.mxu1 %v9876_v56 }
 0x70f   : > { %5931 = vmatprep.subr.mxu0 %v6559_v42  ;;  %5962 = vmatprep.subr.mxu1 %v6559_v42 }
 0x710   : > { %5963 = vmatpush3.msra.mxu1 %v9877_v4  ;;  %5932 = vmatpush3.msra.mxu0 %v9878_v5  ;;  %v1409_v4 = vld [vmem:[#allocation4 + $0x3] sm:$0x1] }
 0x711   : > { %5933 = vmatprep.subr.mxu0 %v6559_v42  ;;  %5964 = vmatprep.subr.mxu1 %v6559_v42 }
 0x712   : > { %5934 = vmatpush3.msra.mxu0 %v9879_v7  ;;  %5965 = vmatpush3.msra.mxu1 %v9880_v33  ;;  %v1416_v7 = vmul.f32 %v9027_v19, %v1408_v2  ;;  %v1412_v19 = vld [vmem:[#allocation4 + $0x6] sm:$0x1] }
 0x713   : > { %5935 = vmatprep.subr.mxu0 %v6559_v42  ;;  %5966 = vmatprep.subr.mxu1 %v6559_v42 }
 0x714   : > { %5967 = vmatpush3.msra.mxu1 %v9881_v37  ;;  %5936 = vmatpush3.msra.mxu0 %v9882_v21  ;;  %v1417_v37 = vmul.f32 %v9034_v17, %v1409_v4  ;;  %v1410_v21 = vld [vmem:[#allocation4 + $0x4] sm:$0x1]  ;;  %v1420_v17 = vmul.f32 %v9050_v43, %v1412_v19 }
 0x715   : > { %5937 = vmatprep.subr.mxu0 %v6559_v42  ;;  %5968 = vmatprep.subr.mxu1 %v6559_v42 }
 0x716   : > { %5938 = vmatpush3.msra.mxu0 %v9883_v62  ;;  %5969 = vmatpush3.msra.mxu1 %v9884_v25  ;;  %v1411_v25 = vld [vmem:[#allocation4 + $0x5] sm:$0x1] }
 0x717   : > { %5939 = vmatprep.subr.mxu0 %v6559_v42  ;;  %5970 = vmatprep.subr.mxu1 %v6559_v42 }
 0x718   : > { %5940 = vmatpush3.msra.mxu0 %v9885_v9  ;;  %5971 = vmatpush3.msra.mxu1 %v9886_v48 }
 0x719   : > { %5941 = vmatprep.subr.mxu0 %v6559_v42  ;;  %5972 = vmatprep.subr.mxu1 %v6559_v42 }
 0x71a   : > { %5942 = vmatpush3.msra.mxu0 %v9887_v53  ;;  %5973 = vmatpush3.msra.mxu1 %v9888_v47  ;;  %v1419_v53 = vmul.f32 %v9043_v26, %v1411_v25  ;;  %v1469_v25 = vld [vmem:[#allocation5 + $0x6] sm:$0x1] }
 0x71b   : > { %5943 = vmatprep.subr.mxu0 %v6559_v42  ;;  %5974 = vmatprep.subr.mxu1 %v6559_v42 }
 0x71c   : > { %5944 = vmatpush3.msra.mxu0 %v9889_v6  ;;  %5975 = vmatpush3.msra.mxu1 %v9890_v52  ;;  %v1413_v52 = vld [vmem:[#allocation4 + $0x7] sm:$0x1] }
 0x71d   : > { %5945 = vmatprep.subr.mxu0 %v6559_v42  ;;  %5976 = vmatprep.subr.mxu1 %v6559_v42 }
 0x71e   : > { %5946 = vmatpush3.msra.mxu0 %v9891_v50  ;;  %5977 = vmatpush3.msra.mxu1 %v9892_v8 }
 0x71f   : > { %5978 = vmatprep.subr.mxu1 %v6559_v42  ;;  %5982 = vmatprep.mubr.msk.f32.mxu1 %vm6560_vm2, %v6559_v42 }
 0x720   : > { %5979 = vmatpush3.msra.mxu1 %v9893_v51  ;;  %v1421_v51 = vmul.f32 %v9055_v3, %v1413_v52  ;;  %v1464_v3 = vld [vmem:[#allocation5 + $0x1] sm:$0x1] }
 0x721   : > { %5980 = vmatprep.subr.mxu1 %v6559_v42 }
 0x722   : > { %5981 = vmatpush3.msra.mxu1 %v8632_v35  ;;  %v3011_v35 = vsel %vm1253_vm3, %v9045_v34, 0.0 }
 0x726   : > { %v2944_v12 = vpop.permute.xlu1 %2943 }
 0x727   : > { %v2949_v15 = vrot.slane %v2944_v12, %v7697_v44 }
 0x729   : > { %v2965_v18 = vsub.f32 %v8749_v27, %v2949_v15  ;;  %v3014_v27 = vsel %vm1253_vm3, %v9060_v41, 0.0 }
 0x72a   : > { %v2953_v63 = vpop.permute.xlu0 %2952 }
 0x72b   : > { %v2979_v60 = vmul.f32 1.442695, %v2965_v18  ;;  %v2958_v61 = vrot.slane %v2953_v63, %v7697_v44  ;;  %3006 = vadd.xlane.f32.xlu0 %v3005_v58 }
 0x72c   : > { %3009 = vadd.xlane.f32.xlu1 %v3008_v55 }
 0x72d   : > { %6269 = vpow2.f32 %v2979_v60  ;;  %v2966_v42 = vsub.f32 %v8753_v30, %v2958_v61  ;;  %v2883_v30 = vmul.f32 1.442695, %v2869_v40  ;;  %v1406_v40 = vld [vmem:[#allocation4] sm:$0x1] }
 0x72e   : > { %v1414_v38 = vmul.f32 %v9022_v45, %v1406_v40  ;;  %v1418_v45 = vmul.f32 %v9039_v23, %v1410_v21  ;;  %v9895_v40 = vld [vmem:[#allocation43_spill] sm:$0xff]  ;;  %v9897_v21 = vld [vmem:[#allocation45_spill] sm:$0xff] }
 0x72f   : > { %v2981_v13 = vmul.f32 1.442695, %v2966_v42  ;;  %3012 = vadd.xlane.f32.xlu0 %v3011_v35 }
 0x730   : > { %3015 = vadd.xlane.f32.xlu1 %v3014_v27  ;;  %v1463_v27 = vld [vmem:[#allocation5] sm:$0x1] }
 0x731   : > { %6271 = vpow2.f32 %v2981_v13 }
 0x732   : > { %6273 = vpow2.f32 %v2883_v30  ;;  %v9894_v30 = vld [vmem:[#allocation44_spill] sm:$0xff] }
 0x733   : > { %6275 = vpow2.f32 %v2885_v22 }
 0x73a   : > { %v6270_v49 = vpop.eup %6269 }
 0x73b   : > { %5948 = vmatmul.mubr.f32.vlgmr.msra.gmra.mxu0 %v6270_v49  ;;  %v3017_v14 = vsel %vm1253_vm3, %v6270_v49, 0.0 }
 0x73c   : > { %3018 = vadd.xlane.f32.xlu0 %v3017_v14  ;;  %v1465_v14 = vld [vmem:[#allocation5 + $0x2] sm:$0x1] }
 0x73e   : > { %v6272_v0 = vpop.eup %6271 }
 0x73f   : > { %5983 = vmatmul.mubr.f32.vlgmr.msra.gmra.mxu1 %v6272_v0  ;;  %v3020_v34 = vsel %vm1253_vm3, %v6272_v0, 0.0  ;;  %v9169_v57 = vpop.eup %6273 }
 0x740   : > { %3021 = vadd.xlane.f32.xlu1 %v3020_v34  ;;  %v9171_v36 = vpop.eup %6275 }
 0x745   : > { %v9165_v41 = vpop.f32.mrf.mxu1 }
 0x746   : > { %v9167_v29 = vpop.f32.mrf.mxu0 }
 0x747   : > { %v5774_v31 = vpop.f32.mrf.mxu1 }
 0x748   : > { %v5739_v32 = vpop.f32.mrf.mxu0 }
 0x749   : > { %v1466_v32 = vld [vmem:[#allocation5 + $0x3] sm:$0x1] }
 0x751   : > { %3103 = vperm.xlu1 %6212, %v9169_v57  }
 0x752   : > { %3112 = vperm.xlu0 %6211, %v9171_v36  }
 0x757   : > { %v1427_v39 = vpop.xlane.xlu0 %1426 }
 0x758   : > { %v1447_v59 = vadd.f32 %v1427_v39, %v1415_v20  ;;  %v1424_v56 = vpop.xlane.xlu1 %1423 }
 0x759   : > { %v1446_v5 = vadd.f32 %v1424_v56, %v1414_v38  ;;  %v1467_v38 = vld [vmem:[#allocation5 + $0x4] sm:$0x1] }
 0x75a   : > { %1456 = vst.msk [vmem:[#allocation4 + $0x1] sm:$0x1] %vm1454_vm4, %v1447_v59  ;;  %v9896_v59 = vld [vmem:[#allocation46_spill] sm:$0xff] }
 0x75b   : > { %1455 = vst.msk [vmem:[#allocation4] sm:$0x1] %vm1454_vm4, %v1446_v5  ;;  %v1430_v33 = vpop.xlane.xlu0 %1429 }
 0x75c   : > { %v1448_v62 = vadd.f32 %v1430_v33, %v1416_v7  ;;  %v1433_v24 = vpop.xlane.xlu1 %1432  ;;  %v1468_v33 = vld [vmem:[#allocation5 + $0x5] sm:$0x1] }
 0x75d   : > { %v1449_v9 = vadd.f32 %v1433_v24, %v1417_v37 }
 0x75e   : > { %1457 = vst.msk [vmem:[#allocation4 + $0x2] sm:$0x1] %vm1454_vm4, %v1448_v62 }
 0x75f   : > { %1458 = vst.msk [vmem:[#allocation4 + $0x3] sm:$0x1] %vm1454_vm4, %v1449_v9  ;;  %v1436_v48 = vpop.xlane.xlu0 %1435 }
 0x760   : > { %v1450_v47 = vadd.f32 %v1436_v48, %v1418_v45  ;;  %v1439_v6 = vpop.xlane.xlu1 %1438  ;;  %v9898_v45 = vld [vmem:[#allocation57_spill] sm:$0xff] }
 0x761   : > { %v1451_v50 = vadd.f32 %v1439_v6, %v1419_v53  ;;  %v2984_v23 = vld [vmem:[#allocation4 + $0x1] sm:$0x1]  ;;  %v1470_v6 = vld [vmem:[#allocation5 + $0x7] sm:$0x1] }
 0x762   : > { %1459 = vst.msk [vmem:[#allocation4 + $0x4] sm:$0x1] %vm1454_vm4, %v1450_v47  ;;  %v2983_v18 = vld [vmem:[#allocation4] sm:$0x1]  ;;  %v2992_v26 = vmul.f32 %v9063_v1, %v2984_v23  ;;  %v9900_v23 = vld [vmem:[#allocation90_spill] sm:$0xff] }
 0x763   : > { %1460 = vst.msk [vmem:[#allocation4 + $0x5] sm:$0x1] %vm1454_vm4, %v1451_v50  ;;  %v1442_v8 = vpop.xlane.xlu0 %1441  ;;  %v2991_v60 = vmul.f32 %v9071_v46, %v2983_v18  ;;  %v9899_v50 = vld [vmem:[#allocation58_spill] sm:$0xff] }
 0x764   : > { %v1452_v12 = vadd.f32 %v1442_v8, %v1420_v17  ;;  %v1445_v15 = vpop.xlane.xlu1 %1444 }
 0x765   : > { %v1453_v63 = vadd.f32 %v1445_v15, %v1421_v51 }
 0x766   : > { %1461 = vst.msk [vmem:[#allocation4 + $0x6] sm:$0x1] %vm1454_vm4, %v1452_v12 }
 0x767   : > { %1462 = vst.msk [vmem:[#allocation4 + $0x7] sm:$0x1] %vm1454_vm4, %v1453_v63  ;;  %v3004_v58 = vpop.xlane.xlu0 %3003 }
 0x768   : > { %v3024_v43 = vadd.f32 %v3004_v58, %v2992_v26  ;;  %v3001_v61 = vpop.xlane.xlu1 %3000 }
 0x769   : > { %v3023_v55 = vadd.f32 %v3001_v61, %v2991_v60  ;;  %v9901_v60 = vld [vmem:[#allocation95_spill] sm:$0xff] }
 0x76a   : > { %3032 = vst.msk [vmem:[#allocation4 + $0x1] sm:$0x1] %vm1454_vm4, %v3024_v43 }
 0x76b   : > { %3031 = vst.msk [vmem:[#allocation4] sm:$0x1] %vm1454_vm4, %v3023_v55 }
 0x76c   : > { %v1483_v42 = vpop.permute.xlu1 %1482 }
 0x76d   : > { %v1488_v35 = vrot.slane %v1483_v42, %v7697_v44 }
 0x76f   : > { %v1544_v13 = vmul.f32 %v1488_v35, %v1464_v3  ;;  %v1474_v49 = vpop.permute.xlu0 %1473 }
 0x770   : > { %v1479_v1 = vrot.slane %v1474_v49, %v7697_v44  ;;  %v1492_v0 = vpop.permute.xlu1 %1491 }
 0x771   : > { %v2112_v46 = vadd.f32 %v9894_v30, %v1544_v13  ;;  %v1497_v34 = vrot.slane %v1492_v0, %v7697_v44 }
 0x772   : > { %v1543_v22 = vmul.f32 %v1479_v1, %v1463_v27 }
 0x773   : > { %2120 = vst [vmem:[#allocation5 + $0x1] sm:$0x1] %v2112_v46  ;;  %v1545_v31 = vmul.f32 %v1497_v34, %v1465_v14  ;;  %v1501_v10 = vpop.permute.xlu0 %1500 }
 0x774   : > { %v2111_v20 = vadd.f32 %v9895_v40, %v1543_v22  ;;  %v1506_v39 = vrot.slane %v1501_v10, %v7697_v44  ;;  %v1510_v2 = vpop.permute.xlu1 %1509 }
 0x775   : > { %v2113_v56 = vadd.f32 %v9896_v59, %v1545_v31  ;;  %v1515_v4 = vrot.slane %v1510_v2, %v7697_v44 }
 0x776   : > { %2119 = vst [vmem:[#allocation5] sm:$0x1] %v2111_v20  ;;  %v1546_v5 = vmul.f32 %v1506_v39, %v1466_v32  ;;  %v2985_v20 = vld [vmem:[#allocation4 + $0x2] sm:$0x1] }
 0x777   : > { %2121 = vst [vmem:[#allocation5 + $0x2] sm:$0x1] %v2113_v56  ;;  %v1547_v7 = vmul.f32 %v1515_v4, %v1467_v38  ;;  %v1519_v37 = vpop.permute.xlu0 %1518  ;;  %v2993_v38 = vmul.f32 %v9075_v11, %v2985_v20  ;;  %v2987_v56 = vld [vmem:[#allocation4 + $0x4] sm:$0x1] }
 0x778   : > { %v2114_v62 = vadd.f32 %v9897_v21, %v1546_v5  ;;  %v1524_v24 = vrot.slane %v1519_v37, %v7697_v44  ;;  %v1528_v9 = vpop.permute.xlu1 %1527  ;;  %v2995_v21 = vmul.f32 %v9087_v28, %v2987_v56 }
 0x779   : > { %v2115_v48 = vadd.f32 %v9898_v45, %v1547_v7  ;;  %v1533_v53 = vrot.slane %v1528_v9, %v7697_v44  ;;  %v2988_v7 = vld [vmem:[#allocation4 + $0x5] sm:$0x1] }
 0x77a   : > { %2122 = vst [vmem:[#allocation5 + $0x3] sm:$0x1] %v2114_v62  ;;  %v1548_v19 = vmul.f32 %v1524_v24, %v1468_v33  ;;  %v3040_v63 = vld [vmem:[#allocation5 + $0x1] sm:$0x1]  ;;  %v2996_v24 = vmul.f32 %v9097_v54, %v2988_v7 }
 0x77b   : > { %2123 = vst [vmem:[#allocation5 + $0x4] sm:$0x1] %v2115_v48  ;;  %v1549_v47 = vmul.f32 %v1533_v53, %v1469_v25  ;;  %v1537_v52 = vpop.permute.xlu0 %1536 }
 0x77c   : > { %v2116_v17 = vadd.f32 %v9899_v50, %v1548_v19  ;;  %v1542_v8 = vrot.slane %v1537_v52, %v7697_v44  ;;  %v3059_v51 = vpop.permute.xlu1 %3058 }
 0x77d   : > { %v2117_v12 = vadd.f32 %v9900_v23, %v1549_v47  ;;  %v3064_v15 = vrot.slane %v3059_v51, %v7697_v44  ;;  %v3039_v3 = vld [vmem:[#allocation5] sm:$0x1]  ;;  %v2990_v23 = vld [vmem:[#allocation4 + $0x7] sm:$0x1] }
 0x77e   : > { %2124 = vst [vmem:[#allocation5 + $0x5] sm:$0x1] %v2116_v17  ;;  %v1550_v18 = vmul.f32 %v1542_v8, %v1470_v6  ;;  %v3041_v34 = vld [vmem:[#allocation5 + $0x2] sm:$0x1]  ;;  %v2989_v17 = vld [vmem:[#allocation4 + $0x6] sm:$0x1] }
 0x77f   : > { %2125 = vst [vmem:[#allocation5 + $0x6] sm:$0x1] %v2117_v12  ;;  %v3120_v26 = vmul.f32 %v3064_v15, %v3040_v63  ;;  %v3050_v58 = vpop.permute.xlu0 %3049  ;;  %v2997_v8 = vmul.f32 %v9169_v57, %v2989_v17  ;;  %v2998_v15 = vmul.f32 %v9171_v36, %v2990_v23 }
 0x780   : > { %v2118_v43 = vadd.f32 %v9901_v60, %v1550_v18  ;;  %v3055_v61 = vrot.slane %v3050_v58, %v7697_v44  ;;  %v3068_v42 = vpop.permute.xlu1 %3067 }
 0x781   : > { %v3688_v55 = vadd.f32 %v9165_v41, %v3120_v26  ;;  %v3403_v13 = vpop.f32.mrf.mxu1  ;;  %v3073_v1 = vrot.slane %v3068_v42, %v7697_v44  ;;  %v3042_v30 = vld [vmem:[#allocation5 + $0x3] sm:$0x1] }
 0x782   : > { %2126 = vst [vmem:[#allocation5 + $0x7] sm:$0x1] %v2118_v43  ;;  %v3119_v35 = vmul.f32 %v3055_v61, %v3039_v3  ;;  %v3043_v9 = vld [vmem:[#allocation5 + $0x4] sm:$0x1] }
 0x783   : > { %3696 = vst [vmem:[#allocation5 + $0x1] sm:$0x1] %v3688_v55  ;;  %v3077_v27 = vpop.permute.xlu0 %3076  ;;  %v5844_v0 = vpop.f32.mrf.mxu1  ;;  %v3121_v41 = vmul.f32 %v3073_v1, %v3041_v34 }
 0x784   : > { %v3687_v49 = vadd.f32 %v9167_v29, %v3119_v35  ;;  %v3082_v14 = vrot.slane %v3077_v27, %v7697_v44  ;;  %v3086_v39 = vpop.permute.xlu1 %3085  ;;  %v2986_v29 = vld [vmem:[#allocation4 + $0x3] sm:$0x1] }
 0x785   : > { %v2994_v59 = vmul.f32 %v9083_v16, %v2986_v29  ;;  %v3091_v33 = vrot.slane %v3086_v39, %v7697_v44  ;;  %v3044_v28 = vld [vmem:[#allocation5 + $0x5] sm:$0x1] }
 0x786   : > { %3695 = vst [vmem:[#allocation5] sm:$0x1] %v3687_v49  ;;  %v3122_v46 = vmul.f32 %v3082_v14, %v3042_v30  ;;  %v3045_v43 = vld [vmem:[#allocation5 + $0x6] sm:$0x1] }
 0x787   : > { %v3095_v40 = vpop.permute.xlu0 %3094  ;;  %v3123_v48 = vmul.f32 %v3091_v33, %v3043_v9 }
 0x788   : > { %v3690_v22 = vadd.f32 %v3403_v13, %v3122_v46  ;;  %v3100_v16 = vrot.slane %v3095_v40, %v7697_v44 }
 0x789   : > { %v3333_v31 = vpop.f32.mrf.mxu0  ;;  %v3046_v35 = vld [vmem:[#allocation5 + $0x7] sm:$0x1] }
 0x78a   : > { %3698 = vst [vmem:[#allocation5 + $0x3] sm:$0x1] %v3690_v22  ;;  %v3689_v32 = vadd.f32 %v3333_v31, %v3121_v41  ;;  %v3124_v6 = vmul.f32 %v3100_v16, %v3044_v28 }
 0x78b   : > { %v5809_v10 = vpop.f32.mrf.mxu0 }
 0x78c   : > { %3697 = vst [vmem:[#allocation5 + $0x2] sm:$0x1] %v3689_v32 }
 0x7b4   : > { %v3007_v2 = vpop.xlane.xlu0 %3006 }
 0x7b5   : > { %v3025_v4 = vadd.f32 %v3007_v2, %v2993_v38  ;;  %v3010_v5 = vpop.xlane.xlu1 %3009 }
 0x7b6   : > { %v3026_v37 = vadd.f32 %v3010_v5, %v2994_v59 }
 0x7b7   : > { %3033 = vst.msk [vmem:[#allocation4 + $0x2] sm:$0x1] %vm1454_vm4, %v3025_v4 }
 0x7b8   : > { %3034 = vst.msk [vmem:[#allocation4 + $0x3] sm:$0x1] %vm1454_vm4, %v3026_v37  ;;  %v3013_v62 = vpop.xlane.xlu0 %3012 }
 0x7b9   : > { %v3027_v11 = vadd.f32 %v3013_v62, %v2995_v21  ;;  %v3016_v25 = vpop.xlane.xlu1 %3015 }
 0x7ba   : > { %v3028_v45 = vadd.f32 %v3016_v25, %v2996_v24 }
 0x7bb   : > { %3035 = vst.msk [vmem:[#allocation4 + $0x4] sm:$0x1] %vm1454_vm4, %v3027_v11  ;;  %v3473_v53 = vpop.f32.mrf.mxu0 }
 0x7bc   : > { %3036 = vst.msk [vmem:[#allocation4 + $0x5] sm:$0x1] %vm1454_vm4, %v3028_v45  ;;  %v3691_v19 = vadd.f32 %v3473_v53, %v3123_v48 }
 0x7bd   : > { %v5879_v47 = vpop.f32.mrf.mxu0 }
 0x7be   : > { %3699 = vst [vmem:[#allocation5 + $0x4] sm:$0x1] %v3691_v19 }
 0x7bf   : > { %v3543_v52 = vpop.f32.mrf.mxu1 }
 0x7c0   : > { %v3692_v50 = vadd.f32 %v3543_v52, %v3124_v6 }
 0x7c1   : > { %v5914_v54 = vpop.f32.mrf.mxu1 }
 0x7c2   : > { %3700 = vst [vmem:[#allocation5 + $0x5] sm:$0x1] %v3692_v50 }
 0x7c5   : > { %v3019_v51 = vpop.xlane.xlu0 %3018 }
 0x7c6   : > { %v3029_v12 = vadd.f32 %v3019_v51, %v2997_v8 }
 0x7c8   : > { %3037 = vst.msk [vmem:[#allocation4 + $0x6] sm:$0x1] %vm1454_vm4, %v3029_v12 }
 0x7c9   : > { %v3022_v18 = vpop.xlane.xlu1 %3021 }
 0x7ca   : > { %v3030_v63 = vadd.f32 %v3022_v18, %v2998_v15 }
 0x7cc   : > { %3038 = vst.msk [vmem:[#allocation4 + $0x7] sm:$0x1] %vm1454_vm4, %v3030_v63 }
 0x7cd   : > { %v3104_v26 = vpop.permute.xlu1 %3103  ;;  %v3113_v60 = vpop.permute.xlu0 %3112 }
 0x7ce   : > { %v3109_v58 = vrot.slane %v3104_v26, %v7697_v44  ;;  %v3118_v61 = vrot.slane %v3113_v60, %v7697_v44 }
 0x7d0   : > { %v3125_v55 = vmul.f32 %v3109_v58, %v3045_v43  ;;  %v3126_v13 = vmul.f32 %v3118_v61, %v3046_v35 }
 0x7fb   : > { %v3613_v57 = vpop.f32.mrf.mxu0 }
 0x7fc   : > { %v3693_v3 = vadd.f32 %v3613_v57, %v3125_v55 }
 0x7fd   : > { %v5949_v42 = vpop.f32.mrf.mxu0 }
 0x7fe   : > { %3701 = vst [vmem:[#allocation5 + $0x6] sm:$0x1] %v3693_v3  ;;  %3714 = sbr.rel (%p4229_p6) target bundleno = 2428 (0x97c), region = 68 }
 0x7ff   : > { %v3683_v27 = vpop.f32.mrf.mxu1 }
 0x800   : > { %v3694_v36 = vadd.f32 %v3683_v27, %v3126_v13 }
 0x801   : > { %v5984_v49 = vpop.f32.mrf.mxu1 }
 0x802   : > { %3702 = vst [vmem:[#allocation5 + $0x7] sm:$0x1] %v3694_v36 }
 0x803   : > { %v3726_v1 = vld [vmem:[#allocation4 + $0x2] sm:$0x1]  ;;  %v3724_v14 = vld [vmem:[#allocation4] sm:$0x1]  ;;  %v6562_v0 = vmov 0   ;;  %v6563_v34 = vmov 0.0  }
 0x804   : > { %6286 = vset.pattern.permute.xlu1 %v6562_v0  ;;  %6285 = vset.pattern.permute.xlu0 %v6562_v0  ;;  %v3727_v30 = vld [vmem:[#allocation4 + $0x3] sm:$0x1]  ;;  %v3725_v46 = vld [vmem:[#allocation4 + $0x1] sm:$0x1]  ;;  %v3851_v22 = vld [vmem:[#allocation14 + $0x78] sm:$0xff]  ;;  %vm6564_vm5 = vmmov 0  }
 0x805   : > { %3752 = vperm.xlu1 %6286, %v3726_v1   ;;  %3734 = vperm.xlu0 %6285, %v3724_v14   ;;  %v3729_v41 = vld [vmem:[#allocation4 + $0x5] sm:$0x1]  ;;  %v3728_v31 = vld [vmem:[#allocation4 + $0x4] sm:$0x1]  ;;  %v3850_v32 = vld [vmem:[#allocation14 + $0x70] sm:$0xff] }
 0x806   : > { %5985 = vmatprep.subr.mxu0 %v6563_v34  ;;  %6020 = vmatprep.subr.mxu1 %v6563_v34  ;;  %v3835_v10 = vld [vmem:[#allocation12 + $0x78] sm:$0xff]  ;;  %v3849_v40 = vld [vmem:[#allocation14 + $0x68] sm:$0xff]  ;;  %v3834_v20 = vld [vmem:[#allocation12 + $0x70] sm:$0xff]  ;;  %v6565_v13 = vmov 1966171168  }
 0x807   : > { %5986 = vmatpush3.msra.mxu0 %v3851_v22  ;;  %6021 = vmatpush3.msra.mxu1 %v3835_v10  ;;  %v3731_v39 = vld [vmem:[#allocation4 + $0x7] sm:$0x1]  ;;  %v3730_v29 = vld [vmem:[#allocation4 + $0x6] sm:$0x1]  ;;  %v3833_v38 = vld [vmem:[#allocation12 + $0x68] sm:$0xff]  ;;  %v3935_v27 = vunpack.c.l.s4 %v6565_v13 }
 0x808   : > { %5987 = vmatprep.subr.mxu0 %v6563_v34  ;;  %6022 = vmatprep.subr.mxu1 %v6563_v34  ;;  %v3848_v2 = vld [vmem:[#allocation14 + $0x60] sm:$0xff]  ;;  %v3847_v56 = vld [vmem:[#allocation14 + $0x58] sm:$0xff]  ;;  %v3846_v5 = vld [vmem:[#allocation14 + $0x50] sm:$0xff] }
 0x809   : > { %3761 = vperm.xlu1 %6286, %v3727_v30   ;;  %3743 = vperm.xlu0 %6285, %v3725_v46   ;;  %v3832_v59 = vld [vmem:[#allocation12 + $0x60] sm:$0xff]  ;;  %v3831_v4 = vld [vmem:[#allocation12 + $0x58] sm:$0xff]  ;;  %v3830_v7 = vld [vmem:[#allocation12 + $0x50] sm:$0xff]  ;;  %v3936_v22 = vunpack.c.0.s8 %v3935_v27 }
 0x80a   : > { %5988 = vmatpush3.msra.mxu0 %v3850_v32  ;;  %6023 = vmatpush3.msra.mxu1 %v3834_v20  ;;  %v3845_v33 = vld [vmem:[#allocation14 + $0x48] sm:$0xff]  ;;  %v3844_v21 = vld [vmem:[#allocation14 + $0x40] sm:$0xff]  ;;  %v3843_v24 = vld [vmem:[#allocation14 + $0x38] sm:$0xff] }
 0x80b   : > { %5989 = vmatprep.subr.mxu0 %v6563_v34  ;;  %6024 = vmatprep.subr.mxu1 %v6563_v34  ;;  %v3829_v37 = vld [vmem:[#allocation12 + $0x48] sm:$0xff]  ;;  %v3828_v62 = vld [vmem:[#allocation12 + $0x40] sm:$0xff]  ;;  %v3827_v11 = vld [vmem:[#allocation12 + $0x38] sm:$0xff] }
 0x80c   : > { %5990 = vmatpush3.msra.mxu0 %v3849_v40  ;;  %6025 = vmatpush3.msra.mxu1 %v3833_v38  ;;  %v3842_v25 = vld [vmem:[#allocation14 + $0x30] sm:$0xff]  ;;  %v3841_v16 = vld [vmem:[#allocation14 + $0x28] sm:$0xff]  ;;  %v3840_v48 = vld [vmem:[#allocation14 + $0x20] sm:$0xff] }
 0x80d   : > { %3779 = vperm.xlu1 %6286, %v3729_v41   ;;  %3770 = vperm.xlu0 %6285, %v3728_v31   ;;  %v3826_v9 = vld [vmem:[#allocation12 + $0x30] sm:$0xff]  ;;  %v3825_v45 = vld [vmem:[#allocation12 + $0x28] sm:$0xff]  ;;  %v3824_v53 = vld [vmem:[#allocation12 + $0x20] sm:$0xff] }
 0x80e   : > { %5991 = vmatprep.subr.mxu0 %v6563_v34  ;;  %6026 = vmatprep.subr.mxu1 %v6563_v34  ;;  %v3839_v19 = vld [vmem:[#allocation14 + $0x18] sm:$0xff]  ;;  %v3838_v28 = vld [vmem:[#allocation14 + $0x10] sm:$0xff]  ;;  %v3837_v52 = vld [vmem:[#allocation14 + $0x8] sm:$0xff] }
 0x80f   : > { %5992 = vmatpush3.msra.mxu0 %v3848_v2  ;;  %6027 = vmatpush3.msra.mxu1 %v3832_v59  ;;  %v3823_v47 = vld [vmem:[#allocation12 + $0x18] sm:$0xff]  ;;  %v3822_v6 = vld [vmem:[#allocation12 + $0x10] sm:$0xff]  ;;  %v3836_v50 = vld [vmem:[#allocation14] sm:$0xff] }
 0x810   : > { %5993 = vmatprep.subr.mxu0 %v6563_v34  ;;  %6028 = vmatprep.subr.mxu1 %v6563_v34  ;;  %v3821_v54 = vld [vmem:[#allocation12 + $0x8] sm:$0xff]  ;;  %v3715_v17 = vld [vmem:[%s6819_s7] sm:$0xff]  ;;  %v3820_v8 = vld [vmem:[#allocation12] sm:$0xff] }
 0x811   : > { %3797 = vperm.xlu1 %6286, %v3731_v39   ;;  %3788 = vperm.xlu0 %6285, %v3730_v29   ;;  %v3717_v1 = vld [vmem:[#allocation5 + $0x1] sm:$0x1]  ;;  %v3719_v14 = vld [vmem:[#allocation5 + $0x3] sm:$0x1]  ;;  %v3716_v46 = vld [vmem:[#allocation5] sm:$0x1] }
 0x812   : > { %5994 = vmatpush3.msra.mxu0 %v3847_v56  ;;  %6029 = vmatpush3.msra.mxu1 %v3831_v4  ;;  %v3720_v32 = vld [vmem:[#allocation5 + $0x4] sm:$0x1]  ;;  %v3721_v10 = vld [vmem:[#allocation5 + $0x5] sm:$0x1]  ;;  %v9903_v29 = vld [vmem:[#allocation114_spill] sm:$0xff] }
 0x813   : > { %5995 = vmatprep.subr.mxu0 %v6563_v34  ;;  %6030 = vmatprep.subr.mxu1 %v6563_v34  ;;  %v3939_v38 = vsub.s32 %v3936_v22, %v9903_v29  ;;  %v3723_v2 = vld [vmem:[#allocation5 + $0x7] sm:$0x1] }
 0x814   : > { %5996 = vmatpush3.msra.mxu0 %v3846_v5  ;;  %6031 = vmatpush3.msra.mxu1 %v3830_v7  ;;  %v3722_v7 = vld [vmem:[#allocation5 + $0x6] sm:$0x1] }
 0x815   : > { %5997 = vmatprep.subr.mxu0 %v6563_v34  ;;  %6032 = vmatprep.subr.mxu1 %v6563_v34 }
 0x816   : > { %5998 = vmatpush3.msra.mxu0 %v3845_v33  ;;  %6033 = vmatpush3.msra.mxu1 %v3829_v37 }
 0x817   : > { %5999 = vmatprep.subr.mxu0 %v6563_v34  ;;  %6034 = vmatprep.subr.mxu1 %v6563_v34 }
 0x818   : > { %6000 = vmatpush3.msra.mxu0 %v3844_v21  ;;  %6035 = vmatpush3.msra.mxu1 %v3828_v62 }
 0x819   : > { %6001 = vmatprep.subr.mxu0 %v6563_v34  ;;  %6036 = vmatprep.subr.mxu1 %v6563_v34 }
 0x81a   : > { %6002 = vmatpush3.msra.mxu0 %v3843_v24  ;;  %6037 = vmatpush3.msra.mxu1 %v3827_v11 }
 0x81b   : > { %6003 = vmatprep.subr.mxu0 %v6563_v34  ;;  %6038 = vmatprep.subr.mxu1 %v6563_v34 }
 0x81c   : > { %6004 = vmatpush3.msra.mxu0 %v3842_v25  ;;  %6039 = vmatpush3.msra.mxu1 %v3826_v9 }
 0x81d   : > { %6005 = vmatprep.subr.mxu0 %v6563_v34  ;;  %6040 = vmatprep.subr.mxu1 %v6563_v34 }
 0x81e   : > { %6006 = vmatpush3.msra.mxu0 %v3841_v16  ;;  %6041 = vmatpush3.msra.mxu1 %v3825_v45 }
 0x81f   : > { %6007 = vmatprep.subr.mxu0 %v6563_v34  ;;  %6042 = vmatprep.subr.mxu1 %v6563_v34 }
 0x820   : > { %6008 = vmatpush3.msra.mxu0 %v3840_v48  ;;  %6043 = vmatpush3.msra.mxu1 %v3824_v53 }
 0x821   : > { %6009 = vmatprep.subr.mxu0 %v6563_v34  ;;  %6044 = vmatprep.subr.mxu1 %v6563_v34 }
 0x822   : > { %6010 = vmatpush3.msra.mxu0 %v3839_v19  ;;  %6045 = vmatpush3.msra.mxu1 %v3823_v47 }
 0x823   : > { %6011 = vmatprep.subr.mxu0 %v6563_v34  ;;  %6046 = vmatprep.subr.mxu1 %v6563_v34 }
 0x824   : > { %6012 = vmatpush3.msra.mxu0 %v3838_v28  ;;  %6047 = vmatpush3.msra.mxu1 %v3822_v6 }
 0x825   : > { %6013 = vmatprep.subr.mxu0 %v6563_v34  ;;  %6048 = vmatprep.subr.mxu1 %v6563_v34 }
 0x826   : > { %6014 = vmatpush3.msra.mxu0 %v3837_v52  ;;  %6017 = vmatprep.mubr.msk.f32.mxu0 %vm6564_vm5, %v6563_v34 }
 0x827   : > { %6015 = vmatprep.subr.mxu0 %v6563_v34  ;;  %6049 = vmatpush3.msra.mxu1 %v3821_v54 }
 0x828   : > { %6016 = vmatpush3.msra.mxu0 %v3836_v50  ;;  %6050 = vmatprep.subr.mxu1 %v6563_v34 }
 0x829   : > { %6018 = vmatmul.mubr.f32.vlgmr.msra.gmra.mxu0 %v3715_v17  ;;  %6051 = vmatpush3.msra.mxu1 %v3820_v8 }
 0x82a   : > { %6052 = vmatprep.mubr.msk.f32.mxu1 %vm6564_vm5, %v6563_v34  ;;  %v3718_v34 = vld [vmem:[#allocation5 + $0x2] sm:$0x1] }
 0x880   : > { %v3753_v51 = vpop.permute.xlu1 %3752  ;;  %v3735_v23 = vpop.permute.xlu0 %3734 }
 0x881   : > { %v3758_v12 = vrot.slane %v3753_v51, %v7697_v44  ;;  %v3740_v15 = vrot.slane %v3735_v23, %v7697_v44 }
 0x883   : > { %6287 = vrcp.f32 %v3758_v12 }
 0x884   : > { %v3762_v18 = vpop.permute.xlu1 %3761  ;;  %v3744_v63 = vpop.permute.xlu0 %3743  ;;  %6289 = vrcp.f32 %v3740_v15 }
 0x885   : > { %v3767_v26 = vrot.slane %v3762_v18, %v7697_v44  ;;  %v3749_v58 = vrot.slane %v3744_v63, %v7697_v44 }
 0x887   : > { %6291 = vrcp.f32 %v3767_v26 }
 0x888   : > { %6293 = vrcp.f32 %v3749_v58  ;;  %v3780_v60 = vpop.permute.xlu1 %3779  ;;  %v3771_v43 = vpop.permute.xlu0 %3770 }
 0x889   : > { %v3785_v61 = vrot.slane %v3780_v60, %v7697_v44  ;;  %v3776_v55 = vrot.slane %v3771_v43, %v7697_v44 }
 0x88b   : > { %6295 = vrcp.f32 %v3785_v61 }
 0x88c   : > { %6297 = vrcp.f32 %v3776_v55  ;;  %v3798_v57 = vpop.permute.xlu1 %3797  ;;  %v3789_v3 = vpop.permute.xlu0 %3788 }
 0x88d   : > { %v3803_v42 = vrot.slane %v3798_v57, %v7697_v44  ;;  %v3794_v35 = vrot.slane %v3789_v3, %v7697_v44 }
 0x88f   : > { %6299 = vrcp.f32 %v3803_v42 }
 0x890   : > { %6301 = vrcp.f32 %v3794_v35  ;;  %v6288_v36 = vpop.eup %6287 }
 0x891   : > { %v6290_v49 = vpop.eup %6289  ;;  %v3809_v44 = vmul.f32 %v6288_v36, %v3718_v34 }
 0x892   : > { %v3805_v20 = vmul.f32 %v6290_v49, %v3716_v46 }
 0x894   : > { %v6292_v0 = vpop.eup %6291 }
 0x895   : > { %v6294_v30 = vpop.eup %6293  ;;  %v3811_v31 = vmul.f32 %v6292_v0, %v3719_v14 }
 0x896   : > { %v3807_v41 = vmul.f32 %v6294_v30, %v3717_v1 }
 0x897   : > { %v3931_v5 = vcombine.low %v3809_v44, %v3811_v31 }
 0x898   : > { %v6296_v40 = vpop.eup %6295  ;;  %v3930_v4 = vcombine.low %v3805_v20, %v3807_v41 }
 0x899   : > { %v6298_v39 = vpop.eup %6297  ;;  %v3815_v56 = vmul.f32 %v6296_v40, %v3721_v10  ;;  %v3947_v25 = vrot.slane %v3931_v5, %v3939_v38 }
 0x89a   : > { %v3813_v59 = vmul.f32 %v6298_v39, %v3720_v32  ;;  %v3940_v11 = vrot.slane %v3930_v4, %v3939_v38 }
 0x89c   : > { %v6300_v33 = vpop.eup %6299  ;;  %v3932_v24 = vcombine.low %v3813_v59, %v3815_v56  ;;  %v3962_v48 = vcombine.low %v3940_v11, %v3947_v25 }
 0x89d   : > { %v6302_v37 = vpop.eup %6301  ;;  %v3819_v21 = vmul.f32 %v6300_v33, %v3723_v2 }
 0x89e   : > { %v3817_v62 = vmul.f32 %v6302_v37, %v3722_v7  ;;  %v3954_v16 = vrot.slane %v3932_v24, %v3939_v38  ;;  %v3970_v19 = vrot.slane %v3962_v48, %v3939_v38 }
 0x8a0   : > { %v3933_v9 = vcombine.low %v3817_v62, %v3819_v21 }
 0x8a2   : > { %v3961_v45 = vrot.slane %v3933_v9, %v3939_v38 }
 0x8a4   : > { %v3963_v53 = vcombine.low %v3954_v16, %v3961_v45 }
 0x8a6   : > { %v3977_v47 = vrot.slane %v3963_v53, %v3939_v38 }
 0x8a8   : > { %v3978_v28 = vcombine.low %v3970_v19, %v3977_v47 }
 0x8aa   : > { %6053 = vmatmul.mubr.f32.vlgmr.msra.gmra.mxu1 %v3978_v28 }
 0x8e9   : > { %v3918_v6 = vpop.f32.mrf.mxu0 }
 0x8eb   : > { %v6019_v52 = vpop.f32.mrf.mxu0 }
 0x96a   : > { %v4046_v50 = vpop.f32.mrf.mxu1 }
 0x96b   : > { %v4047_v54 = vadd.f32 %v4046_v50, %v3918_v6 }
 0x96c   : > { %v6054_v17 = vpop.f32.mrf.mxu1 }
 0x96d   : > { %6303 = vtanh.f32 %v4047_v54 }
 0x97a   : > { %v6304_v8 = vpop.eup %6303 }
 0x97b   : > { %4051 = vst [vmem:[%s6841_s12] sm:$0xff] %v6304_v8 }
 0x97c PF: > { %s9904_s6 = sld [smem:[#allocation26_spill]]  ;;  %s4066_s3 = sshll.u32 %s6841_s12, 4  ;;  %s4067_s3 = int_to_ptr.vmem [resolvable:$true] %s4066_s3 }
 0x97d   : > { %s9905_s14 = sld [smem:[#allocation31_spill]]  ;;  %s4053_s5 = scalar_lea.sflag [#allocation8], %s6815_s25 }
 0x97e   : > { %s9906_s24 = sld [smem:[#allocation140_spill]]  ;;  %s6409_s13 = scalar_lea.vmem %s4067_s3, 128 }
 0x97f   : > { %p6410_p13 = scmp.ne.s32.totalorder %s4067_s3, %s6409_s13  ;;  %s6566_s7 = smov [#allocation15]  }
 0x980   : > { %s6413_s15 = sshll.u32 %s6566_s7, 4  ;;  %s6414_s15 = int_to_ptr.vmem [resolvable:$false] %s6413_s15 }
 0x981   : > { %s6415_s10 = scalar_lea.vmem %s6414_s15, 256  ;;  %p6416_p1 = scmp.lt.s32.totalorder %s4067_s3, %s6414_s15 }
 0x982   : > { %s4231_s2 = sshll.u32 %s9904_s6, 7  ;;  %p6417_p8 = scmp.lt.s32.totalorder %s6415_s10, %s6409_s13 }
 0x983   : > { %p9908_p5 = scmp.ne.s32.totalorder %s9905_s14, 0 }
 0x984   : > { %s9907_s11 = smov %s9906_s24  ;;  %s4064_s17 = scalar_lea.hbm %s9906_s24, %s4231_s2 }
 0x985   : > { %p6411_p2 = pnand %p6410_p13, %p9908_p5  ;;  %p6418_p12 = por %p6417_p8, %p6416_p1 }
 0x987   : > { %p6412_p11 = pneg %p6411_p2 }
 0x989   : > { %p6419_p7 = pnand %p6418_p12, %p6412_p11 }
 0x98b   : > { %6422 = shalt.err (!%p6419_p7)
}
 0x98c   : > { %s6423_s18 = scalar_lea.hbm %s4064_s17, 128  ;;  %s6427_s9 = scalar_lea.hbm %s9907_s11, 256 }
 0x98d   : > { %p6424_p4 = scmp.ne.s32.totalorder %s4064_s17, %s6423_s18  ;;  %p6428_p0 = scmp.lt.s32.totalorder %s4064_s17, %s9907_s11 }
 0x98e   : > { %p6429_p10 = scmp.lt.s32.totalorder %s6427_s9, %s6423_s18 }
 0x98f   : > { %p6425_p9 = pnand %p6424_p4, %p9908_p5 }
 0x990   : > { %p6430_p6 = por %p6429_p10, %p6428_p0 }
 0x991   : > { %p6426_p3 = pneg %p6425_p9 }
 0x993   : > { %p6431_p13 = pnand %p6430_p6, %p6426_p3 }
 0x995   : > { %6434 = shalt.err (!%p6431_p13)
}
 0x996   : > { %6078 = dma.vmem_to_hbm [thread:$0]  (%p9908_p5), %s4067_s3, 128, %s4064_s17, %s4053_s5  }
 0x997 PF: > { %s9909_s29 = sld [smem:[#allocation24_spill]]  ;;  %p6100_p2 = scmp.ge.s32.totalorder %s6541_s28, 2 }
 0x998   : > { %s9910_s6 = sld [smem:[#allocation32_spill]] }
 0x99d   : > { %s4078_s2 = sand.u32 1, %s9909_s29  }
 0x99e   : > { %p9911_p11 = scmp.ne.s32.totalorder %s9910_s6, 0  ;;  %s4079_s8 = scalar_lea.sflag [#allocation8], %s4078_s2 }
 0x9a0   : > { %p6091_p1 = pnand %p6100_p2, %p9911_p11 }
 0x9a2   : > { %p6092_p8 = pneg %p6091_p1 }
 0x9a4   : > { %6496 = dma.done.wait (%p6092_p8), %s4079_s8, 128  }
 0x9a5   : > { %6498 = vsyncadd (%p6092_p8), %s4079_s8, 4294967168  ;;  %s25_s28 = sadd.s32 1, %s6541_s28   ;;  %s9912_s21 = sld [smem:[#allocation30_spill]] }
 0x9a6   : > { %p22_p12 = scmp.ge.s32.totalorder %s25_s28, 6   ;;  %s9913_s14 = sld [smem:[#allocation29_spill]] }
 0x9a7   : > { %s9914_s17 = sld [smem:[#allocation27_spill]]  ;;  %s9916_s18 = smov %s6505_s19 }
 0x9a8   : > { %s9915_s3 = sld [smem:[#allocation28_spill]]  ;;  %s9917_s19 = smov %s6509_s20 }
 0x9a9   : > { %s9922_s24 = smov %s6533_s26  ;;  %s9923_s25 = smov %s6537_s27 }
 0x9aa   :  { %24 = sbr.rel (!%p22_p12) target bundleno = 16 (0x10), region = 123 }
 0x9ab   : > { %s9918_s20 = smov %s9912_s21  ;;  %s9919_s21 = smov %s6517_s22 }
 0x9ac   : > { %s9920_s22 = smov %s6521_s23  ;;  %s9921_s23 = smov %s9913_s14 }
 0x9ad   : > { %s9924_s26 = smov %s9914_s17 }
 0x9ae   : > { %s9925_s27 = smov %s9915_s3 }
 0x9af   :  { %4084 = vsyncpa [#allocation7], 1 }
 0x9b0   :  { %4086 = vsyncpa [#allocation7 + $0x1], 1 }
 0x9b1   :  { %4087 = vsyncpa [#allocation10], 1 }
 0x9b2   :  { %4089 = vsyncpa [#allocation10 + $0x1], 1 }
 0x9b3   :  { %4090 = vsyncpa [#allocation13], 1 }
 0x9b4   :  { %4091 = vsyncpa [#allocation8], 1 }
 0x9b5   :  { %4093 = vsyncpa [#allocation8 + $0x1], 1 }

</bundles_post_ra>
